<compile_context>
chip_gen: v5e
topology: v5e:2x2
jax: 0.10.0
libtpu: 0.0.40
codegen_flags: <defaults>
</compile_context>

<pallas_src>
import functools
import math

import jax
import jax.numpy as jnp
from jax import lax
from jax.experimental import pallas as pl
from jax.experimental.pallas import tpu as pltpu


# ---------------------------------------------------------------------------
# Fused kernel: primary_conv + cheap_operation for one (batch, T-tile) step.
# ---------------------------------------------------------------------------
def _ghost_kernel(pw_ref, dw_ref, x_ref, o_ref, x1_ref, *,
                  cin, init_chs, n_dw, img_w, hw, t_tile, lpad, n_t):
    # pw_ref : SMEM (init_chs, cin + 1)        folded 1x1x1 weights | bias
    # dw_ref : SMEM (n_dw, 28)                 folded 3x3x3 taps    | bias
    # x_ref  : VMEM (1, cin, T, S)             full-T input block (resident per batch)
    # o_ref  : VMEM (1, out_chs, t_tile, S)    output block (both channel halves)
    # x1_ref : VMEM (init_chs, t_tile + 9, lpad + S + img_w + 1) f32 scratch:
    #          rows 8 .. 8+t_tile-1 -> pointwise output of this tile (aligned)
    #          row 7 / row 8+t_tile -> 1-frame temporal halo (prev / next)
    #          lanes [lpad, lpad+S) -> image interior; the (img_w+1)-wide
    #          strips on either side are zeroed for the spatial lane shifts.
    t = pl.program_id(1)
    row0 = 8                                   # sublane-aligned interior start
    l_tot = x1_ref.shape[2]

    t0 = t * t_tile
    if t_tile % 8 == 0:
        t0 = pl.multiple_of(t0, 8)

    # ---- pointwise 1x1x1 conv + folded BN + ReLU ---------------------------
    def pointwise(g_start, length, row, write_out):
        # g_start: dynamic global frame start; length / row are static.
        accs = [None] * init_chs
        for ci in range(cin):                  # each input plane loaded & cast once
            xp = x_ref[0, ci, pl.ds(g_start, length), :].astype(jnp.float32)
            for o in range(init_chs):
                term = xp * pw_ref[o, ci]
                accs[o] = term if ci == 0 else accs[o] + term
        for o in range(init_chs):
            y = jnp.maximum(accs[o] + pw_ref[o, cin], 0.0)
            x1_ref[o, row:row + length, lpad:lpad + hw] = y
            if write_out:
                o_ref[0, o] = y.astype(o_ref.dtype)

    def zero_halo_row(row):
        zl = jnp.zeros((1, l_tot), jnp.float32)
        for o in range(init_chs):
            x1_ref[o, row:row + 1, :] = zl

    # Zero only the narrow lane-pad strips actually read by the spatial shifts.
    zs = jnp.zeros((t_tile + 2, img_w + 1), jnp.float32)
    for o in range(init_chs):
        x1_ref[o, 7:row0 + t_tile + 1, lpad - (img_w + 1):lpad] = zs
        x1_ref[o, 7:row0 + t_tile + 1, lpad + hw:lpad + hw + img_w + 1] = zs

    # Interior frames of this tile (also written to output channels [0, init)).
    pointwise(t0, t_tile, row0, write_out=True)

    # Temporal halo: previous / next frame, zero padding at the clip boundary.
    if n_t == 1:
        zero_halo_row(row0 - 1)
        zero_halo_row(row0 + t_tile)
    else:
        @pl.when(t == 0)
        def _():
            zero_halo_row(row0 - 1)

        @pl.when(t > 0)
        def _():
            pointwise(t0 - 1, 1, row0 - 1, write_out=False)

        @pl.when(t == n_t - 1)
        def _():
            zero_halo_row(row0 + t_tile)

        @pl.when(t < n_t - 1)
        def _():
            pointwise(t0 + t_tile, 1, row0 + t_tile, write_out=False)

    # ---- depthwise 3x3x3 conv + folded BN + ReLU ---------------------------
    # Row-boundary masks for shifts that cross an image row in the flattened
    # (h, w) lane axis; built once from a (1, S) iota and broadcast over T.
    lane_w = lax.broadcasted_iota(jnp.int32, (1, hw), 1) % img_w
    w_mask = {-1: lane_w >= 1, 0: None, 1: lane_w <= img_w - 2}

    # TODO(synk): the channel loop is fully unrolled; for large init_chs switch
    # to a lax.fori_loop over channel blocks (and an MXU path for the pointwise
    # once cin*init_chs is of order 64x64).
    for c in range(n_dw):
        acc = None
        for dh in (-1, 0, 1):
            for dw in (-1, 0, 1):
                off = lpad + dh * img_w + dw
                # One (t_tile+2, S) read per (dh, dw); the three temporal taps
                # are register sub-slices of it -> no scratch read-modify-write.
                big = x1_ref[c, row0 - 1:row0 + t_tile + 1, off:off + hw]
                if w_mask[dw] is not None:
                    big = jnp.where(w_mask[dw], big, 0.0)
                for dt in (-1, 0, 1):
                    tap = dw_ref[c, (dt + 1) * 9 + (dh + 1) * 3 + (dw + 1)]
                    term = big[1 + dt:1 + dt + t_tile, :] * tap
                    acc = term if acc is None else acc + term
        out = jnp.maximum(acc + dw_ref[c, 27], 0.0)
        o_ref[0, init_chs + c] = out.astype(o_ref.dtype)


# ---------------------------------------------------------------------------
# Wrapper helpers
# ---------------------------------------------------------------------------
def _vmem_budget():
    """Generation-aware per-step VMEM budget + scoped-vmem limit (bytes)."""
    cap = 0
    try:
        cap = int(getattr(pltpu.get_tpu_info(), "vmem_capacity_bytes", 0) or 0)
    except Exception:
        cap = 0
    if cap <= 0:
        # Unknown generation: conservative budget, keep the compiler default limit.
        return 12 << 20, None
    budget = min(max(cap // 4, 8 << 20), 24 << 20)   # ~24 MiB v5e/v6e, ~16 MiB v7x
    limit = min((cap * 3) // 4, 100 << 20)
    return budget, limit


def _pick_t_tile(t_total, per_frame_bytes, fixed_bytes, budget):
    """Largest T tile (full T or a multiple-of-8 divisor of T) within budget."""
    candidates = sorted(
        {t_total, *[d for d in range(8, t_total, 8) if t_total % d == 0]},
        reverse=True)
    for c in candidates:
        if fixed_bytes + c * per_frame_bytes <= budget:
            return c
    return candidates[-1]      # nothing fits: best effort with the smallest tile


def ghost_module_3d(x, params, out_chs):
    """x: (N, in_chs, T, H, W) (NCDHW, like PyTorch). Returns (N, out_chs, T, H, W)."""
    w1, s1, b1 = params["w1"], params["s1"], params["b1"]   # (init, cin), (init,), (init,)
    dw, s2, b2 = params["dw"], params["s2"], params["b2"]   # (init, 3, 3, 3), (init,), (init,)

    N, cin, T, H, W = x.shape
    init_chs = w1.shape[0]
    n_dw = out_chs - init_chs            # x2 channels surviving the [:out_chs] slice
    assert 0 < n_dw <= init_chs, "only ratio=2 GhostModule3D is implemented"
    S = H * W
    dsize = x.dtype.itemsize
    lpad = ((W + 1 + 127) // 128) * 128  # lane-aligned interior start of the scratch
    l_tot = lpad + S + W + 1

    # Fold BatchNorm (inference form) into the conv weights + a bias.
    pw_params = jnp.concatenate(
        [w1 * s1[:, None], b1[:, None]], axis=1).astype(jnp.float32)        # (init, cin+1)
    dw_flat = (dw * s2[:, None, None, None]).reshape(init_chs, 27)
    dw_params = jnp.concatenate(
        [dw_flat, b2[:, None]], axis=1)[:n_dw].astype(jnp.float32)          # (n_dw, 28)

    # Flatten (H, W) into one lane-dense axis S.
    # TODO(synk): pad S up to a multiple of 128 when H*W has a large non-128
    # remainder to avoid masked partial stores on the output writes.
    x4 = x.reshape(N, cin, T, S)

    budget, vmem_limit = _vmem_budget()
    per_frame = 2 * out_chs * S * dsize + init_chs * l_tot * 4
    fixed = 2 * cin * T * S * dsize + 9 * init_chs * l_tot * 4
    # TODO(synk): x stays resident with full T per batch; for very long clips
    # also tile x over T with a manually DMA'd 1-frame halo.
    tT = _pick_t_tile(T, per_frame, fixed, budget)
    n_t = T // tT

    kernel = functools.partial(
        _ghost_kernel, cin=cin, init_chs=init_chs, n_dw=n_dw,
        img_w=W, hw=S, t_tile=tT, lpad=lpad, n_t=n_t)

    cp = dict(dimension_semantics=("parallel", "parallel"))
    if vmem_limit is not None:
        cp["vmem_limit_bytes"] = int(vmem_limit)

    out4 = pl.pallas_call(
        kernel,
        out_shape=jax.ShapeDtypeStruct((N, out_chs, T, S), x.dtype),
        grid=(N, n_t),
        in_specs=[
            pl.BlockSpec(memory_space=pltpu.MemorySpace.SMEM),   # pointwise weights
            pl.BlockSpec(memory_space=pltpu.MemorySpace.SMEM),   # depthwise weights
            pl.BlockSpec((1, cin, T, S), lambda n, t: (n, 0, 0, 0)),
        ],
        out_specs=pl.BlockSpec((1, out_chs, tT, S), lambda n, t: (n, 0, t, 0)),
        scratch_shapes=[pltpu.VMEM((init_chs, tT + 9, l_tot), jnp.float32)],
        compiler_params=pltpu.CompilerParams(**cp),
        cost_estimate=pl.CostEstimate(
            flops=2 * N * T * S * (cin * init_chs + 27 * n_dw),
            transcendentals=0,
            bytes_accessed=(N * cin * T * S + N * out_chs * T * S) * dsize),
    )(pw_params, dw_params, x4)

    return out4.reshape(N, out_chs, T, H, W)


# ---------------------------------------------------------------------------
# Pure-JAX reference (lax.conv) for validation.
# ---------------------------------------------------------------------------
def reference(x, params, out_chs):
    w1, s1, b1 = params["w1"], params["s1"], params["b1"]
    dw, s2, b2 = params["dw"], params["s2"], params["b2"]
    init_chs, cin = w1.shape
    bc = lambda v: v[None, :, None, None, None]

    y1 = lax.conv_general_dilated(
        x, w1.reshape(init_chs, cin, 1, 1, 1), (1, 1, 1), "VALID",
        dimension_numbers=("NCDHW", "OIDHW", "NCDHW"))
    y1 = jnp.maximum(y1 * bc(s1) + bc(b1), 0.0)

    y2 = lax.conv_general_dilated(
        y1, dw[:, None], (1, 1, 1), [(1, 1)] * 3,
        dimension_numbers=("NCDHW", "OIDHW", "NCDHW"),
        feature_group_count=init_chs)
    y2 = jnp.maximum(y2 * bc(s2) + bc(b2), 0.0)

    return jnp.concatenate([y1, y2], axis=1)[:, :out_chs]


def make_params(key, in_chs, out_chs, ratio=2):
    init_chs = math.ceil(out_chs / ratio)
    new_chs = init_chs * (ratio - 1)
    assert new_chs == init_chs, "only ratio=2 implemented"
    ks = jax.random.split(key, 10)
    eps = 1e-5

    w1 = 0.1 * jax.random.normal(ks[0], (init_chs, in_chs), jnp.float32)
    g1 = 1.0 + 0.1 * jax.random.normal(ks[1], (init_chs,), jnp.float32)
    be1 = 0.05 * jax.random.normal(ks[2], (init_chs,), jnp.float32)
    mu1 = 0.05 * jax.random.normal(ks[3], (init_chs,), jnp.float32)
    var1 = jax.random.uniform(ks[4], (init_chs,), jnp.float32, 0.5, 1.5)
    s1 = g1 / jnp.sqrt(var1 + eps)
    b1 = be1 - mu1 * s1

    dwt = 0.1 * jax.random.normal(ks[5], (new_chs, 3, 3, 3), jnp.float32)
    g2 = 1.0 + 0.1 * jax.random.normal(ks[6], (new_chs,), jnp.float32)
    be2 = 0.05 * jax.random.normal(ks[7], (new_chs,), jnp.float32)
    mu2 = 0.05 * jax.random.normal(ks[8], (new_chs,), jnp.float32)
    var2 = jax.random.uniform(ks[9], (new_chs,), jnp.float32, 0.5, 1.5)
    s2 = g2 / jnp.sqrt(var2 + eps)
    b2 = be2 - mu2 * s2

    return {"w1": w1, "s1": s1, "b1": b1, "dw": dwt, "s2": s2, "b2": b2}


if __name__ == "__main__":
    key = jax.random.PRNGKey(0)
    k_x, k_p = jax.random.split(key)

    N, in_chs, out_chs = 2, 4, 8
    T, H, W = 4, 8, 8

    x = jax.random.normal(k_x, (N, in_chs, T, H, W), jnp.float32)  # NCDHW like PyTorch
    params = make_params(k_p, in_chs, out_chs)

    fwd = jax.jit(functools.partial(ghost_module_3d, out_chs=out_chs))
    out = jax.block_until_ready(fwd(x, params))

    ref = jax.block_until_ready(reference(x, params, out_chs))
    assert out.shape == (N, out_chs, T, H, W), out.shape
    err = float(jnp.max(jnp.abs(out - ref)))
    assert err < 1e-4, err

    print("KERNEL_OK")
</pallas_src>

<mosaic_0001>
module attributes {stable_mosaic.version = 11 : i64} {
  func.func @_ghost_kernel(%arg0: i32, %arg1: i32, %arg2: memref<4x5xf32, #tpu.memory_space<smem>>, %arg3: memref<4x28xf32, #tpu.memory_space<smem>>, %arg4: memref<1x4x4x64xf32, #tpu.memory_space<vmem>>, %arg5: memref<1x8x4x64xf32, #tpu.memory_space<vmem>>, %arg6: memref<4x13x201xf32, #tpu.memory_space<vmem>>) attributes {dimension_semantics = [#tpu.dimension_semantics<parallel>, #tpu.dimension_semantics<parallel>], iteration_bounds = array<i64: 2, 1>, scalar_prefetch = 0 : i64, scratch_operands = 1 : i64, tpu.core_type = #tpu.core_type<tc>, window_params = [{transform_indices = @transform_0, window_bounds = array<i64: 4, 5>}, {transform_indices = @transform_1, window_bounds = array<i64: 4, 28>}, {transform_indices = @transform_2, window_bounds = array<i64: 1, 4, 4, 64>}, {transform_indices = @transform_3, window_bounds = array<i64: 1, 8, 4, 64>}]} {
    %c4_i32 = arith.constant 4 : i32
    %0 = arith.muli %arg1, %c4_i32 : i32
    %cst = arith.constant 0.000000e+00 : f32
    %1 = vector.broadcast %cst : f32 to vector<6x9xf32>
    %c0 = arith.constant 0 : index
    %c7 = arith.constant 7 : index
    %c119 = arith.constant 119 : index
    %2 = vector.load %arg6[%c0, %c7, %c119] : memref<4x13x201xf32, #tpu.memory_space<vmem>>, vector<1x6x9xf32>
    %3 = vector.shape_cast %2 : vector<1x6x9xf32> to vector<6x9xf32>
    %4 = vector.shape_cast %1 : vector<6x9xf32> to vector<1x6x9xf32>
    tpu.vector_store %arg6[%c0, %c7, %c119], %4 {strides = array<i32>} : memref<4x13x201xf32, #tpu.memory_space<vmem>>, vector<1x6x9xf32>,
    %c0_0 = arith.constant 0 : index
    %c7_1 = arith.constant 7 : index
    %c192 = arith.constant 192 : index
    %5 = vector.load %arg6[%c0_0, %c7_1, %c192] : memref<4x13x201xf32, #tpu.memory_space<vmem>>, vector<1x6x9xf32>
    %6 = vector.shape_cast %5 : vector<1x6x9xf32> to vector<6x9xf32>
    %7 = vector.shape_cast %1 : vector<6x9xf32> to vector<1x6x9xf32>
    tpu.vector_store %arg6[%c0_0, %c7_1, %c192], %7 {strides = array<i32>} : memref<4x13x201xf32, #tpu.memory_space<vmem>>, vector<1x6x9xf32>,
    %c1 = arith.constant 1 : index
    %c7_2 = arith.constant 7 : index
    %c119_3 = arith.constant 119 : index
    %8 = vector.load %arg6[%c1, %c7_2, %c119_3] : memref<4x13x201xf32, #tpu.memory_space<vmem>>, vector<1x6x9xf32>
    %9 = vector.shape_cast %8 : vector<1x6x9xf32> to vector<6x9xf32>
    %10 = vector.shape_cast %1 : vector<6x9xf32> to vector<1x6x9xf32>
    tpu.vector_store %arg6[%c1, %c7_2, %c119_3], %10 {strides = array<i32>} : memref<4x13x201xf32, #tpu.memory_space<vmem>>, vector<1x6x9xf32>,
    %c1_4 = arith.constant 1 : index
    %c7_5 = arith.constant 7 : index
    %c192_6 = arith.constant 192 : index
    %11 = vector.load %arg6[%c1_4, %c7_5, %c192_6] : memref<4x13x201xf32, #tpu.memory_space<vmem>>, vector<1x6x9xf32>
    %12 = vector.shape_cast %11 : vector<1x6x9xf32> to vector<6x9xf32>
    %13 = vector.shape_cast %1 : vector<6x9xf32> to vector<1x6x9xf32>
    tpu.vector_store %arg6[%c1_4, %c7_5, %c192_6], %13 {strides = array<i32>} : memref<4x13x201xf32, #tpu.memory_space<vmem>>, vector<1x6x9xf32>,
    %c2 = arith.constant 2 : index
    %c7_7 = arith.constant 7 : index
    %c119_8 = arith.constant 119 : index
    %14 = vector.load %arg6[%c2, %c7_7, %c119_8] : memref<4x13x201xf32, #tpu.memory_space<vmem>>, vector<1x6x9xf32>
    %15 = vector.shape_cast %14 : vector<1x6x9xf32> to vector<6x9xf32>
    %16 = vector.shape_cast %1 : vector<6x9xf32> to vector<1x6x9xf32>
    tpu.vector_store %arg6[%c2, %c7_7, %c119_8], %16 {strides = array<i32>} : memref<4x13x201xf32, #tpu.memory_space<vmem>>, vector<1x6x9xf32>,
    %c2_9 = arith.constant 2 : index
    %c7_10 = arith.constant 7 : index
    %c192_11 = arith.constant 192 : index
    %17 = vector.load %arg6[%c2_9, %c7_10, %c192_11] : memref<4x13x201xf32, #tpu.memory_space<vmem>>, vector<1x6x9xf32>
    %18 = vector.shape_cast %17 : vector<1x6x9xf32> to vector<6x9xf32>
    %19 = vector.shape_cast %1 : vector<6x9xf32> to vector<1x6x9xf32>
    tpu.vector_store %arg6[%c2_9, %c7_10, %c192_11], %19 {strides = array<i32>} : memref<4x13x201xf32, #tpu.memory_space<vmem>>, vector<1x6x9xf32>,
    %c3 = arith.constant 3 : index
    %c7_12 = arith.constant 7 : index
    %c119_13 = arith.constant 119 : index
    %20 = vector.load %arg6[%c3, %c7_12, %c119_13] : memref<4x13x201xf32, #tpu.memory_space<vmem>>, vector<1x6x9xf32>
    %21 = vector.shape_cast %20 : vector<1x6x9xf32> to vector<6x9xf32>
    %22 = vector.shape_cast %1 : vector<6x9xf32> to vector<1x6x9xf32>
    tpu.vector_store %arg6[%c3, %c7_12, %c119_13], %22 {strides = array<i32>} : memref<4x13x201xf32, #tpu.memory_space<vmem>>, vector<1x6x9xf32>,
    %c3_14 = arith.constant 3 : index
    %c7_15 = arith.constant 7 : index
    %c192_16 = arith.constant 192 : index
    %23 = vector.load %arg6[%c3_14, %c7_15, %c192_16] : memref<4x13x201xf32, #tpu.memory_space<vmem>>, vector<1x6x9xf32>
    %24 = vector.shape_cast %23 : vector<1x6x9xf32> to vector<6x9xf32>
    %25 = vector.shape_cast %1 : vector<6x9xf32> to vector<1x6x9xf32>
    tpu.vector_store %arg6[%c3_14, %c7_15, %c192_16], %25 {strides = array<i32>} : memref<4x13x201xf32, #tpu.memory_space<vmem>>, vector<1x6x9xf32>,
    %c0_17 = arith.constant 0 : index
    %c0_18 = arith.constant 0 : index
    %26 = arith.index_cast %0 : i32 to index
    %c0_19 = arith.constant 0 : index
    %27 = vector.load %arg4[%c0_17, %c0_18, %26, %c0_19] : memref<1x4x4x64xf32, #tpu.memory_space<vmem>>, vector<1x1x4x64xf32>
    %28 = vector.shape_cast %27 : vector<1x1x4x64xf32> to vector<4x64xf32>
    %c0_20 = arith.constant 0 : index
    %c0_21 = arith.constant 0 : index
    %29 = memref.load %arg2[%c0_20, %c0_21] : memref<4x5xf32, #tpu.memory_space<smem>>
    %30 = vector.broadcast %29 : f32 to vector<4x64xf32>
    %31 = arith.mulf %28, %30 : vector<4x64xf32>
    %c1_22 = arith.constant 1 : index
    %c0_23 = arith.constant 0 : index
    %32 = memref.load %arg2[%c1_22, %c0_23] : memref<4x5xf32, #tpu.memory_space<smem>>
    %33 = vector.broadcast %32 : f32 to vector<4x64xf32>
    %34 = arith.mulf %28, %33 : vector<4x64xf32>
    %c2_24 = arith.constant 2 : index
    %c0_25 = arith.constant 0 : index
    %35 = memref.load %arg2[%c2_24, %c0_25] : memref<4x5xf32, #tpu.memory_space<smem>>
    %36 = vector.broadcast %35 : f32 to vector<4x64xf32>
    %37 = arith.mulf %28, %36 : vector<4x64xf32>
    %c3_26 = arith.constant 3 : index
    %c0_27 = arith.constant 0 : index
    %38 = memref.load %arg2[%c3_26, %c0_27] : memref<4x5xf32, #tpu.memory_space<smem>>
    %39 = vector.broadcast %38 : f32 to vector<4x64xf32>
    %40 = arith.mulf %28, %39 : vector<4x64xf32>
    %c0_28 = arith.constant 0 : index
    %c1_29 = arith.constant 1 : index
    %41 = arith.index_cast %0 : i32 to index
    %c0_30 = arith.constant 0 : index
    %42 = vector.load %arg4[%c0_28, %c1_29, %41, %c0_30] : memref<1x4x4x64xf32, #tpu.memory_space<vmem>>, vector<1x1x4x64xf32>
    %43 = vector.shape_cast %42 : vector<1x1x4x64xf32> to vector<4x64xf32>
    %c0_31 = arith.constant 0 : index
    %c1_32 = arith.constant 1 : index
    %44 = memref.load %arg2[%c0_31, %c1_32] : memref<4x5xf32, #tpu.memory_space<smem>>
    %45 = vector.broadcast %44 : f32 to vector<4x64xf32>
    %46 = arith.mulf %43, %45 : vector<4x64xf32>
    %47 = arith.addf %31, %46 : vector<4x64xf32>
    %c1_33 = arith.constant 1 : index
    %c1_34 = arith.constant 1 : index
    %48 = memref.load %arg2[%c1_33, %c1_34] : memref<4x5xf32, #tpu.memory_space<smem>>
    %49 = vector.broadcast %48 : f32 to vector<4x64xf32>
    %50 = arith.mulf %43, %49 : vector<4x64xf32>
    %51 = arith.addf %34, %50 : vector<4x64xf32>
    %c2_35 = arith.constant 2 : index
    %c1_36 = arith.constant 1 : index
    %52 = memref.load %arg2[%c2_35, %c1_36] : memref<4x5xf32, #tpu.memory_space<smem>>
    %53 = vector.broadcast %52 : f32 to vector<4x64xf32>
    %54 = arith.mulf %43, %53 : vector<4x64xf32>
    %55 = arith.addf %37, %54 : vector<4x64xf32>
    %c3_37 = arith.constant 3 : index
    %c1_38 = arith.constant 1 : index
    %56 = memref.load %arg2[%c3_37, %c1_38] : memref<4x5xf32, #tpu.memory_space<smem>>
    %57 = vector.broadcast %56 : f32 to vector<4x64xf32>
    %58 = arith.mulf %43, %57 : vector<4x64xf32>
    %59 = arith.addf %40, %58 : vector<4x64xf32>
    %c0_39 = arith.constant 0 : index
    %c2_40 = arith.constant 2 : index
    %60 = arith.index_cast %0 : i32 to index
    %c0_41 = arith.constant 0 : index
    %61 = vector.load %arg4[%c0_39, %c2_40, %60, %c0_41] : memref<1x4x4x64xf32, #tpu.memory_space<vmem>>, vector<1x1x4x64xf32>
    %62 = vector.shape_cast %61 : vector<1x1x4x64xf32> to vector<4x64xf32>
    %c0_42 = arith.constant 0 : index
    %c2_43 = arith.constant 2 : index
    %63 = memref.load %arg2[%c0_42, %c2_43] : memref<4x5xf32, #tpu.memory_space<smem>>
    %64 = vector.broadcast %63 : f32 to vector<4x64xf32>
    %65 = arith.mulf %62, %64 : vector<4x64xf32>
    %66 = arith.addf %47, %65 : vector<4x64xf32>
    %c1_44 = arith.constant 1 : index
    %c2_45 = arith.constant 2 : index
    %67 = memref.load %arg2[%c1_44, %c2_45] : memref<4x5xf32, #tpu.memory_space<smem>>
    %68 = vector.broadcast %67 : f32 to vector<4x64xf32>
    %69 = arith.mulf %62, %68 : vector<4x64xf32>
    %70 = arith.addf %51, %69 : vector<4x64xf32>
    %c2_46 = arith.constant 2 : index
    %c2_47 = arith.constant 2 : index
    %71 = memref.load %arg2[%c2_46, %c2_47] : memref<4x5xf32, #tpu.memory_space<smem>>
    %72 = vector.broadcast %71 : f32 to vector<4x64xf32>
    %73 = arith.mulf %62, %72 : vector<4x64xf32>
    %74 = arith.addf %55, %73 : vector<4x64xf32>
    %c3_48 = arith.constant 3 : index
    %c2_49 = arith.constant 2 : index
    %75 = memref.load %arg2[%c3_48, %c2_49] : memref<4x5xf32, #tpu.memory_space<smem>>
    %76 = vector.broadcast %75 : f32 to vector<4x64xf32>
    %77 = arith.mulf %62, %76 : vector<4x64xf32>
    %78 = arith.addf %59, %77 : vector<4x64xf32>
    %c0_50 = arith.constant 0 : index
    %c3_51 = arith.constant 3 : index
    %79 = arith.index_cast %0 : i32 to index
    %c0_52 = arith.constant 0 : index
    %80 = vector.load %arg4[%c0_50, %c3_51, %79, %c0_52] : memref<1x4x4x64xf32, #tpu.memory_space<vmem>>, vector<1x1x4x64xf32>
    %81 = vector.shape_cast %80 : vector<1x1x4x64xf32> to vector<4x64xf32>
    %c0_53 = arith.constant 0 : index
    %c3_54 = arith.constant 3 : index
    %82 = memref.load %arg2[%c0_53, %c3_54] : memref<4x5xf32, #tpu.memory_space<smem>>
    %83 = vector.broadcast %82 : f32 to vector<4x64xf32>
    %84 = arith.mulf %81, %83 : vector<4x64xf32>
    %85 = arith.addf %66, %84 : vector<4x64xf32>
    %c1_55 = arith.constant 1 : index
    %c3_56 = arith.constant 3 : index
    %86 = memref.load %arg2[%c1_55, %c3_56] : memref<4x5xf32, #tpu.memory_space<smem>>
    %87 = vector.broadcast %86 : f32 to vector<4x64xf32>
    %88 = arith.mulf %81, %87 : vector<4x64xf32>
    %89 = arith.addf %70, %88 : vector<4x64xf32>
    %c2_57 = arith.constant 2 : index
    %c3_58 = arith.constant 3 : index
    %90 = memref.load %arg2[%c2_57, %c3_58] : memref<4x5xf32, #tpu.memory_space<smem>>
    %91 = vector.broadcast %90 : f32 to vector<4x64xf32>
    %92 = arith.mulf %81, %91 : vector<4x64xf32>
    %93 = arith.addf %74, %92 : vector<4x64xf32>
    %c3_59 = arith.constant 3 : index
    %c3_60 = arith.constant 3 : index
    %94 = memref.load %arg2[%c3_59, %c3_60] : memref<4x5xf32, #tpu.memory_space<smem>>
    %95 = vector.broadcast %94 : f32 to vector<4x64xf32>
    %96 = arith.mulf %81, %95 : vector<4x64xf32>
    %97 = arith.addf %78, %96 : vector<4x64xf32>
    %c0_61 = arith.constant 0 : index
    %c4 = arith.constant 4 : index
    %98 = memref.load %arg2[%c0_61, %c4] : memref<4x5xf32, #tpu.memory_space<smem>>
    %99 = vector.broadcast %98 : f32 to vector<4x64xf32>
    %100 = arith.addf %85, %99 : vector<4x64xf32>
    %cst_62 = arith.constant 0.000000e+00 : f32
    %101 = vector.broadcast %cst_62 : f32 to vector<4x64xf32>
    %102 = arith.maximumf %100, %101 : vector<4x64xf32>
    %c0_63 = arith.constant 0 : index
    %c8 = arith.constant 8 : index
    %c128 = arith.constant 128 : index
    %103 = vector.load %arg6[%c0_63, %c8, %c128] : memref<4x13x201xf32, #tpu.memory_space<vmem>>, vector<1x4x64xf32>
    %104 = vector.shape_cast %103 : vector<1x4x64xf32> to vector<4x64xf32>
    %105 = vector.shape_cast %102 : vector<4x64xf32> to vector<1x4x64xf32>
    tpu.vector_store %arg6[%c0_63, %c8, %c128], %105 {strides = array<i32>} : memref<4x13x201xf32, #tpu.memory_space<vmem>>, vector<1x4x64xf32>,
    %c0_64 = arith.constant 0 : index
    %c0_65 = arith.constant 0 : index
    %c0_66 = arith.constant 0 : index
    %c0_67 = arith.constant 0 : index
    %106 = vector.load %arg5[%c0_64, %c0_65, %c0_66, %c0_67] : memref<1x8x4x64xf32, #tpu.memory_space<vmem>>, vector<1x1x4x64xf32>
    %107 = vector.shape_cast %106 : vector<1x1x4x64xf32> to vector<4x64xf32>
    %108 = vector.shape_cast %102 : vector<4x64xf32> to vector<1x1x4x64xf32>
    tpu.vector_store %arg5[%c0_64, %c0_65, %c0_66, %c0_67], %108 {strides = array<i32>} : memref<1x8x4x64xf32, #tpu.memory_space<vmem>>, vector<1x1x4x64xf32>,
    %c1_68 = arith.constant 1 : index
    %c4_69 = arith.constant 4 : index
    %109 = memref.load %arg2[%c1_68, %c4_69] : memref<4x5xf32, #tpu.memory_space<smem>>
    %110 = vector.broadcast %109 : f32 to vector<4x64xf32>
    %111 = arith.addf %89, %110 : vector<4x64xf32>
    %cst_70 = arith.constant 0.000000e+00 : f32
    %112 = vector.broadcast %cst_70 : f32 to vector<4x64xf32>
    %113 = arith.maximumf %111, %112 : vector<4x64xf32>
    %c1_71 = arith.constant 1 : index
    %c8_72 = arith.constant 8 : index
    %c128_73 = arith.constant 128 : index
    %114 = vector.load %arg6[%c1_71, %c8_72, %c128_73] : memref<4x13x201xf32, #tpu.memory_space<vmem>>, vector<1x4x64xf32>
    %115 = vector.shape_cast %114 : vector<1x4x64xf32> to vector<4x64xf32>
    %116 = vector.shape_cast %113 : vector<4x64xf32> to vector<1x4x64xf32>
    tpu.vector_store %arg6[%c1_71, %c8_72, %c128_73], %116 {strides = array<i32>} : memref<4x13x201xf32, #tpu.memory_space<vmem>>, vector<1x4x64xf32>,
    %c0_74 = arith.constant 0 : index
    %c1_75 = arith.constant 1 : index
    %c0_76 = arith.constant 0 : index
    %c0_77 = arith.constant 0 : index
    %117 = vector.load %arg5[%c0_74, %c1_75, %c0_76, %c0_77] : memref<1x8x4x64xf32, #tpu.memory_space<vmem>>, vector<1x1x4x64xf32>
    %118 = vector.shape_cast %117 : vector<1x1x4x64xf32> to vector<4x64xf32>
    %119 = vector.shape_cast %113 : vector<4x64xf32> to vector<1x1x4x64xf32>
    tpu.vector_store %arg5[%c0_74, %c1_75, %c0_76, %c0_77], %119 {strides = array<i32>} : memref<1x8x4x64xf32, #tpu.memory_space<vmem>>, vector<1x1x4x64xf32>,
    %c2_78 = arith.constant 2 : index
    %c4_79 = arith.constant 4 : index
    %120 = memref.load %arg2[%c2_78, %c4_79] : memref<4x5xf32, #tpu.memory_space<smem>>
    %121 = vector.broadcast %120 : f32 to vector<4x64xf32>
    %122 = arith.addf %93, %121 : vector<4x64xf32>
    %cst_80 = arith.constant 0.000000e+00 : f32
    %123 = vector.broadcast %cst_80 : f32 to vector<4x64xf32>
    %124 = arith.maximumf %122, %123 : vector<4x64xf32>
    %c2_81 = arith.constant 2 : index
    %c8_82 = arith.constant 8 : index
    %c128_83 = arith.constant 128 : index
    %125 = vector.load %arg6[%c2_81, %c8_82, %c128_83] : memref<4x13x201xf32, #tpu.memory_space<vmem>>, vector<1x4x64xf32>
    %126 = vector.shape_cast %125 : vector<1x4x64xf32> to vector<4x64xf32>
    %127 = vector.shape_cast %124 : vector<4x64xf32> to vector<1x4x64xf32>
    tpu.vector_store %arg6[%c2_81, %c8_82, %c128_83], %127 {strides = array<i32>} : memref<4x13x201xf32, #tpu.memory_space<vmem>>, vector<1x4x64xf32>,
    %c0_84 = arith.constant 0 : index
    %c2_85 = arith.constant 2 : index
    %c0_86 = arith.constant 0 : index
    %c0_87 = arith.constant 0 : index
    %128 = vector.load %arg5[%c0_84, %c2_85, %c0_86, %c0_87] : memref<1x8x4x64xf32, #tpu.memory_space<vmem>>, vector<1x1x4x64xf32>
    %129 = vector.shape_cast %128 : vector<1x1x4x64xf32> to vector<4x64xf32>
    %130 = vector.shape_cast %124 : vector<4x64xf32> to vector<1x1x4x64xf32>
    tpu.vector_store %arg5[%c0_84, %c2_85, %c0_86, %c0_87], %130 {strides = array<i32>} : memref<1x8x4x64xf32, #tpu.memory_space<vmem>>, vector<1x1x4x64xf32>,
    %c3_88 = arith.constant 3 : index
    %c4_89 = arith.constant 4 : index
    %131 = memref.load %arg2[%c3_88, %c4_89] : memref<4x5xf32, #tpu.memory_space<smem>>
    %132 = vector.broadcast %131 : f32 to vector<4x64xf32>
    %133 = arith.addf %97, %132 : vector<4x64xf32>
    %cst_90 = arith.constant 0.000000e+00 : f32
    %134 = vector.broadcast %cst_90 : f32 to vector<4x64xf32>
    %135 = arith.maximumf %133, %134 : vector<4x64xf32>
    %c3_91 = arith.constant 3 : index
    %c8_92 = arith.constant 8 : index
    %c128_93 = arith.constant 128 : index
    %136 = vector.load %arg6[%c3_91, %c8_92, %c128_93] : memref<4x13x201xf32, #tpu.memory_space<vmem>>, vector<1x4x64xf32>
    %137 = vector.shape_cast %136 : vector<1x4x64xf32> to vector<4x64xf32>
    %138 = vector.shape_cast %135 : vector<4x64xf32> to vector<1x4x64xf32>
    tpu.vector_store %arg6[%c3_91, %c8_92, %c128_93], %138 {strides = array<i32>} : memref<4x13x201xf32, #tpu.memory_space<vmem>>, vector<1x4x64xf32>,
    %c0_94 = arith.constant 0 : index
    %c3_95 = arith.constant 3 : index
    %c0_96 = arith.constant 0 : index
    %c0_97 = arith.constant 0 : index
    %139 = vector.load %arg5[%c0_94, %c3_95, %c0_96, %c0_97] : memref<1x8x4x64xf32, #tpu.memory_space<vmem>>, vector<1x1x4x64xf32>
    %140 = vector.shape_cast %139 : vector<1x1x4x64xf32> to vector<4x64xf32>
    %141 = vector.shape_cast %135 : vector<4x64xf32> to vector<1x1x4x64xf32>
    tpu.vector_store %arg5[%c0_94, %c3_95, %c0_96, %c0_97], %141 {strides = array<i32>} : memref<1x8x4x64xf32, #tpu.memory_space<vmem>>, vector<1x1x4x64xf32>,
    %cst_98 = arith.constant 0.000000e+00 : f32
    %142 = vector.broadcast %cst_98 : f32 to vector<1x201xf32>
    %c0_99 = arith.constant 0 : index
    %c7_100 = arith.constant 7 : index
    %c0_101 = arith.constant 0 : index
    %143 = vector.load %arg6[%c0_99, %c7_100, %c0_101] : memref<4x13x201xf32, #tpu.memory_space<vmem>>, vector<1x1x201xf32>
    %144 = vector.shape_cast %143 : vector<1x1x201xf32> to vector<1x201xf32>
    %145 = vector.shape_cast %142 : vector<1x201xf32> to vector<1x1x201xf32>
    tpu.vector_store %arg6[%c0_99, %c7_100, %c0_101], %145 {strides = array<i32>} : memref<4x13x201xf32, #tpu.memory_space<vmem>>, vector<1x1x201xf32>,
    %c1_102 = arith.constant 1 : index
    %c7_103 = arith.constant 7 : index
    %c0_104 = arith.constant 0 : index
    %146 = vector.load %arg6[%c1_102, %c7_103, %c0_104] : memref<4x13x201xf32, #tpu.memory_space<vmem>>, vector<1x1x201xf32>
    %147 = vector.shape_cast %146 : vector<1x1x201xf32> to vector<1x201xf32>
    %148 = vector.shape_cast %142 : vector<1x201xf32> to vector<1x1x201xf32>
    tpu.vector_store %arg6[%c1_102, %c7_103, %c0_104], %148 {strides = array<i32>} : memref<4x13x201xf32, #tpu.memory_space<vmem>>, vector<1x1x201xf32>,
    %c2_105 = arith.constant 2 : index
    %c7_106 = arith.constant 7 : index
    %c0_107 = arith.constant 0 : index
    %149 = vector.load %arg6[%c2_105, %c7_106, %c0_107] : memref<4x13x201xf32, #tpu.memory_space<vmem>>, vector<1x1x201xf32>
    %150 = vector.shape_cast %149 : vector<1x1x201xf32> to vector<1x201xf32>
    %151 = vector.shape_cast %142 : vector<1x201xf32> to vector<1x1x201xf32>
    tpu.vector_store %arg6[%c2_105, %c7_106, %c0_107], %151 {strides = array<i32>} : memref<4x13x201xf32, #tpu.memory_space<vmem>>, vector<1x1x201xf32>,
    %c3_108 = arith.constant 3 : index
    %c7_109 = arith.constant 7 : index
    %c0_110 = arith.constant 0 : index
    %152 = vector.load %arg6[%c3_108, %c7_109, %c0_110] : memref<4x13x201xf32, #tpu.memory_space<vmem>>, vector<1x1x201xf32>
    %153 = vector.shape_cast %152 : vector<1x1x201xf32> to vector<1x201xf32>
    %154 = vector.shape_cast %142 : vector<1x201xf32> to vector<1x1x201xf32>
    tpu.vector_store %arg6[%c3_108, %c7_109, %c0_110], %154 {strides = array<i32>} : memref<4x13x201xf32, #tpu.memory_space<vmem>>, vector<1x1x201xf32>,
    %cst_111 = arith.constant 0.000000e+00 : f32
    %155 = vector.broadcast %cst_111 : f32 to vector<1x201xf32>
    %c0_112 = arith.constant 0 : index
    %c12 = arith.constant 12 : index
    %c0_113 = arith.constant 0 : index
    %156 = vector.load %arg6[%c0_112, %c12, %c0_113] : memref<4x13x201xf32, #tpu.memory_space<vmem>>, vector<1x1x201xf32>
    %157 = vector.shape_cast %156 : vector<1x1x201xf32> to vector<1x201xf32>
    %158 = vector.shape_cast %155 : vector<1x201xf32> to vector<1x1x201xf32>
    tpu.vector_store %arg6[%c0_112, %c12, %c0_113], %158 {strides = array<i32>} : memref<4x13x201xf32, #tpu.memory_space<vmem>>, vector<1x1x201xf32>,
    %c1_114 = arith.constant 1 : index
    %c12_115 = arith.constant 12 : index
    %c0_116 = arith.constant 0 : index
    %159 = vector.load %arg6[%c1_114, %c12_115, %c0_116] : memref<4x13x201xf32, #tpu.memory_space<vmem>>, vector<1x1x201xf32>
    %160 = vector.shape_cast %159 : vector<1x1x201xf32> to vector<1x201xf32>
    %161 = vector.shape_cast %155 : vector<1x201xf32> to vector<1x1x201xf32>
    tpu.vector_store %arg6[%c1_114, %c12_115, %c0_116], %161 {strides = array<i32>} : memref<4x13x201xf32, #tpu.memory_space<vmem>>, vector<1x1x201xf32>,
    %c2_117 = arith.constant 2 : index
    %c12_118 = arith.constant 12 : index
    %c0_119 = arith.constant 0 : index
    %162 = vector.load %arg6[%c2_117, %c12_118, %c0_119] : memref<4x13x201xf32, #tpu.memory_space<vmem>>, vector<1x1x201xf32>
    %163 = vector.shape_cast %162 : vector<1x1x201xf32> to vector<1x201xf32>
    %164 = vector.shape_cast %155 : vector<1x201xf32> to vector<1x1x201xf32>
    tpu.vector_store %arg6[%c2_117, %c12_118, %c0_119], %164 {strides = array<i32>} : memref<4x13x201xf32, #tpu.memory_space<vmem>>, vector<1x1x201xf32>,
    %c3_120 = arith.constant 3 : index
    %c12_121 = arith.constant 12 : index
    %c0_122 = arith.constant 0 : index
    %165 = vector.load %arg6[%c3_120, %c12_121, %c0_122] : memref<4x13x201xf32, #tpu.memory_space<vmem>>, vector<1x1x201xf32>
    %166 = vector.shape_cast %165 : vector<1x1x201xf32> to vector<1x201xf32>
    %167 = vector.shape_cast %155 : vector<1x201xf32> to vector<1x1x201xf32>
    tpu.vector_store %arg6[%c3_120, %c12_121, %c0_122], %167 {strides = array<i32>} : memref<4x13x201xf32, #tpu.memory_space<vmem>>, vector<1x1x201xf32>,
    %168 = tpu.iota {dimensions = array<i32: 1>} : vector<1x64xi32>
    %c8_i32 = arith.constant 8 : i32
    %c0_i32 = arith.constant 0 : i32
    %169 = arith.cmpi eq, %c8_i32, %c0_i32 : i32
    %c1_i32 = arith.constant 1 : i32
    %170 = arith.select %169, %c1_i32, %c8_i32 : i32
    %171 = vector.broadcast %170 : i32 to vector<1x64xi32>
    %172 = arith.remsi %168, %171 : vector<1x64xi32>
    %c0_i32_123 = arith.constant 0 : i32
    %173 = vector.broadcast %c0_i32_123 : i32 to vector<1x64xi32>
    %174 = arith.cmpi ne, %172, %173 : vector<1x64xi32>
    %c0_i32_124 = arith.constant 0 : i32
    %175 = vector.broadcast %c0_i32_124 : i32 to vector<1x64xi32>
    %176 = arith.cmpi slt, %172, %175 : vector<1x64xi32>
    %c0_i32_125 = arith.constant 0 : i32
    %177 = arith.cmpi slt, %170, %c0_i32_125 : i32
    %178 = vector.broadcast %177 : i1 to vector<1x64xi1>
    %179 = vector.broadcast %178 : vector<1x64xi1> to vector<1x64xi1>
    %180 = arith.xori %176, %179 : vector<1x64xi1>
    %181 = arith.andi %180, %174 : vector<1x64xi1>
    %182 = vector.broadcast %170 : i32 to vector<1x64xi32>
    %183 = arith.addi %172, %182 : vector<1x64xi32>
    %184 = arith.select %181, %183, %172 : vector<1x64xi1>, vector<1x64xi32>
    %c1_i32_126 = arith.constant 1 : i32
    %185 = vector.broadcast %c1_i32_126 : i32 to vector<1x64xi32>
    %186 = arith.cmpi sge, %184, %185 : vector<1x64xi32>
    %c6_i32 = arith.constant 6 : i32
    %187 = vector.broadcast %c6_i32 : i32 to vector<1x64xi32>
    %188 = arith.cmpi sle, %184, %187 : vector<1x64xi32>
    %c0_127 = arith.constant 0 : index
    %c7_128 = arith.constant 7 : index
    %c119_129 = arith.constant 119 : index
    %189 = vector.load %arg6[%c0_127, %c7_128, %c119_129] : memref<4x13x201xf32, #tpu.memory_space<vmem>>, vector<1x6x64xf32>
    %190 = vector.shape_cast %189 : vector<1x6x64xf32> to vector<6x64xf32>
    %cst_130 = arith.constant 0.000000e+00 : f32
    %191 = vector.shape_cast %186 : vector<1x64xi1> to vector<1x64xi1>
    %192 = vector.broadcast %191 : vector<1x64xi1> to vector<6x64xi1>
    %193 = vector.broadcast %cst_130 : f32 to vector<6x64xf32>
    %194 = arith.select %192, %190, %193 : vector<6x64xi1>, vector<6x64xf32>
    %c0_131 = arith.constant 0 : index
    %c0_132 = arith.constant 0 : index
    %195 = memref.load %arg3[%c0_131, %c0_132] : memref<4x28xf32, #tpu.memory_space<smem>>
    %196 = vector.extract_strided_slice %194 {offsets = [0, 0], sizes = [4, 64], strides = [1, 1]} : vector<6x64xf32> to vector<4x64xf32>
    %197 = vector.broadcast %195 : f32 to vector<4x64xf32>
    %198 = arith.mulf %196, %197 : vector<4x64xf32>
    %c0_133 = arith.constant 0 : index
    %c9 = arith.constant 9 : index
    %199 = memref.load %arg3[%c0_133, %c9] : memref<4x28xf32, #tpu.memory_space<smem>>
    %200 = vector.extract_strided_slice %194 {offsets = [1, 0], sizes = [4, 64], strides = [1, 1]} : vector<6x64xf32> to vector<4x64xf32>
    %201 = vector.broadcast %199 : f32 to vector<4x64xf32>
    %202 = arith.mulf %200, %201 : vector<4x64xf32>
    %203 = arith.addf %198, %202 : vector<4x64xf32>
    %c0_134 = arith.constant 0 : index
    %c18 = arith.constant 18 : index
    %204 = memref.load %arg3[%c0_134, %c18] : memref<4x28xf32, #tpu.memory_space<smem>>
    %205 = vector.extract_strided_slice %194 {offsets = [2, 0], sizes = [4, 64], strides = [1, 1]} : vector<6x64xf32> to vector<4x64xf32>
    %206 = vector.broadcast %204 : f32 to vector<4x64xf32>
    %207 = arith.mulf %205, %206 : vector<4x64xf32>
    %208 = arith.addf %203, %207 : vector<4x64xf32>
    %c0_135 = arith.constant 0 : index
    %c7_136 = arith.constant 7 : index
    %c120 = arith.constant 120 : index
    %209 = vector.load %arg6[%c0_135, %c7_136, %c120] : memref<4x13x201xf32, #tpu.memory_space<vmem>>, vector<1x6x64xf32>
    %210 = vector.shape_cast %209 : vector<1x6x64xf32> to vector<6x64xf32>
    %c0_137 = arith.constant 0 : index
    %c1_138 = arith.constant 1 : index
    %211 = memref.load %arg3[%c0_137, %c1_138] : memref<4x28xf32, #tpu.memory_space<smem>>
    %212 = vector.extract_strided_slice %210 {offsets = [0, 0], sizes = [4, 64], strides = [1, 1]} : vector<6x64xf32> to vector<4x64xf32>
    %213 = vector.broadcast %211 : f32 to vector<4x64xf32>
    %214 = arith.mulf %212, %213 : vector<4x64xf32>
    %215 = arith.addf %208, %214 : vector<4x64xf32>
    %c0_139 = arith.constant 0 : index
    %c10 = arith.constant 10 : index
    %216 = memref.load %arg3[%c0_139, %c10] : memref<4x28xf32, #tpu.memory_space<smem>>
    %217 = vector.extract_strided_slice %210 {offsets = [1, 0], sizes = [4, 64], strides = [1, 1]} : vector<6x64xf32> to vector<4x64xf32>
    %218 = vector.broadcast %216 : f32 to vector<4x64xf32>
    %219 = arith.mulf %217, %218 : vector<4x64xf32>
    %220 = arith.addf %215, %219 : vector<4x64xf32>
    %c0_140 = arith.constant 0 : index
    %c19 = arith.constant 19 : index
    %221 = memref.load %arg3[%c0_140, %c19] : memref<4x28xf32, #tpu.memory_space<smem>>
    %222 = vector.extract_strided_slice %210 {offsets = [2, 0], sizes = [4, 64], strides = [1, 1]} : vector<6x64xf32> to vector<4x64xf32>
    %223 = vector.broadcast %221 : f32 to vector<4x64xf32>
    %224 = arith.mulf %222, %223 : vector<4x64xf32>
    %225 = arith.addf %220, %224 : vector<4x64xf32>
    %c0_141 = arith.constant 0 : index
    %c7_142 = arith.constant 7 : index
    %c121 = arith.constant 121 : index
    %226 = vector.load %arg6[%c0_141, %c7_142, %c121] : memref<4x13x201xf32, #tpu.memory_space<vmem>>, vector<1x6x64xf32>
    %227 = vector.shape_cast %226 : vector<1x6x64xf32> to vector<6x64xf32>
    %cst_143 = arith.constant 0.000000e+00 : f32
    %228 = vector.shape_cast %188 : vector<1x64xi1> to vector<1x64xi1>
    %229 = vector.broadcast %228 : vector<1x64xi1> to vector<6x64xi1>
    %230 = vector.broadcast %cst_143 : f32 to vector<6x64xf32>
    %231 = arith.select %229, %227, %230 : vector<6x64xi1>, vector<6x64xf32>
    %c0_144 = arith.constant 0 : index
    %c2_145 = arith.constant 2 : index
    %232 = memref.load %arg3[%c0_144, %c2_145] : memref<4x28xf32, #tpu.memory_space<smem>>
    %233 = vector.extract_strided_slice %231 {offsets = [0, 0], sizes = [4, 64], strides = [1, 1]} : vector<6x64xf32> to vector<4x64xf32>
    %234 = vector.broadcast %232 : f32 to vector<4x64xf32>
    %235 = arith.mulf %233, %234 : vector<4x64xf32>
    %236 = arith.addf %225, %235 : vector<4x64xf32>
    %c0_146 = arith.constant 0 : index
    %c11 = arith.constant 11 : index
    %237 = memref.load %arg3[%c0_146, %c11] : memref<4x28xf32, #tpu.memory_space<smem>>
    %238 = vector.extract_strided_slice %231 {offsets = [1, 0], sizes = [4, 64], strides = [1, 1]} : vector<6x64xf32> to vector<4x64xf32>
    %239 = vector.broadcast %237 : f32 to vector<4x64xf32>
    %240 = arith.mulf %238, %239 : vector<4x64xf32>
    %241 = arith.addf %236, %240 : vector<4x64xf32>
    %c0_147 = arith.constant 0 : index
    %c20 = arith.constant 20 : index
    %242 = memref.load %arg3[%c0_147, %c20] : memref<4x28xf32, #tpu.memory_space<smem>>
    %243 = vector.extract_strided_slice %231 {offsets = [2, 0], sizes = [4, 64], strides = [1, 1]} : vector<6x64xf32> to vector<4x64xf32>
    %244 = vector.broadcast %242 : f32 to vector<4x64xf32>
    %245 = arith.mulf %243, %244 : vector<4x64xf32>
    %246 = arith.addf %241, %245 : vector<4x64xf32>
    %c0_148 = arith.constant 0 : index
    %c7_149 = arith.constant 7 : index
    %c127 = arith.constant 127 : index
    %247 = vector.load %arg6[%c0_148, %c7_149, %c127] : memref<4x13x201xf32, #tpu.memory_space<vmem>>, vector<1x6x64xf32>
    %248 = vector.shape_cast %247 : vector<1x6x64xf32> to vector<6x64xf32>
    %cst_150 = arith.constant 0.000000e+00 : f32
    %249 = vector.shape_cast %186 : vector<1x64xi1> to vector<1x64xi1>
    %250 = vector.broadcast %249 : vector<1x64xi1> to vector<6x64xi1>
    %251 = vector.broadcast %cst_150 : f32 to vector<6x64xf32>
    %252 = arith.select %250, %248, %251 : vector<6x64xi1>, vector<6x64xf32>
    %c0_151 = arith.constant 0 : index
    %c3_152 = arith.constant 3 : index
    %253 = memref.load %arg3[%c0_151, %c3_152] : memref<4x28xf32, #tpu.memory_space<smem>>
    %254 = vector.extract_strided_slice %252 {offsets = [0, 0], sizes = [4, 64], strides = [1, 1]} : vector<6x64xf32> to vector<4x64xf32>
    %255 = vector.broadcast %253 : f32 to vector<4x64xf32>
    %256 = arith.mulf %254, %255 : vector<4x64xf32>
    %257 = arith.addf %246, %256 : vector<4x64xf32>
    %c0_153 = arith.constant 0 : index
    %c12_154 = arith.constant 12 : index
    %258 = memref.load %arg3[%c0_153, %c12_154] : memref<4x28xf32, #tpu.memory_space<smem>>
    %259 = vector.extract_strided_slice %252 {offsets = [1, 0], sizes = [4, 64], strides = [1, 1]} : vector<6x64xf32> to vector<4x64xf32>
    %260 = vector.broadcast %258 : f32 to vector<4x64xf32>
    %261 = arith.mulf %259, %260 : vector<4x64xf32>
    %262 = arith.addf %257, %261 : vector<4x64xf32>
    %c0_155 = arith.constant 0 : index
    %c21 = arith.constant 21 : index
    %263 = memref.load %arg3[%c0_155, %c21] : memref<4x28xf32, #tpu.memory_space<smem>>
    %264 = vector.extract_strided_slice %252 {offsets = [2, 0], sizes = [4, 64], strides = [1, 1]} : vector<6x64xf32> to vector<4x64xf32>
    %265 = vector.broadcast %263 : f32 to vector<4x64xf32>
    %266 = arith.mulf %264, %265 : vector<4x64xf32>
    %267 = arith.addf %262, %266 : vector<4x64xf32>
    %c0_156 = arith.constant 0 : index
    %c7_157 = arith.constant 7 : index
    %c128_158 = arith.constant 128 : index
    %268 = vector.load %arg6[%c0_156, %c7_157, %c128_158] : memref<4x13x201xf32, #tpu.memory_space<vmem>>, vector<1x6x64xf32>
    %269 = vector.shape_cast %268 : vector<1x6x64xf32> to vector<6x64xf32>
    %c0_159 = arith.constant 0 : index
    %c4_160 = arith.constant 4 : index
    %270 = memref.load %arg3[%c0_159, %c4_160] : memref<4x28xf32, #tpu.memory_space<smem>>
    %271 = vector.extract_strided_slice %269 {offsets = [0, 0], sizes = [4, 64], strides = [1, 1]} : vector<6x64xf32> to vector<4x64xf32>
    %272 = vector.broadcast %270 : f32 to vector<4x64xf32>
    %273 = arith.mulf %271, %272 : vector<4x64xf32>
    %274 = arith.addf %267, %273 : vector<4x64xf32>
    %c0_161 = arith.constant 0 : index
    %c13 = arith.constant 13 : index
    %275 = memref.load %arg3[%c0_161, %c13] : memref<4x28xf32, #tpu.memory_space<smem>>
    %276 = vector.extract_strided_slice %269 {offsets = [1, 0], sizes = [4, 64], strides = [1, 1]} : vector<6x64xf32> to vector<4x64xf32>
    %277 = vector.broadcast %275 : f32 to vector<4x64xf32>
    %278 = arith.mulf %276, %277 : vector<4x64xf32>
    %279 = arith.addf %274, %278 : vector<4x64xf32>
    %c0_162 = arith.constant 0 : index
    %c22 = arith.constant 22 : index
    %280 = memref.load %arg3[%c0_162, %c22] : memref<4x28xf32, #tpu.memory_space<smem>>
    %281 = vector.extract_strided_slice %269 {offsets = [2, 0], sizes = [4, 64], strides = [1, 1]} : vector<6x64xf32> to vector<4x64xf32>
    %282 = vector.broadcast %280 : f32 to vector<4x64xf32>
    %283 = arith.mulf %281, %282 : vector<4x64xf32>
    %284 = arith.addf %279, %283 : vector<4x64xf32>
    %c0_163 = arith.constant 0 : index
    %c7_164 = arith.constant 7 : index
    %c129 = arith.constant 129 : index
    %285 = vector.load %arg6[%c0_163, %c7_164, %c129] : memref<4x13x201xf32, #tpu.memory_space<vmem>>, vector<1x6x64xf32>
    %286 = vector.shape_cast %285 : vector<1x6x64xf32> to vector<6x64xf32>
    %cst_165 = arith.constant 0.000000e+00 : f32
    %287 = vector.shape_cast %188 : vector<1x64xi1> to vector<1x64xi1>
    %288 = vector.broadcast %287 : vector<1x64xi1> to vector<6x64xi1>
    %289 = vector.broadcast %cst_165 : f32 to vector<6x64xf32>
    %290 = arith.select %288, %286, %289 : vector<6x64xi1>, vector<6x64xf32>
    %c0_166 = arith.constant 0 : index
    %c5 = arith.constant 5 : index
    %291 = memref.load %arg3[%c0_166, %c5] : memref<4x28xf32, #tpu.memory_space<smem>>
    %292 = vector.extract_strided_slice %290 {offsets = [0, 0], sizes = [4, 64], strides = [1, 1]} : vector<6x64xf32> to vector<4x64xf32>
    %293 = vector.broadcast %291 : f32 to vector<4x64xf32>
    %294 = arith.mulf %292, %293 : vector<4x64xf32>
    %295 = arith.addf %284, %294 : vector<4x64xf32>
    %c0_167 = arith.constant 0 : index
    %c14 = arith.constant 14 : index
    %296 = memref.load %arg3[%c0_167, %c14] : memref<4x28xf32, #tpu.memory_space<smem>>
    %297 = vector.extract_strided_slice %290 {offsets = [1, 0], sizes = [4, 64], strides = [1, 1]} : vector<6x64xf32> to vector<4x64xf32>
    %298 = vector.broadcast %296 : f32 to vector<4x64xf32>
    %299 = arith.mulf %297, %298 : vector<4x64xf32>
    %300 = arith.addf %295, %299 : vector<4x64xf32>
    %c0_168 = arith.constant 0 : index
    %c23 = arith.constant 23 : index
    %301 = memref.load %arg3[%c0_168, %c23] : memref<4x28xf32, #tpu.memory_space<smem>>
    %302 = vector.extract_strided_slice %290 {offsets = [2, 0], sizes = [4, 64], strides = [1, 1]} : vector<6x64xf32> to vector<4x64xf32>
    %303 = vector.broadcast %301 : f32 to vector<4x64xf32>
    %304 = arith.mulf %302, %303 : vector<4x64xf32>
    %305 = arith.addf %300, %304 : vector<4x64xf32>
    %c0_169 = arith.constant 0 : index
    %c7_170 = arith.constant 7 : index
    %c135 = arith.constant 135 : index
    %306 = vector.load %arg6[%c0_169, %c7_170, %c135] : memref<4x13x201xf32, #tpu.memory_space<vmem>>, vector<1x6x64xf32>
    %307 = vector.shape_cast %306 : vector<1x6x64xf32> to vector<6x64xf32>
    %cst_171 = arith.constant 0.000000e+00 : f32
    %308 = vector.shape_cast %186 : vector<1x64xi1> to vector<1x64xi1>
    %309 = vector.broadcast %308 : vector<1x64xi1> to vector<6x64xi1>
    %310 = vector.broadcast %cst_171 : f32 to vector<6x64xf32>
    %311 = arith.select %309, %307, %310 : vector<6x64xi1>, vector<6x64xf32>
    %c0_172 = arith.constant 0 : index
    %c6 = arith.constant 6 : index
    %312 = memref.load %arg3[%c0_172, %c6] : memref<4x28xf32, #tpu.memory_space<smem>>
    %313 = vector.extract_strided_slice %311 {offsets = [0, 0], sizes = [4, 64], strides = [1, 1]} : vector<6x64xf32> to vector<4x64xf32>
    %314 = vector.broadcast %312 : f32 to vector<4x64xf32>
    %315 = arith.mulf %313, %314 : vector<4x64xf32>
    %316 = arith.addf %305, %315 : vector<4x64xf32>
    %c0_173 = arith.constant 0 : index
    %c15 = arith.constant 15 : index
    %317 = memref.load %arg3[%c0_173, %c15] : memref<4x28xf32, #tpu.memory_space<smem>>
    %318 = vector.extract_strided_slice %311 {offsets = [1, 0], sizes = [4, 64], strides = [1, 1]} : vector<6x64xf32> to vector<4x64xf32>
    %319 = vector.broadcast %317 : f32 to vector<4x64xf32>
    %320 = arith.mulf %318, %319 : vector<4x64xf32>
    %321 = arith.addf %316, %320 : vector<4x64xf32>
    %c0_174 = arith.constant 0 : index
    %c24 = arith.constant 24 : index
    %322 = memref.load %arg3[%c0_174, %c24] : memref<4x28xf32, #tpu.memory_space<smem>>
    %323 = vector.extract_strided_slice %311 {offsets = [2, 0], sizes = [4, 64], strides = [1, 1]} : vector<6x64xf32> to vector<4x64xf32>
    %324 = vector.broadcast %322 : f32 to vector<4x64xf32>
    %325 = arith.mulf %323, %324 : vector<4x64xf32>
    %326 = arith.addf %321, %325 : vector<4x64xf32>
    %c0_175 = arith.constant 0 : index
    %c7_176 = arith.constant 7 : index
    %c136 = arith.constant 136 : index
    %327 = vector.load %arg6[%c0_175, %c7_176, %c136] : memref<4x13x201xf32, #tpu.memory_space<vmem>>, vector<1x6x64xf32>
    %328 = vector.shape_cast %327 : vector<1x6x64xf32> to vector<6x64xf32>
    %c0_177 = arith.constant 0 : index
    %c7_178 = arith.constant 7 : index
    %329 = memref.load %arg3[%c0_177, %c7_178] : memref<4x28xf32, #tpu.memory_space<smem>>
    %330 = vector.extract_strided_slice %328 {offsets = [0, 0], sizes = [4, 64], strides = [1, 1]} : vector<6x64xf32> to vector<4x64xf32>
    %331 = vector.broadcast %329 : f32 to vector<4x64xf32>
    %332 = arith.mulf %330, %331 : vector<4x64xf32>
    %333 = arith.addf %326, %332 : vector<4x64xf32>
    %c0_179 = arith.constant 0 : index
    %c16 = arith.constant 16 : index
    %334 = memref.load %arg3[%c0_179, %c16] : memref<4x28xf32, #tpu.memory_space<smem>>
    %335 = vector.extract_strided_slice %328 {offsets = [1, 0], sizes = [4, 64], strides = [1, 1]} : vector<6x64xf32> to vector<4x64xf32>
    %336 = vector.broadcast %334 : f32 to vector<4x64xf32>
    %337 = arith.mulf %335, %336 : vector<4x64xf32>
    %338 = arith.addf %333, %337 : vector<4x64xf32>
    %c0_180 = arith.constant 0 : index
    %c25 = arith.constant 25 : index
    %339 = memref.load %arg3[%c0_180, %c25] : memref<4x28xf32, #tpu.memory_space<smem>>
    %340 = vector.extract_strided_slice %328 {offsets = [2, 0], sizes = [4, 64], strides = [1, 1]} : vector<6x64xf32> to vector<4x64xf32>
    %341 = vector.broadcast %339 : f32 to vector<4x64xf32>
    %342 = arith.mulf %340, %341 : vector<4x64xf32>
    %343 = arith.addf %338, %342 : vector<4x64xf32>
    %c0_181 = arith.constant 0 : index
    %c7_182 = arith.constant 7 : index
    %c137 = arith.constant 137 : index
    %344 = vector.load %arg6[%c0_181, %c7_182, %c137] : memref<4x13x201xf32, #tpu.memory_space<vmem>>, vector<1x6x64xf32>
    %345 = vector.shape_cast %344 : vector<1x6x64xf32> to vector<6x64xf32>
    %cst_183 = arith.constant 0.000000e+00 : f32
    %346 = vector.shape_cast %188 : vector<1x64xi1> to vector<1x64xi1>
    %347 = vector.broadcast %346 : vector<1x64xi1> to vector<6x64xi1>
    %348 = vector.broadcast %cst_183 : f32 to vector<6x64xf32>
    %349 = arith.select %347, %345, %348 : vector<6x64xi1>, vector<6x64xf32>
    %c0_184 = arith.constant 0 : index
    %c8_185 = arith.constant 8 : index
    %350 = memref.load %arg3[%c0_184, %c8_185] : memref<4x28xf32, #tpu.memory_space<smem>>
    %351 = vector.extract_strided_slice %349 {offsets = [0, 0], sizes = [4, 64], strides = [1, 1]} : vector<6x64xf32> to vector<4x64xf32>
    %352 = vector.broadcast %350 : f32 to vector<4x64xf32>
    %353 = arith.mulf %351, %352 : vector<4x64xf32>
    %354 = arith.addf %343, %353 : vector<4x64xf32>
    %c0_186 = arith.constant 0 : index
    %c17 = arith.constant 17 : index
    %355 = memref.load %arg3[%c0_186, %c17] : memref<4x28xf32, #tpu.memory_space<smem>>
    %356 = vector.extract_strided_slice %349 {offsets = [1, 0], sizes = [4, 64], strides = [1, 1]} : vector<6x64xf32> to vector<4x64xf32>
    %357 = vector.broadcast %355 : f32 to vector<4x64xf32>
    %358 = arith.mulf %356, %357 : vector<4x64xf32>
    %359 = arith.addf %354, %358 : vector<4x64xf32>
    %c0_187 = arith.constant 0 : index
    %c26 = arith.constant 26 : index
    %360 = memref.load %arg3[%c0_187, %c26] : memref<4x28xf32, #tpu.memory_space<smem>>
    %361 = vector.extract_strided_slice %349 {offsets = [2, 0], sizes = [4, 64], strides = [1, 1]} : vector<6x64xf32> to vector<4x64xf32>
    %362 = vector.broadcast %360 : f32 to vector<4x64xf32>
    %363 = arith.mulf %361, %362 : vector<4x64xf32>
    %364 = arith.addf %359, %363 : vector<4x64xf32>
    %c0_188 = arith.constant 0 : index
    %c27 = arith.constant 27 : index
    %365 = memref.load %arg3[%c0_188, %c27] : memref<4x28xf32, #tpu.memory_space<smem>>
    %366 = vector.broadcast %365 : f32 to vector<4x64xf32>
    %367 = arith.addf %364, %366 : vector<4x64xf32>
    %cst_189 = arith.constant 0.000000e+00 : f32
    %368 = vector.broadcast %cst_189 : f32 to vector<4x64xf32>
    %369 = arith.maximumf %367, %368 : vector<4x64xf32>
    %c0_190 = arith.constant 0 : index
    %c4_191 = arith.constant 4 : index
    %c0_192 = arith.constant 0 : index
    %c0_193 = arith.constant 0 : index
    %370 = vector.load %arg5[%c0_190, %c4_191, %c0_192, %c0_193] : memref<1x8x4x64xf32, #tpu.memory_space<vmem>>, vector<1x1x4x64xf32>
    %371 = vector.shape_cast %370 : vector<1x1x4x64xf32> to vector<4x64xf32>
    %372 = vector.shape_cast %369 : vector<4x64xf32> to vector<1x1x4x64xf32>
    tpu.vector_store %arg5[%c0_190, %c4_191, %c0_192, %c0_193], %372 {strides = array<i32>} : memref<1x8x4x64xf32, #tpu.memory_space<vmem>>, vector<1x1x4x64xf32>,
    %c1_194 = arith.constant 1 : index
    %c7_195 = arith.constant 7 : index
    %c119_196 = arith.constant 119 : index
    %373 = vector.load %arg6[%c1_194, %c7_195, %c119_196] : memref<4x13x201xf32, #tpu.memory_space<vmem>>, vector<1x6x64xf32>
    %374 = vector.shape_cast %373 : vector<1x6x64xf32> to vector<6x64xf32>
    %cst_197 = arith.constant 0.000000e+00 : f32
    %375 = vector.shape_cast %186 : vector<1x64xi1> to vector<1x64xi1>
    %376 = vector.broadcast %375 : vector<1x64xi1> to vector<6x64xi1>
    %377 = vector.broadcast %cst_197 : f32 to vector<6x64xf32>
    %378 = arith.select %376, %374, %377 : vector<6x64xi1>, vector<6x64xf32>
    %c1_198 = arith.constant 1 : index
    %c0_199 = arith.constant 0 : index
    %379 = memref.load %arg3[%c1_198, %c0_199] : memref<4x28xf32, #tpu.memory_space<smem>>
    %380 = vector.extract_strided_slice %378 {offsets = [0, 0], sizes = [4, 64], strides = [1, 1]} : vector<6x64xf32> to vector<4x64xf32>
    %381 = vector.broadcast %379 : f32 to vector<4x64xf32>
    %382 = arith.mulf %380, %381 : vector<4x64xf32>
    %c1_200 = arith.constant 1 : index
    %c9_201 = arith.constant 9 : index
    %383 = memref.load %arg3[%c1_200, %c9_201] : memref<4x28xf32, #tpu.memory_space<smem>>
    %384 = vector.extract_strided_slice %378 {offsets = [1, 0], sizes = [4, 64], strides = [1, 1]} : vector<6x64xf32> to vector<4x64xf32>
    %385 = vector.broadcast %383 : f32 to vector<4x64xf32>
    %386 = arith.mulf %384, %385 : vector<4x64xf32>
    %387 = arith.addf %382, %386 : vector<4x64xf32>
    %c1_202 = arith.constant 1 : index
    %c18_203 = arith.constant 18 : index
    %388 = memref.load %arg3[%c1_202, %c18_203] : memref<4x28xf32, #tpu.memory_space<smem>>
    %389 = vector.extract_strided_slice %378 {offsets = [2, 0], sizes = [4, 64], strides = [1, 1]} : vector<6x64xf32> to vector<4x64xf32>
    %390 = vector.broadcast %388 : f32 to vector<4x64xf32>
    %391 = arith.mulf %389, %390 : vector<4x64xf32>
    %392 = arith.addf %387, %391 : vector<4x64xf32>
    %c1_204 = arith.constant 1 : index
    %c7_205 = arith.constant 7 : index
    %c120_206 = arith.constant 120 : index
    %393 = vector.load %arg6[%c1_204, %c7_205, %c120_206] : memref<4x13x201xf32, #tpu.memory_space<vmem>>, vector<1x6x64xf32>
    %394 = vector.shape_cast %393 : vector<1x6x64xf32> to vector<6x64xf32>
    %c1_207 = arith.constant 1 : index
    %c1_208 = arith.constant 1 : index
    %395 = memref.load %arg3[%c1_207, %c1_208] : memref<4x28xf32, #tpu.memory_space<smem>>
    %396 = vector.extract_strided_slice %394 {offsets = [0, 0], sizes = [4, 64], strides = [1, 1]} : vector<6x64xf32> to vector<4x64xf32>
    %397 = vector.broadcast %395 : f32 to vector<4x64xf32>
    %398 = arith.mulf %396, %397 : vector<4x64xf32>
    %399 = arith.addf %392, %398 : vector<4x64xf32>
    %c1_209 = arith.constant 1 : index
    %c10_210 = arith.constant 10 : index
    %400 = memref.load %arg3[%c1_209, %c10_210] : memref<4x28xf32, #tpu.memory_space<smem>>
    %401 = vector.extract_strided_slice %394 {offsets = [1, 0], sizes = [4, 64], strides = [1, 1]} : vector<6x64xf32> to vector<4x64xf32>
    %402 = vector.broadcast %400 : f32 to vector<4x64xf32>
    %403 = arith.mulf %401, %402 : vector<4x64xf32>
    %404 = arith.addf %399, %403 : vector<4x64xf32>
    %c1_211 = arith.constant 1 : index
    %c19_212 = arith.constant 19 : index
    %405 = memref.load %arg3[%c1_211, %c19_212] : memref<4x28xf32, #tpu.memory_space<smem>>
    %406 = vector.extract_strided_slice %394 {offsets = [2, 0], sizes = [4, 64], strides = [1, 1]} : vector<6x64xf32> to vector<4x64xf32>
    %407 = vector.broadcast %405 : f32 to vector<4x64xf32>
    %408 = arith.mulf %406, %407 : vector<4x64xf32>
    %409 = arith.addf %404, %408 : vector<4x64xf32>
    %c1_213 = arith.constant 1 : index
    %c7_214 = arith.constant 7 : index
    %c121_215 = arith.constant 121 : index
    %410 = vector.load %arg6[%c1_213, %c7_214, %c121_215] : memref<4x13x201xf32, #tpu.memory_space<vmem>>, vector<1x6x64xf32>
    %411 = vector.shape_cast %410 : vector<1x6x64xf32> to vector<6x64xf32>
    %cst_216 = arith.constant 0.000000e+00 : f32
    %412 = vector.shape_cast %188 : vector<1x64xi1> to vector<1x64xi1>
    %413 = vector.broadcast %412 : vector<1x64xi1> to vector<6x64xi1>
    %414 = vector.broadcast %cst_216 : f32 to vector<6x64xf32>
    %415 = arith.select %413, %411, %414 : vector<6x64xi1>, vector<6x64xf32>
    %c1_217 = arith.constant 1 : index
    %c2_218 = arith.constant 2 : index
    %416 = memref.load %arg3[%c1_217, %c2_218] : memref<4x28xf32, #tpu.memory_space<smem>>
    %417 = vector.extract_strided_slice %415 {offsets = [0, 0], sizes = [4, 64], strides = [1, 1]} : vector<6x64xf32> to vector<4x64xf32>
    %418 = vector.broadcast %416 : f32 to vector<4x64xf32>
    %419 = arith.mulf %417, %418 : vector<4x64xf32>
    %420 = arith.addf %409, %419 : vector<4x64xf32>
    %c1_219 = arith.constant 1 : index
    %c11_220 = arith.constant 11 : index
    %421 = memref.load %arg3[%c1_219, %c11_220] : memref<4x28xf32, #tpu.memory_space<smem>>
    %422 = vector.extract_strided_slice %415 {offsets = [1, 0], sizes = [4, 64], strides = [1, 1]} : vector<6x64xf32> to vector<4x64xf32>
    %423 = vector.broadcast %421 : f32 to vector<4x64xf32>
    %424 = arith.mulf %422, %423 : vector<4x64xf32>
    %425 = arith.addf %420, %424 : vector<4x64xf32>
    %c1_221 = arith.constant 1 : index
    %c20_222 = arith.constant 20 : index
    %426 = memref.load %arg3[%c1_221, %c20_222] : memref<4x28xf32, #tpu.memory_space<smem>>
    %427 = vector.extract_strided_slice %415 {offsets = [2, 0], sizes = [4, 64], strides = [1, 1]} : vector<6x64xf32> to vector<4x64xf32>
    %428 = vector.broadcast %426 : f32 to vector<4x64xf32>
    %429 = arith.mulf %427, %428 : vector<4x64xf32>
    %430 = arith.addf %425, %429 : vector<4x64xf32>
    %c1_223 = arith.constant 1 : index
    %c7_224 = arith.constant 7 : index
    %c127_225 = arith.constant 127 : index
    %431 = vector.load %arg6[%c1_223, %c7_224, %c127_225] : memref<4x13x201xf32, #tpu.memory_space<vmem>>, vector<1x6x64xf32>
    %432 = vector.shape_cast %431 : vector<1x6x64xf32> to vector<6x64xf32>
    %cst_226 = arith.constant 0.000000e+00 : f32
    %433 = vector.shape_cast %186 : vector<1x64xi1> to vector<1x64xi1>
    %434 = vector.broadcast %433 : vector<1x64xi1> to vector<6x64xi1>
    %435 = vector.broadcast %cst_226 : f32 to vector<6x64xf32>
    %436 = arith.select %434, %432, %435 : vector<6x64xi1>, vector<6x64xf32>
    %c1_227 = arith.constant 1 : index
    %c3_228 = arith.constant 3 : index
    %437 = memref.load %arg3[%c1_227, %c3_228] : memref<4x28xf32, #tpu.memory_space<smem>>
    %438 = vector.extract_strided_slice %436 {offsets = [0, 0], sizes = [4, 64], strides = [1, 1]} : vector<6x64xf32> to vector<4x64xf32>
    %439 = vector.broadcast %437 : f32 to vector<4x64xf32>
    %440 = arith.mulf %438, %439 : vector<4x64xf32>
    %441 = arith.addf %430, %440 : vector<4x64xf32>
    %c1_229 = arith.constant 1 : index
    %c12_230 = arith.constant 12 : index
    %442 = memref.load %arg3[%c1_229, %c12_230] : memref<4x28xf32, #tpu.memory_space<smem>>
    %443 = vector.extract_strided_slice %436 {offsets = [1, 0], sizes = [4, 64], strides = [1, 1]} : vector<6x64xf32> to vector<4x64xf32>
    %444 = vector.broadcast %442 : f32 to vector<4x64xf32>
    %445 = arith.mulf %443, %444 : vector<4x64xf32>
    %446 = arith.addf %441, %445 : vector<4x64xf32>
    %c1_231 = arith.constant 1 : index
    %c21_232 = arith.constant 21 : index
    %447 = memref.load %arg3[%c1_231, %c21_232] : memref<4x28xf32, #tpu.memory_space<smem>>
    %448 = vector.extract_strided_slice %436 {offsets = [2, 0], sizes = [4, 64], strides = [1, 1]} : vector<6x64xf32> to vector<4x64xf32>
    %449 = vector.broadcast %447 : f32 to vector<4x64xf32>
    %450 = arith.mulf %448, %449 : vector<4x64xf32>
    %451 = arith.addf %446, %450 : vector<4x64xf32>
    %c1_233 = arith.constant 1 : index
    %c7_234 = arith.constant 7 : index
    %c128_235 = arith.constant 128 : index
    %452 = vector.load %arg6[%c1_233, %c7_234, %c128_235] : memref<4x13x201xf32, #tpu.memory_space<vmem>>, vector<1x6x64xf32>
    %453 = vector.shape_cast %452 : vector<1x6x64xf32> to vector<6x64xf32>
    %c1_236 = arith.constant 1 : index
    %c4_237 = arith.constant 4 : index
    %454 = memref.load %arg3[%c1_236, %c4_237] : memref<4x28xf32, #tpu.memory_space<smem>>
    %455 = vector.extract_strided_slice %453 {offsets = [0, 0], sizes = [4, 64], strides = [1, 1]} : vector<6x64xf32> to vector<4x64xf32>
    %456 = vector.broadcast %454 : f32 to vector<4x64xf32>
    %457 = arith.mulf %455, %456 : vector<4x64xf32>
    %458 = arith.addf %451, %457 : vector<4x64xf32>
    %c1_238 = arith.constant 1 : index
    %c13_239 = arith.constant 13 : index
    %459 = memref.load %arg3[%c1_238, %c13_239] : memref<4x28xf32, #tpu.memory_space<smem>>
    %460 = vector.extract_strided_slice %453 {offsets = [1, 0], sizes = [4, 64], strides = [1, 1]} : vector<6x64xf32> to vector<4x64xf32>
    %461 = vector.broadcast %459 : f32 to vector<4x64xf32>
    %462 = arith.mulf %460, %461 : vector<4x64xf32>
    %463 = arith.addf %458, %462 : vector<4x64xf32>
    %c1_240 = arith.constant 1 : index
    %c22_241 = arith.constant 22 : index
    %464 = memref.load %arg3[%c1_240, %c22_241] : memref<4x28xf32, #tpu.memory_space<smem>>
    %465 = vector.extract_strided_slice %453 {offsets = [2, 0], sizes = [4, 64], strides = [1, 1]} : vector<6x64xf32> to vector<4x64xf32>
    %466 = vector.broadcast %464 : f32 to vector<4x64xf32>
    %467 = arith.mulf %465, %466 : vector<4x64xf32>
    %468 = arith.addf %463, %467 : vector<4x64xf32>
    %c1_242 = arith.constant 1 : index
    %c7_243 = arith.constant 7 : index
    %c129_244 = arith.constant 129 : index
    %469 = vector.load %arg6[%c1_242, %c7_243, %c129_244] : memref<4x13x201xf32, #tpu.memory_space<vmem>>, vector<1x6x64xf32>
    %470 = vector.shape_cast %469 : vector<1x6x64xf32> to vector<6x64xf32>
    %cst_245 = arith.constant 0.000000e+00 : f32
    %471 = vector.shape_cast %188 : vector<1x64xi1> to vector<1x64xi1>
    %472 = vector.broadcast %471 : vector<1x64xi1> to vector<6x64xi1>
    %473 = vector.broadcast %cst_245 : f32 to vector<6x64xf32>
    %474 = arith.select %472, %470, %473 : vector<6x64xi1>, vector<6x64xf32>
    %c1_246 = arith.constant 1 : index
    %c5_247 = arith.constant 5 : index
    %475 = memref.load %arg3[%c1_246, %c5_247] : memref<4x28xf32, #tpu.memory_space<smem>>
    %476 = vector.extract_strided_slice %474 {offsets = [0, 0], sizes = [4, 64], strides = [1, 1]} : vector<6x64xf32> to vector<4x64xf32>
    %477 = vector.broadcast %475 : f32 to vector<4x64xf32>
    %478 = arith.mulf %476, %477 : vector<4x64xf32>
    %479 = arith.addf %468, %478 : vector<4x64xf32>
    %c1_248 = arith.constant 1 : index
    %c14_249 = arith.constant 14 : index
    %480 = memref.load %arg3[%c1_248, %c14_249] : memref<4x28xf32, #tpu.memory_space<smem>>
    %481 = vector.extract_strided_slice %474 {offsets = [1, 0], sizes = [4, 64], strides = [1, 1]} : vector<6x64xf32> to vector<4x64xf32>
    %482 = vector.broadcast %480 : f32 to vector<4x64xf32>
    %483 = arith.mulf %481, %482 : vector<4x64xf32>
    %484 = arith.addf %479, %483 : vector<4x64xf32>
    %c1_250 = arith.constant 1 : index
    %c23_251 = arith.constant 23 : index
    %485 = memref.load %arg3[%c1_250, %c23_251] : memref<4x28xf32, #tpu.memory_space<smem>>
    %486 = vector.extract_strided_slice %474 {offsets = [2, 0], sizes = [4, 64], strides = [1, 1]} : vector<6x64xf32> to vector<4x64xf32>
    %487 = vector.broadcast %485 : f32 to vector<4x64xf32>
    %488 = arith.mulf %486, %487 : vector<4x64xf32>
    %489 = arith.addf %484, %488 : vector<4x64xf32>
    %c1_252 = arith.constant 1 : index
    %c7_253 = arith.constant 7 : index
    %c135_254 = arith.constant 135 : index
    %490 = vector.load %arg6[%c1_252, %c7_253, %c135_254] : memref<4x13x201xf32, #tpu.memory_space<vmem>>, vector<1x6x64xf32>
    %491 = vector.shape_cast %490 : vector<1x6x64xf32> to vector<6x64xf32>
    %cst_255 = arith.constant 0.000000e+00 : f32
    %492 = vector.shape_cast %186 : vector<1x64xi1> to vector<1x64xi1>
    %493 = vector.broadcast %492 : vector<1x64xi1> to vector<6x64xi1>
    %494 = vector.broadcast %cst_255 : f32 to vector<6x64xf32>
    %495 = arith.select %493, %491, %494 : vector<6x64xi1>, vector<6x64xf32>
    %c1_256 = arith.constant 1 : index
    %c6_257 = arith.constant 6 : index
    %496 = memref.load %arg3[%c1_256, %c6_257] : memref<4x28xf32, #tpu.memory_space<smem>>
    %497 = vector.extract_strided_slice %495 {offsets = [0, 0], sizes = [4, 64], strides = [1, 1]} : vector<6x64xf32> to vector<4x64xf32>
    %498 = vector.broadcast %496 : f32 to vector<4x64xf32>
    %499 = arith.mulf %497, %498 : vector<4x64xf32>
    %500 = arith.addf %489, %499 : vector<4x64xf32>
    %c1_258 = arith.constant 1 : index
    %c15_259 = arith.constant 15 : index
    %501 = memref.load %arg3[%c1_258, %c15_259] : memref<4x28xf32, #tpu.memory_space<smem>>
    %502 = vector.extract_strided_slice %495 {offsets = [1, 0], sizes = [4, 64], strides = [1, 1]} : vector<6x64xf32> to vector<4x64xf32>
    %503 = vector.broadcast %501 : f32 to vector<4x64xf32>
    %504 = arith.mulf %502, %503 : vector<4x64xf32>
    %505 = arith.addf %500, %504 : vector<4x64xf32>
    %c1_260 = arith.constant 1 : index
    %c24_261 = arith.constant 24 : index
    %506 = memref.load %arg3[%c1_260, %c24_261] : memref<4x28xf32, #tpu.memory_space<smem>>
    %507 = vector.extract_strided_slice %495 {offsets = [2, 0], sizes = [4, 64], strides = [1, 1]} : vector<6x64xf32> to vector<4x64xf32>
    %508 = vector.broadcast %506 : f32 to vector<4x64xf32>
    %509 = arith.mulf %507, %508 : vector<4x64xf32>
    %510 = arith.addf %505, %509 : vector<4x64xf32>
    %c1_262 = arith.constant 1 : index
    %c7_263 = arith.constant 7 : index
    %c136_264 = arith.constant 136 : index
    %511 = vector.load %arg6[%c1_262, %c7_263, %c136_264] : memref<4x13x201xf32, #tpu.memory_space<vmem>>, vector<1x6x64xf32>
    %512 = vector.shape_cast %511 : vector<1x6x64xf32> to vector<6x64xf32>
    %c1_265 = arith.constant 1 : index
    %c7_266 = arith.constant 7 : index
    %513 = memref.load %arg3[%c1_265, %c7_266] : memref<4x28xf32, #tpu.memory_space<smem>>
    %514 = vector.extract_strided_slice %512 {offsets = [0, 0], sizes = [4, 64], strides = [1, 1]} : vector<6x64xf32> to vector<4x64xf32>
    %515 = vector.broadcast %513 : f32 to vector<4x64xf32>
    %516 = arith.mulf %514, %515 : vector<4x64xf32>
    %517 = arith.addf %510, %516 : vector<4x64xf32>
    %c1_267 = arith.constant 1 : index
    %c16_268 = arith.constant 16 : index
    %518 = memref.load %arg3[%c1_267, %c16_268] : memref<4x28xf32, #tpu.memory_space<smem>>
    %519 = vector.extract_strided_slice %512 {offsets = [1, 0], sizes = [4, 64], strides = [1, 1]} : vector<6x64xf32> to vector<4x64xf32>
    %520 = vector.broadcast %518 : f32 to vector<4x64xf32>
    %521 = arith.mulf %519, %520 : vector<4x64xf32>
    %522 = arith.addf %517, %521 : vector<4x64xf32>
    %c1_269 = arith.constant 1 : index
    %c25_270 = arith.constant 25 : index
    %523 = memref.load %arg3[%c1_269, %c25_270] : memref<4x28xf32, #tpu.memory_space<smem>>
    %524 = vector.extract_strided_slice %512 {offsets = [2, 0], sizes = [4, 64], strides = [1, 1]} : vector<6x64xf32> to vector<4x64xf32>
    %525 = vector.broadcast %523 : f32 to vector<4x64xf32>
    %526 = arith.mulf %524, %525 : vector<4x64xf32>
    %527 = arith.addf %522, %526 : vector<4x64xf32>
    %c1_271 = arith.constant 1 : index
    %c7_272 = arith.constant 7 : index
    %c137_273 = arith.constant 137 : index
    %528 = vector.load %arg6[%c1_271, %c7_272, %c137_273] : memref<4x13x201xf32, #tpu.memory_space<vmem>>, vector<1x6x64xf32>
    %529 = vector.shape_cast %528 : vector<1x6x64xf32> to vector<6x64xf32>
    %cst_274 = arith.constant 0.000000e+00 : f32
    %530 = vector.shape_cast %188 : vector<1x64xi1> to vector<1x64xi1>
    %531 = vector.broadcast %530 : vector<1x64xi1> to vector<6x64xi1>
    %532 = vector.broadcast %cst_274 : f32 to vector<6x64xf32>
    %533 = arith.select %531, %529, %532 : vector<6x64xi1>, vector<6x64xf32>
    %c1_275 = arith.constant 1 : index
    %c8_276 = arith.constant 8 : index
    %534 = memref.load %arg3[%c1_275, %c8_276] : memref<4x28xf32, #tpu.memory_space<smem>>
    %535 = vector.extract_strided_slice %533 {offsets = [0, 0], sizes = [4, 64], strides = [1, 1]} : vector<6x64xf32> to vector<4x64xf32>
    %536 = vector.broadcast %534 : f32 to vector<4x64xf32>
    %537 = arith.mulf %535, %536 : vector<4x64xf32>
    %538 = arith.addf %527, %537 : vector<4x64xf32>
    %c1_277 = arith.constant 1 : index
    %c17_278 = arith.constant 17 : index
    %539 = memref.load %arg3[%c1_277, %c17_278] : memref<4x28xf32, #tpu.memory_space<smem>>
    %540 = vector.extract_strided_slice %533 {offsets = [1, 0], sizes = [4, 64], strides = [1, 1]} : vector<6x64xf32> to vector<4x64xf32>
    %541 = vector.broadcast %539 : f32 to vector<4x64xf32>
    %542 = arith.mulf %540, %541 : vector<4x64xf32>
    %543 = arith.addf %538, %542 : vector<4x64xf32>
    %c1_279 = arith.constant 1 : index
    %c26_280 = arith.constant 26 : index
    %544 = memref.load %arg3[%c1_279, %c26_280] : memref<4x28xf32, #tpu.memory_space<smem>>
    %545 = vector.extract_strided_slice %533 {offsets = [2, 0], sizes = [4, 64], strides = [1, 1]} : vector<6x64xf32> to vector<4x64xf32>
    %546 = vector.broadcast %544 : f32 to vector<4x64xf32>
    %547 = arith.mulf %545, %546 : vector<4x64xf32>
    %548 = arith.addf %543, %547 : vector<4x64xf32>
    %c1_281 = arith.constant 1 : index
    %c27_282 = arith.constant 27 : index
    %549 = memref.load %arg3[%c1_281, %c27_282] : memref<4x28xf32, #tpu.memory_space<smem>>
    %550 = vector.broadcast %549 : f32 to vector<4x64xf32>
    %551 = arith.addf %548, %550 : vector<4x64xf32>
    %cst_283 = arith.constant 0.000000e+00 : f32
    %552 = vector.broadcast %cst_283 : f32 to vector<4x64xf32>
    %553 = arith.maximumf %551, %552 : vector<4x64xf32>
    %c0_284 = arith.constant 0 : index
    %c5_285 = arith.constant 5 : index
    %c0_286 = arith.constant 0 : index
    %c0_287 = arith.constant 0 : index
    %554 = vector.load %arg5[%c0_284, %c5_285, %c0_286, %c0_287] : memref<1x8x4x64xf32, #tpu.memory_space<vmem>>, vector<1x1x4x64xf32>
    %555 = vector.shape_cast %554 : vector<1x1x4x64xf32> to vector<4x64xf32>
    %556 = vector.shape_cast %553 : vector<4x64xf32> to vector<1x1x4x64xf32>
    tpu.vector_store %arg5[%c0_284, %c5_285, %c0_286, %c0_287], %556 {strides = array<i32>} : memref<1x8x4x64xf32, #tpu.memory_space<vmem>>, vector<1x1x4x64xf32>,
    %c2_288 = arith.constant 2 : index
    %c7_289 = arith.constant 7 : index
    %c119_290 = arith.constant 119 : index
    %557 = vector.load %arg6[%c2_288, %c7_289, %c119_290] : memref<4x13x201xf32, #tpu.memory_space<vmem>>, vector<1x6x64xf32>
    %558 = vector.shape_cast %557 : vector<1x6x64xf32> to vector<6x64xf32>
    %cst_291 = arith.constant 0.000000e+00 : f32
    %559 = vector.shape_cast %186 : vector<1x64xi1> to vector<1x64xi1>
    %560 = vector.broadcast %559 : vector<1x64xi1> to vector<6x64xi1>
    %561 = vector.broadcast %cst_291 : f32 to vector<6x64xf32>
    %562 = arith.select %560, %558, %561 : vector<6x64xi1>, vector<6x64xf32>
    %c2_292 = arith.constant 2 : index
    %c0_293 = arith.constant 0 : index
    %563 = memref.load %arg3[%c2_292, %c0_293] : memref<4x28xf32, #tpu.memory_space<smem>>
    %564 = vector.extract_strided_slice %562 {offsets = [0, 0], sizes = [4, 64], strides = [1, 1]} : vector<6x64xf32> to vector<4x64xf32>
    %565 = vector.broadcast %563 : f32 to vector<4x64xf32>
    %566 = arith.mulf %564, %565 : vector<4x64xf32>
    %c2_294 = arith.constant 2 : index
    %c9_295 = arith.constant 9 : index
    %567 = memref.load %arg3[%c2_294, %c9_295] : memref<4x28xf32, #tpu.memory_space<smem>>
    %568 = vector.extract_strided_slice %562 {offsets = [1, 0], sizes = [4, 64], strides = [1, 1]} : vector<6x64xf32> to vector<4x64xf32>
    %569 = vector.broadcast %567 : f32 to vector<4x64xf32>
    %570 = arith.mulf %568, %569 : vector<4x64xf32>
    %571 = arith.addf %566, %570 : vector<4x64xf32>
    %c2_296 = arith.constant 2 : index
    %c18_297 = arith.constant 18 : index
    %572 = memref.load %arg3[%c2_296, %c18_297] : memref<4x28xf32, #tpu.memory_space<smem>>
    %573 = vector.extract_strided_slice %562 {offsets = [2, 0], sizes = [4, 64], strides = [1, 1]} : vector<6x64xf32> to vector<4x64xf32>
    %574 = vector.broadcast %572 : f32 to vector<4x64xf32>
    %575 = arith.mulf %573, %574 : vector<4x64xf32>
    %576 = arith.addf %571, %575 : vector<4x64xf32>
    %c2_298 = arith.constant 2 : index
    %c7_299 = arith.constant 7 : index
    %c120_300 = arith.constant 120 : index
    %577 = vector.load %arg6[%c2_298, %c7_299, %c120_300] : memref<4x13x201xf32, #tpu.memory_space<vmem>>, vector<1x6x64xf32>
    %578 = vector.shape_cast %577 : vector<1x6x64xf32> to vector<6x64xf32>
    %c2_301 = arith.constant 2 : index
    %c1_302 = arith.constant 1 : index
    %579 = memref.load %arg3[%c2_301, %c1_302] : memref<4x28xf32, #tpu.memory_space<smem>>
    %580 = vector.extract_strided_slice %578 {offsets = [0, 0], sizes = [4, 64], strides = [1, 1]} : vector<6x64xf32> to vector<4x64xf32>
    %581 = vector.broadcast %579 : f32 to vector<4x64xf32>
    %582 = arith.mulf %580, %581 : vector<4x64xf32>
    %583 = arith.addf %576, %582 : vector<4x64xf32>
    %c2_303 = arith.constant 2 : index
    %c10_304 = arith.constant 10 : index
    %584 = memref.load %arg3[%c2_303, %c10_304] : memref<4x28xf32, #tpu.memory_space<smem>>
    %585 = vector.extract_strided_slice %578 {offsets = [1, 0], sizes = [4, 64], strides = [1, 1]} : vector<6x64xf32> to vector<4x64xf32>
    %586 = vector.broadcast %584 : f32 to vector<4x64xf32>
    %587 = arith.mulf %585, %586 : vector<4x64xf32>
    %588 = arith.addf %583, %587 : vector<4x64xf32>
    %c2_305 = arith.constant 2 : index
    %c19_306 = arith.constant 19 : index
    %589 = memref.load %arg3[%c2_305, %c19_306] : memref<4x28xf32, #tpu.memory_space<smem>>
    %590 = vector.extract_strided_slice %578 {offsets = [2, 0], sizes = [4, 64], strides = [1, 1]} : vector<6x64xf32> to vector<4x64xf32>
    %591 = vector.broadcast %589 : f32 to vector<4x64xf32>
    %592 = arith.mulf %590, %591 : vector<4x64xf32>
    %593 = arith.addf %588, %592 : vector<4x64xf32>
    %c2_307 = arith.constant 2 : index
    %c7_308 = arith.constant 7 : index
    %c121_309 = arith.constant 121 : index
    %594 = vector.load %arg6[%c2_307, %c7_308, %c121_309] : memref<4x13x201xf32, #tpu.memory_space<vmem>>, vector<1x6x64xf32>
    %595 = vector.shape_cast %594 : vector<1x6x64xf32> to vector<6x64xf32>
    %cst_310 = arith.constant 0.000000e+00 : f32
    %596 = vector.shape_cast %188 : vector<1x64xi1> to vector<1x64xi1>
    %597 = vector.broadcast %596 : vector<1x64xi1> to vector<6x64xi1>
    %598 = vector.broadcast %cst_310 : f32 to vector<6x64xf32>
    %599 = arith.select %597, %595, %598 : vector<6x64xi1>, vector<6x64xf32>
    %c2_311 = arith.constant 2 : index
    %c2_312 = arith.constant 2 : index
    %600 = memref.load %arg3[%c2_311, %c2_312] : memref<4x28xf32, #tpu.memory_space<smem>>
    %601 = vector.extract_strided_slice %599 {offsets = [0, 0], sizes = [4, 64], strides = [1, 1]} : vector<6x64xf32> to vector<4x64xf32>
    %602 = vector.broadcast %600 : f32 to vector<4x64xf32>
    %603 = arith.mulf %601, %602 : vector<4x64xf32>
    %604 = arith.addf %593, %603 : vector<4x64xf32>
    %c2_313 = arith.constant 2 : index
    %c11_314 = arith.constant 11 : index
    %605 = memref.load %arg3[%c2_313, %c11_314] : memref<4x28xf32, #tpu.memory_space<smem>>
    %606 = vector.extract_strided_slice %599 {offsets = [1, 0], sizes = [4, 64], strides = [1, 1]} : vector<6x64xf32> to vector<4x64xf32>
    %607 = vector.broadcast %605 : f32 to vector<4x64xf32>
    %608 = arith.mulf %606, %607 : vector<4x64xf32>
    %609 = arith.addf %604, %608 : vector<4x64xf32>
    %c2_315 = arith.constant 2 : index
    %c20_316 = arith.constant 20 : index
    %610 = memref.load %arg3[%c2_315, %c20_316] : memref<4x28xf32, #tpu.memory_space<smem>>
    %611 = vector.extract_strided_slice %599 {offsets = [2, 0], sizes = [4, 64], strides = [1, 1]} : vector<6x64xf32> to vector<4x64xf32>
    %612 = vector.broadcast %610 : f32 to vector<4x64xf32>
    %613 = arith.mulf %611, %612 : vector<4x64xf32>
    %614 = arith.addf %609, %613 : vector<4x64xf32>
    %c2_317 = arith.constant 2 : index
    %c7_318 = arith.constant 7 : index
    %c127_319 = arith.constant 127 : index
    %615 = vector.load %arg6[%c2_317, %c7_318, %c127_319] : memref<4x13x201xf32, #tpu.memory_space<vmem>>, vector<1x6x64xf32>
    %616 = vector.shape_cast %615 : vector<1x6x64xf32> to vector<6x64xf32>
    %cst_320 = arith.constant 0.000000e+00 : f32
    %617 = vector.shape_cast %186 : vector<1x64xi1> to vector<1x64xi1>
    %618 = vector.broadcast %617 : vector<1x64xi1> to vector<6x64xi1>
    %619 = vector.broadcast %cst_320 : f32 to vector<6x64xf32>
    %620 = arith.select %618, %616, %619 : vector<6x64xi1>, vector<6x64xf32>
    %c2_321 = arith.constant 2 : index
    %c3_322 = arith.constant 3 : index
    %621 = memref.load %arg3[%c2_321, %c3_322] : memref<4x28xf32, #tpu.memory_space<smem>>
    %622 = vector.extract_strided_slice %620 {offsets = [0, 0], sizes = [4, 64], strides = [1, 1]} : vector<6x64xf32> to vector<4x64xf32>
    %623 = vector.broadcast %621 : f32 to vector<4x64xf32>
    %624 = arith.mulf %622, %623 : vector<4x64xf32>
    %625 = arith.addf %614, %624 : vector<4x64xf32>
    %c2_323 = arith.constant 2 : index
    %c12_324 = arith.constant 12 : index
    %626 = memref.load %arg3[%c2_323, %c12_324] : memref<4x28xf32, #tpu.memory_space<smem>>
    %627 = vector.extract_strided_slice %620 {offsets = [1, 0], sizes = [4, 64], strides = [1, 1]} : vector<6x64xf32> to vector<4x64xf32>
    %628 = vector.broadcast %626 : f32 to vector<4x64xf32>
    %629 = arith.mulf %627, %628 : vector<4x64xf32>
    %630 = arith.addf %625, %629 : vector<4x64xf32>
    %c2_325 = arith.constant 2 : index
    %c21_326 = arith.constant 21 : index
    %631 = memref.load %arg3[%c2_325, %c21_326] : memref<4x28xf32, #tpu.memory_space<smem>>
    %632 = vector.extract_strided_slice %620 {offsets = [2, 0], sizes = [4, 64], strides = [1, 1]} : vector<6x64xf32> to vector<4x64xf32>
    %633 = vector.broadcast %631 : f32 to vector<4x64xf32>
    %634 = arith.mulf %632, %633 : vector<4x64xf32>
    %635 = arith.addf %630, %634 : vector<4x64xf32>
    %c2_327 = arith.constant 2 : index
    %c7_328 = arith.constant 7 : index
    %c128_329 = arith.constant 128 : index
    %636 = vector.load %arg6[%c2_327, %c7_328, %c128_329] : memref<4x13x201xf32, #tpu.memory_space<vmem>>, vector<1x6x64xf32>
    %637 = vector.shape_cast %636 : vector<1x6x64xf32> to vector<6x64xf32>
    %c2_330 = arith.constant 2 : index
    %c4_331 = arith.constant 4 : index
    %638 = memref.load %arg3[%c2_330, %c4_331] : memref<4x28xf32, #tpu.memory_space<smem>>
    %639 = vector.extract_strided_slice %637 {offsets = [0, 0], sizes = [4, 64], strides = [1, 1]} : vector<6x64xf32> to vector<4x64xf32>
    %640 = vector.broadcast %638 : f32 to vector<4x64xf32>
    %641 = arith.mulf %639, %640 : vector<4x64xf32>
    %642 = arith.addf %635, %641 : vector<4x64xf32>
    %c2_332 = arith.constant 2 : index
    %c13_333 = arith.constant 13 : index
    %643 = memref.load %arg3[%c2_332, %c13_333] : memref<4x28xf32, #tpu.memory_space<smem>>
    %644 = vector.extract_strided_slice %637 {offsets = [1, 0], sizes = [4, 64], strides = [1, 1]} : vector<6x64xf32> to vector<4x64xf32>
    %645 = vector.broadcast %643 : f32 to vector<4x64xf32>
    %646 = arith.mulf %644, %645 : vector<4x64xf32>
    %647 = arith.addf %642, %646 : vector<4x64xf32>
    %c2_334 = arith.constant 2 : index
    %c22_335 = arith.constant 22 : index
    %648 = memref.load %arg3[%c2_334, %c22_335] : memref<4x28xf32, #tpu.memory_space<smem>>
    %649 = vector.extract_strided_slice %637 {offsets = [2, 0], sizes = [4, 64], strides = [1, 1]} : vector<6x64xf32> to vector<4x64xf32>
    %650 = vector.broadcast %648 : f32 to vector<4x64xf32>
    %651 = arith.mulf %649, %650 : vector<4x64xf32>
    %652 = arith.addf %647, %651 : vector<4x64xf32>
    %c2_336 = arith.constant 2 : index
    %c7_337 = arith.constant 7 : index
    %c129_338 = arith.constant 129 : index
    %653 = vector.load %arg6[%c2_336, %c7_337, %c129_338] : memref<4x13x201xf32, #tpu.memory_space<vmem>>, vector<1x6x64xf32>
    %654 = vector.shape_cast %653 : vector<1x6x64xf32> to vector<6x64xf32>
    %cst_339 = arith.constant 0.000000e+00 : f32
    %655 = vector.shape_cast %188 : vector<1x64xi1> to vector<1x64xi1>
    %656 = vector.broadcast %655 : vector<1x64xi1> to vector<6x64xi1>
    %657 = vector.broadcast %cst_339 : f32 to vector<6x64xf32>
    %658 = arith.select %656, %654, %657 : vector<6x64xi1>, vector<6x64xf32>
    %c2_340 = arith.constant 2 : index
    %c5_341 = arith.constant 5 : index
    %659 = memref.load %arg3[%c2_340, %c5_341] : memref<4x28xf32, #tpu.memory_space<smem>>
    %660 = vector.extract_strided_slice %658 {offsets = [0, 0], sizes = [4, 64], strides = [1, 1]} : vector<6x64xf32> to vector<4x64xf32>
    %661 = vector.broadcast %659 : f32 to vector<4x64xf32>
    %662 = arith.mulf %660, %661 : vector<4x64xf32>
    %663 = arith.addf %652, %662 : vector<4x64xf32>
    %c2_342 = arith.constant 2 : index
    %c14_343 = arith.constant 14 : index
    %664 = memref.load %arg3[%c2_342, %c14_343] : memref<4x28xf32, #tpu.memory_space<smem>>
    %665 = vector.extract_strided_slice %658 {offsets = [1, 0], sizes = [4, 64], strides = [1, 1]} : vector<6x64xf32> to vector<4x64xf32>
    %666 = vector.broadcast %664 : f32 to vector<4x64xf32>
    %667 = arith.mulf %665, %666 : vector<4x64xf32>
    %668 = arith.addf %663, %667 : vector<4x64xf32>
    %c2_344 = arith.constant 2 : index
    %c23_345 = arith.constant 23 : index
    %669 = memref.load %arg3[%c2_344, %c23_345] : memref<4x28xf32, #tpu.memory_space<smem>>
    %670 = vector.extract_strided_slice %658 {offsets = [2, 0], sizes = [4, 64], strides = [1, 1]} : vector<6x64xf32> to vector<4x64xf32>
    %671 = vector.broadcast %669 : f32 to vector<4x64xf32>
    %672 = arith.mulf %670, %671 : vector<4x64xf32>
    %673 = arith.addf %668, %672 : vector<4x64xf32>
    %c2_346 = arith.constant 2 : index
    %c7_347 = arith.constant 7 : index
    %c135_348 = arith.constant 135 : index
    %674 = vector.load %arg6[%c2_346, %c7_347, %c135_348] : memref<4x13x201xf32, #tpu.memory_space<vmem>>, vector<1x6x64xf32>
    %675 = vector.shape_cast %674 : vector<1x6x64xf32> to vector<6x64xf32>
    %cst_349 = arith.constant 0.000000e+00 : f32
    %676 = vector.shape_cast %186 : vector<1x64xi1> to vector<1x64xi1>
    %677 = vector.broadcast %676 : vector<1x64xi1> to vector<6x64xi1>
    %678 = vector.broadcast %cst_349 : f32 to vector<6x64xf32>
    %679 = arith.select %677, %675, %678 : vector<6x64xi1>, vector<6x64xf32>
    %c2_350 = arith.constant 2 : index
    %c6_351 = arith.constant 6 : index
    %680 = memref.load %arg3[%c2_350, %c6_351] : memref<4x28xf32, #tpu.memory_space<smem>>
    %681 = vector.extract_strided_slice %679 {offsets = [0, 0], sizes = [4, 64], strides = [1, 1]} : vector<6x64xf32> to vector<4x64xf32>
    %682 = vector.broadcast %680 : f32 to vector<4x64xf32>
    %683 = arith.mulf %681, %682 : vector<4x64xf32>
    %684 = arith.addf %673, %683 : vector<4x64xf32>
    %c2_352 = arith.constant 2 : index
    %c15_353 = arith.constant 15 : index
    %685 = memref.load %arg3[%c2_352, %c15_353] : memref<4x28xf32, #tpu.memory_space<smem>>
    %686 = vector.extract_strided_slice %679 {offsets = [1, 0], sizes = [4, 64], strides = [1, 1]} : vector<6x64xf32> to vector<4x64xf32>
    %687 = vector.broadcast %685 : f32 to vector<4x64xf32>
    %688 = arith.mulf %686, %687 : vector<4x64xf32>
    %689 = arith.addf %684, %688 : vector<4x64xf32>
    %c2_354 = arith.constant 2 : index
    %c24_355 = arith.constant 24 : index
    %690 = memref.load %arg3[%c2_354, %c24_355] : memref<4x28xf32, #tpu.memory_space<smem>>
    %691 = vector.extract_strided_slice %679 {offsets = [2, 0], sizes = [4, 64], strides = [1, 1]} : vector<6x64xf32> to vector<4x64xf32>
    %692 = vector.broadcast %690 : f32 to vector<4x64xf32>
    %693 = arith.mulf %691, %692 : vector<4x64xf32>
    %694 = arith.addf %689, %693 : vector<4x64xf32>
    %c2_356 = arith.constant 2 : index
    %c7_357 = arith.constant 7 : index
    %c136_358 = arith.constant 136 : index
    %695 = vector.load %arg6[%c2_356, %c7_357, %c136_358] : memref<4x13x201xf32, #tpu.memory_space<vmem>>, vector<1x6x64xf32>
    %696 = vector.shape_cast %695 : vector<1x6x64xf32> to vector<6x64xf32>
    %c2_359 = arith.constant 2 : index
    %c7_360 = arith.constant 7 : index
    %697 = memref.load %arg3[%c2_359, %c7_360] : memref<4x28xf32, #tpu.memory_space<smem>>
    %698 = vector.extract_strided_slice %696 {offsets = [0, 0], sizes = [4, 64], strides = [1, 1]} : vector<6x64xf32> to vector<4x64xf32>
    %699 = vector.broadcast %697 : f32 to vector<4x64xf32>
    %700 = arith.mulf %698, %699 : vector<4x64xf32>
    %701 = arith.addf %694, %700 : vector<4x64xf32>
    %c2_361 = arith.constant 2 : index
    %c16_362 = arith.constant 16 : index
    %702 = memref.load %arg3[%c2_361, %c16_362] : memref<4x28xf32, #tpu.memory_space<smem>>
    %703 = vector.extract_strided_slice %696 {offsets = [1, 0], sizes = [4, 64], strides = [1, 1]} : vector<6x64xf32> to vector<4x64xf32>
    %704 = vector.broadcast %702 : f32 to vector<4x64xf32>
    %705 = arith.mulf %703, %704 : vector<4x64xf32>
    %706 = arith.addf %701, %705 : vector<4x64xf32>
    %c2_363 = arith.constant 2 : index
    %c25_364 = arith.constant 25 : index
    %707 = memref.load %arg3[%c2_363, %c25_364] : memref<4x28xf32, #tpu.memory_space<smem>>
    %708 = vector.extract_strided_slice %696 {offsets = [2, 0], sizes = [4, 64], strides = [1, 1]} : vector<6x64xf32> to vector<4x64xf32>
    %709 = vector.broadcast %707 : f32 to vector<4x64xf32>
    %710 = arith.mulf %708, %709 : vector<4x64xf32>
    %711 = arith.addf %706, %710 : vector<4x64xf32>
    %c2_365 = arith.constant 2 : index
    %c7_366 = arith.constant 7 : index
    %c137_367 = arith.constant 137 : index
    %712 = vector.load %arg6[%c2_365, %c7_366, %c137_367] : memref<4x13x201xf32, #tpu.memory_space<vmem>>, vector<1x6x64xf32>
    %713 = vector.shape_cast %712 : vector<1x6x64xf32> to vector<6x64xf32>
    %cst_368 = arith.constant 0.000000e+00 : f32
    %714 = vector.shape_cast %188 : vector<1x64xi1> to vector<1x64xi1>
    %715 = vector.broadcast %714 : vector<1x64xi1> to vector<6x64xi1>
    %716 = vector.broadcast %cst_368 : f32 to vector<6x64xf32>
    %717 = arith.select %715, %713, %716 : vector<6x64xi1>, vector<6x64xf32>
    %c2_369 = arith.constant 2 : index
    %c8_370 = arith.constant 8 : index
    %718 = memref.load %arg3[%c2_369, %c8_370] : memref<4x28xf32, #tpu.memory_space<smem>>
    %719 = vector.extract_strided_slice %717 {offsets = [0, 0], sizes = [4, 64], strides = [1, 1]} : vector<6x64xf32> to vector<4x64xf32>
    %720 = vector.broadcast %718 : f32 to vector<4x64xf32>
    %721 = arith.mulf %719, %720 : vector<4x64xf32>
    %722 = arith.addf %711, %721 : vector<4x64xf32>
    %c2_371 = arith.constant 2 : index
    %c17_372 = arith.constant 17 : index
    %723 = memref.load %arg3[%c2_371, %c17_372] : memref<4x28xf32, #tpu.memory_space<smem>>
    %724 = vector.extract_strided_slice %717 {offsets = [1, 0], sizes = [4, 64], strides = [1, 1]} : vector<6x64xf32> to vector<4x64xf32>
    %725 = vector.broadcast %723 : f32 to vector<4x64xf32>
    %726 = arith.mulf %724, %725 : vector<4x64xf32>
    %727 = arith.addf %722, %726 : vector<4x64xf32>
    %c2_373 = arith.constant 2 : index
    %c26_374 = arith.constant 26 : index
    %728 = memref.load %arg3[%c2_373, %c26_374] : memref<4x28xf32, #tpu.memory_space<smem>>
    %729 = vector.extract_strided_slice %717 {offsets = [2, 0], sizes = [4, 64], strides = [1, 1]} : vector<6x64xf32> to vector<4x64xf32>
    %730 = vector.broadcast %728 : f32 to vector<4x64xf32>
    %731 = arith.mulf %729, %730 : vector<4x64xf32>
    %732 = arith.addf %727, %731 : vector<4x64xf32>
    %c2_375 = arith.constant 2 : index
    %c27_376 = arith.constant 27 : index
    %733 = memref.load %arg3[%c2_375, %c27_376] : memref<4x28xf32, #tpu.memory_space<smem>>
    %734 = vector.broadcast %733 : f32 to vector<4x64xf32>
    %735 = arith.addf %732, %734 : vector<4x64xf32>
    %cst_377 = arith.constant 0.000000e+00 : f32
    %736 = vector.broadcast %cst_377 : f32 to vector<4x64xf32>
    %737 = arith.maximumf %735, %736 : vector<4x64xf32>
    %c0_378 = arith.constant 0 : index
    %c6_379 = arith.constant 6 : index
    %c0_380 = arith.constant 0 : index
    %c0_381 = arith.constant 0 : index
    %738 = vector.load %arg5[%c0_378, %c6_379, %c0_380, %c0_381] : memref<1x8x4x64xf32, #tpu.memory_space<vmem>>, vector<1x1x4x64xf32>
    %739 = vector.shape_cast %738 : vector<1x1x4x64xf32> to vector<4x64xf32>
    %740 = vector.shape_cast %737 : vector<4x64xf32> to vector<1x1x4x64xf32>
    tpu.vector_store %arg5[%c0_378, %c6_379, %c0_380, %c0_381], %740 {strides = array<i32>} : memref<1x8x4x64xf32, #tpu.memory_space<vmem>>, vector<1x1x4x64xf32>,
    %c3_382 = arith.constant 3 : index
    %c7_383 = arith.constant 7 : index
    %c119_384 = arith.constant 119 : index
    %741 = vector.load %arg6[%c3_382, %c7_383, %c119_384] : memref<4x13x201xf32, #tpu.memory_space<vmem>>, vector<1x6x64xf32>
    %742 = vector.shape_cast %741 : vector<1x6x64xf32> to vector<6x64xf32>
    %cst_385 = arith.constant 0.000000e+00 : f32
    %743 = vector.shape_cast %186 : vector<1x64xi1> to vector<1x64xi1>
    %744 = vector.broadcast %743 : vector<1x64xi1> to vector<6x64xi1>
    %745 = vector.broadcast %cst_385 : f32 to vector<6x64xf32>
    %746 = arith.select %744, %742, %745 : vector<6x64xi1>, vector<6x64xf32>
    %c3_386 = arith.constant 3 : index
    %c0_387 = arith.constant 0 : index
    %747 = memref.load %arg3[%c3_386, %c0_387] : memref<4x28xf32, #tpu.memory_space<smem>>
    %748 = vector.extract_strided_slice %746 {offsets = [0, 0], sizes = [4, 64], strides = [1, 1]} : vector<6x64xf32> to vector<4x64xf32>
    %749 = vector.broadcast %747 : f32 to vector<4x64xf32>
    %750 = arith.mulf %748, %749 : vector<4x64xf32>
    %c3_388 = arith.constant 3 : index
    %c9_389 = arith.constant 9 : index
    %751 = memref.load %arg3[%c3_388, %c9_389] : memref<4x28xf32, #tpu.memory_space<smem>>
    %752 = vector.extract_strided_slice %746 {offsets = [1, 0], sizes = [4, 64], strides = [1, 1]} : vector<6x64xf32> to vector<4x64xf32>
    %753 = vector.broadcast %751 : f32 to vector<4x64xf32>
    %754 = arith.mulf %752, %753 : vector<4x64xf32>
    %755 = arith.addf %750, %754 : vector<4x64xf32>
    %c3_390 = arith.constant 3 : index
    %c18_391 = arith.constant 18 : index
    %756 = memref.load %arg3[%c3_390, %c18_391] : memref<4x28xf32, #tpu.memory_space<smem>>
    %757 = vector.extract_strided_slice %746 {offsets = [2, 0], sizes = [4, 64], strides = [1, 1]} : vector<6x64xf32> to vector<4x64xf32>
    %758 = vector.broadcast %756 : f32 to vector<4x64xf32>
    %759 = arith.mulf %757, %758 : vector<4x64xf32>
    %760 = arith.addf %755, %759 : vector<4x64xf32>
    %c3_392 = arith.constant 3 : index
    %c7_393 = arith.constant 7 : index
    %c120_394 = arith.constant 120 : index
    %761 = vector.load %arg6[%c3_392, %c7_393, %c120_394] : memref<4x13x201xf32, #tpu.memory_space<vmem>>, vector<1x6x64xf32>
    %762 = vector.shape_cast %761 : vector<1x6x64xf32> to vector<6x64xf32>
    %c3_395 = arith.constant 3 : index
    %c1_396 = arith.constant 1 : index
    %763 = memref.load %arg3[%c3_395, %c1_396] : memref<4x28xf32, #tpu.memory_space<smem>>
    %764 = vector.extract_strided_slice %762 {offsets = [0, 0], sizes = [4, 64], strides = [1, 1]} : vector<6x64xf32> to vector<4x64xf32>
    %765 = vector.broadcast %763 : f32 to vector<4x64xf32>
    %766 = arith.mulf %764, %765 : vector<4x64xf32>
    %767 = arith.addf %760, %766 : vector<4x64xf32>
    %c3_397 = arith.constant 3 : index
    %c10_398 = arith.constant 10 : index
    %768 = memref.load %arg3[%c3_397, %c10_398] : memref<4x28xf32, #tpu.memory_space<smem>>
    %769 = vector.extract_strided_slice %762 {offsets = [1, 0], sizes = [4, 64], strides = [1, 1]} : vector<6x64xf32> to vector<4x64xf32>
    %770 = vector.broadcast %768 : f32 to vector<4x64xf32>
    %771 = arith.mulf %769, %770 : vector<4x64xf32>
    %772 = arith.addf %767, %771 : vector<4x64xf32>
    %c3_399 = arith.constant 3 : index
    %c19_400 = arith.constant 19 : index
    %773 = memref.load %arg3[%c3_399, %c19_400] : memref<4x28xf32, #tpu.memory_space<smem>>
    %774 = vector.extract_strided_slice %762 {offsets = [2, 0], sizes = [4, 64], strides = [1, 1]} : vector<6x64xf32> to vector<4x64xf32>
    %775 = vector.broadcast %773 : f32 to vector<4x64xf32>
    %776 = arith.mulf %774, %775 : vector<4x64xf32>
    %777 = arith.addf %772, %776 : vector<4x64xf32>
    %c3_401 = arith.constant 3 : index
    %c7_402 = arith.constant 7 : index
    %c121_403 = arith.constant 121 : index
    %778 = vector.load %arg6[%c3_401, %c7_402, %c121_403] : memref<4x13x201xf32, #tpu.memory_space<vmem>>, vector<1x6x64xf32>
    %779 = vector.shape_cast %778 : vector<1x6x64xf32> to vector<6x64xf32>
    %cst_404 = arith.constant 0.000000e+00 : f32
    %780 = vector.shape_cast %188 : vector<1x64xi1> to vector<1x64xi1>
    %781 = vector.broadcast %780 : vector<1x64xi1> to vector<6x64xi1>
    %782 = vector.broadcast %cst_404 : f32 to vector<6x64xf32>
    %783 = arith.select %781, %779, %782 : vector<6x64xi1>, vector<6x64xf32>
    %c3_405 = arith.constant 3 : index
    %c2_406 = arith.constant 2 : index
    %784 = memref.load %arg3[%c3_405, %c2_406] : memref<4x28xf32, #tpu.memory_space<smem>>
    %785 = vector.extract_strided_slice %783 {offsets = [0, 0], sizes = [4, 64], strides = [1, 1]} : vector<6x64xf32> to vector<4x64xf32>
    %786 = vector.broadcast %784 : f32 to vector<4x64xf32>
    %787 = arith.mulf %785, %786 : vector<4x64xf32>
    %788 = arith.addf %777, %787 : vector<4x64xf32>
    %c3_407 = arith.constant 3 : index
    %c11_408 = arith.constant 11 : index
    %789 = memref.load %arg3[%c3_407, %c11_408] : memref<4x28xf32, #tpu.memory_space<smem>>
    %790 = vector.extract_strided_slice %783 {offsets = [1, 0], sizes = [4, 64], strides = [1, 1]} : vector<6x64xf32> to vector<4x64xf32>
    %791 = vector.broadcast %789 : f32 to vector<4x64xf32>
    %792 = arith.mulf %790, %791 : vector<4x64xf32>
    %793 = arith.addf %788, %792 : vector<4x64xf32>
    %c3_409 = arith.constant 3 : index
    %c20_410 = arith.constant 20 : index
    %794 = memref.load %arg3[%c3_409, %c20_410] : memref<4x28xf32, #tpu.memory_space<smem>>
    %795 = vector.extract_strided_slice %783 {offsets = [2, 0], sizes = [4, 64], strides = [1, 1]} : vector<6x64xf32> to vector<4x64xf32>
    %796 = vector.broadcast %794 : f32 to vector<4x64xf32>
    %797 = arith.mulf %795, %796 : vector<4x64xf32>
    %798 = arith.addf %793, %797 : vector<4x64xf32>
    %c3_411 = arith.constant 3 : index
    %c7_412 = arith.constant 7 : index
    %c127_413 = arith.constant 127 : index
    %799 = vector.load %arg6[%c3_411, %c7_412, %c127_413] : memref<4x13x201xf32, #tpu.memory_space<vmem>>, vector<1x6x64xf32>
    %800 = vector.shape_cast %799 : vector<1x6x64xf32> to vector<6x64xf32>
    %cst_414 = arith.constant 0.000000e+00 : f32
    %801 = vector.shape_cast %186 : vector<1x64xi1> to vector<1x64xi1>
    %802 = vector.broadcast %801 : vector<1x64xi1> to vector<6x64xi1>
    %803 = vector.broadcast %cst_414 : f32 to vector<6x64xf32>
    %804 = arith.select %802, %800, %803 : vector<6x64xi1>, vector<6x64xf32>
    %c3_415 = arith.constant 3 : index
    %c3_416 = arith.constant 3 : index
    %805 = memref.load %arg3[%c3_415, %c3_416] : memref<4x28xf32, #tpu.memory_space<smem>>
    %806 = vector.extract_strided_slice %804 {offsets = [0, 0], sizes = [4, 64], strides = [1, 1]} : vector<6x64xf32> to vector<4x64xf32>
    %807 = vector.broadcast %805 : f32 to vector<4x64xf32>
    %808 = arith.mulf %806, %807 : vector<4x64xf32>
    %809 = arith.addf %798, %808 : vector<4x64xf32>
    %c3_417 = arith.constant 3 : index
    %c12_418 = arith.constant 12 : index
    %810 = memref.load %arg3[%c3_417, %c12_418] : memref<4x28xf32, #tpu.memory_space<smem>>
    %811 = vector.extract_strided_slice %804 {offsets = [1, 0], sizes = [4, 64], strides = [1, 1]} : vector<6x64xf32> to vector<4x64xf32>
    %812 = vector.broadcast %810 : f32 to vector<4x64xf32>
    %813 = arith.mulf %811, %812 : vector<4x64xf32>
    %814 = arith.addf %809, %813 : vector<4x64xf32>
    %c3_419 = arith.constant 3 : index
    %c21_420 = arith.constant 21 : index
    %815 = memref.load %arg3[%c3_419, %c21_420] : memref<4x28xf32, #tpu.memory_space<smem>>
    %816 = vector.extract_strided_slice %804 {offsets = [2, 0], sizes = [4, 64], strides = [1, 1]} : vector<6x64xf32> to vector<4x64xf32>
    %817 = vector.broadcast %815 : f32 to vector<4x64xf32>
    %818 = arith.mulf %816, %817 : vector<4x64xf32>
    %819 = arith.addf %814, %818 : vector<4x64xf32>
    %c3_421 = arith.constant 3 : index
    %c7_422 = arith.constant 7 : index
    %c128_423 = arith.constant 128 : index
    %820 = vector.load %arg6[%c3_421, %c7_422, %c128_423] : memref<4x13x201xf32, #tpu.memory_space<vmem>>, vector<1x6x64xf32>
    %821 = vector.shape_cast %820 : vector<1x6x64xf32> to vector<6x64xf32>
    %c3_424 = arith.constant 3 : index
    %c4_425 = arith.constant 4 : index
    %822 = memref.load %arg3[%c3_424, %c4_425] : memref<4x28xf32, #tpu.memory_space<smem>>
    %823 = vector.extract_strided_slice %821 {offsets = [0, 0], sizes = [4, 64], strides = [1, 1]} : vector<6x64xf32> to vector<4x64xf32>
    %824 = vector.broadcast %822 : f32 to vector<4x64xf32>
    %825 = arith.mulf %823, %824 : vector<4x64xf32>
    %826 = arith.addf %819, %825 : vector<4x64xf32>
    %c3_426 = arith.constant 3 : index
    %c13_427 = arith.constant 13 : index
    %827 = memref.load %arg3[%c3_426, %c13_427] : memref<4x28xf32, #tpu.memory_space<smem>>
    %828 = vector.extract_strided_slice %821 {offsets = [1, 0], sizes = [4, 64], strides = [1, 1]} : vector<6x64xf32> to vector<4x64xf32>
    %829 = vector.broadcast %827 : f32 to vector<4x64xf32>
    %830 = arith.mulf %828, %829 : vector<4x64xf32>
    %831 = arith.addf %826, %830 : vector<4x64xf32>
    %c3_428 = arith.constant 3 : index
    %c22_429 = arith.constant 22 : index
    %832 = memref.load %arg3[%c3_428, %c22_429] : memref<4x28xf32, #tpu.memory_space<smem>>
    %833 = vector.extract_strided_slice %821 {offsets = [2, 0], sizes = [4, 64], strides = [1, 1]} : vector<6x64xf32> to vector<4x64xf32>
    %834 = vector.broadcast %832 : f32 to vector<4x64xf32>
    %835 = arith.mulf %833, %834 : vector<4x64xf32>
    %836 = arith.addf %831, %835 : vector<4x64xf32>
    %c3_430 = arith.constant 3 : index
    %c7_431 = arith.constant 7 : index
    %c129_432 = arith.constant 129 : index
    %837 = vector.load %arg6[%c3_430, %c7_431, %c129_432] : memref<4x13x201xf32, #tpu.memory_space<vmem>>, vector<1x6x64xf32>
    %838 = vector.shape_cast %837 : vector<1x6x64xf32> to vector<6x64xf32>
    %cst_433 = arith.constant 0.000000e+00 : f32
    %839 = vector.shape_cast %188 : vector<1x64xi1> to vector<1x64xi1>
    %840 = vector.broadcast %839 : vector<1x64xi1> to vector<6x64xi1>
    %841 = vector.broadcast %cst_433 : f32 to vector<6x64xf32>
    %842 = arith.select %840, %838, %841 : vector<6x64xi1>, vector<6x64xf32>
    %c3_434 = arith.constant 3 : index
    %c5_435 = arith.constant 5 : index
    %843 = memref.load %arg3[%c3_434, %c5_435] : memref<4x28xf32, #tpu.memory_space<smem>>
    %844 = vector.extract_strided_slice %842 {offsets = [0, 0], sizes = [4, 64], strides = [1, 1]} : vector<6x64xf32> to vector<4x64xf32>
    %845 = vector.broadcast %843 : f32 to vector<4x64xf32>
    %846 = arith.mulf %844, %845 : vector<4x64xf32>
    %847 = arith.addf %836, %846 : vector<4x64xf32>
    %c3_436 = arith.constant 3 : index
    %c14_437 = arith.constant 14 : index
    %848 = memref.load %arg3[%c3_436, %c14_437] : memref<4x28xf32, #tpu.memory_space<smem>>
    %849 = vector.extract_strided_slice %842 {offsets = [1, 0], sizes = [4, 64], strides = [1, 1]} : vector<6x64xf32> to vector<4x64xf32>
    %850 = vector.broadcast %848 : f32 to vector<4x64xf32>
    %851 = arith.mulf %849, %850 : vector<4x64xf32>
    %852 = arith.addf %847, %851 : vector<4x64xf32>
    %c3_438 = arith.constant 3 : index
    %c23_439 = arith.constant 23 : index
    %853 = memref.load %arg3[%c3_438, %c23_439] : memref<4x28xf32, #tpu.memory_space<smem>>
    %854 = vector.extract_strided_slice %842 {offsets = [2, 0], sizes = [4, 64], strides = [1, 1]} : vector<6x64xf32> to vector<4x64xf32>
    %855 = vector.broadcast %853 : f32 to vector<4x64xf32>
    %856 = arith.mulf %854, %855 : vector<4x64xf32>
    %857 = arith.addf %852, %856 : vector<4x64xf32>
    %c3_440 = arith.constant 3 : index
    %c7_441 = arith.constant 7 : index
    %c135_442 = arith.constant 135 : index
    %858 = vector.load %arg6[%c3_440, %c7_441, %c135_442] : memref<4x13x201xf32, #tpu.memory_space<vmem>>, vector<1x6x64xf32>
    %859 = vector.shape_cast %858 : vector<1x6x64xf32> to vector<6x64xf32>
    %cst_443 = arith.constant 0.000000e+00 : f32
    %860 = vector.shape_cast %186 : vector<1x64xi1> to vector<1x64xi1>
    %861 = vector.broadcast %860 : vector<1x64xi1> to vector<6x64xi1>
    %862 = vector.broadcast %cst_443 : f32 to vector<6x64xf32>
    %863 = arith.select %861, %859, %862 : vector<6x64xi1>, vector<6x64xf32>
    %c3_444 = arith.constant 3 : index
    %c6_445 = arith.constant 6 : index
    %864 = memref.load %arg3[%c3_444, %c6_445] : memref<4x28xf32, #tpu.memory_space<smem>>
    %865 = vector.extract_strided_slice %863 {offsets = [0, 0], sizes = [4, 64], strides = [1, 1]} : vector<6x64xf32> to vector<4x64xf32>
    %866 = vector.broadcast %864 : f32 to vector<4x64xf32>
    %867 = arith.mulf %865, %866 : vector<4x64xf32>
    %868 = arith.addf %857, %867 : vector<4x64xf32>
    %c3_446 = arith.constant 3 : index
    %c15_447 = arith.constant 15 : index
    %869 = memref.load %arg3[%c3_446, %c15_447] : memref<4x28xf32, #tpu.memory_space<smem>>
    %870 = vector.extract_strided_slice %863 {offsets = [1, 0], sizes = [4, 64], strides = [1, 1]} : vector<6x64xf32> to vector<4x64xf32>
    %871 = vector.broadcast %869 : f32 to vector<4x64xf32>
    %872 = arith.mulf %870, %871 : vector<4x64xf32>
    %873 = arith.addf %868, %872 : vector<4x64xf32>
    %c3_448 = arith.constant 3 : index
    %c24_449 = arith.constant 24 : index
    %874 = memref.load %arg3[%c3_448, %c24_449] : memref<4x28xf32, #tpu.memory_space<smem>>
    %875 = vector.extract_strided_slice %863 {offsets = [2, 0], sizes = [4, 64], strides = [1, 1]} : vector<6x64xf32> to vector<4x64xf32>
    %876 = vector.broadcast %874 : f32 to vector<4x64xf32>
    %877 = arith.mulf %875, %876 : vector<4x64xf32>
    %878 = arith.addf %873, %877 : vector<4x64xf32>
    %c3_450 = arith.constant 3 : index
    %c7_451 = arith.constant 7 : index
    %c136_452 = arith.constant 136 : index
    %879 = vector.load %arg6[%c3_450, %c7_451, %c136_452] : memref<4x13x201xf32, #tpu.memory_space<vmem>>, vector<1x6x64xf32>
    %880 = vector.shape_cast %879 : vector<1x6x64xf32> to vector<6x64xf32>
    %c3_453 = arith.constant 3 : index
    %c7_454 = arith.constant 7 : index
    %881 = memref.load %arg3[%c3_453, %c7_454] : memref<4x28xf32, #tpu.memory_space<smem>>
    %882 = vector.extract_strided_slice %880 {offsets = [0, 0], sizes = [4, 64], strides = [1, 1]} : vector<6x64xf32> to vector<4x64xf32>
    %883 = vector.broadcast %881 : f32 to vector<4x64xf32>
    %884 = arith.mulf %882, %883 : vector<4x64xf32>
    %885 = arith.addf %878, %884 : vector<4x64xf32>
    %c3_455 = arith.constant 3 : index
    %c16_456 = arith.constant 16 : index
    %886 = memref.load %arg3[%c3_455, %c16_456] : memref<4x28xf32, #tpu.memory_space<smem>>
    %887 = vector.extract_strided_slice %880 {offsets = [1, 0], sizes = [4, 64], strides = [1, 1]} : vector<6x64xf32> to vector<4x64xf32>
    %888 = vector.broadcast %886 : f32 to vector<4x64xf32>
    %889 = arith.mulf %887, %888 : vector<4x64xf32>
    %890 = arith.addf %885, %889 : vector<4x64xf32>
    %c3_457 = arith.constant 3 : index
    %c25_458 = arith.constant 25 : index
    %891 = memref.load %arg3[%c3_457, %c25_458] : memref<4x28xf32, #tpu.memory_space<smem>>
    %892 = vector.extract_strided_slice %880 {offsets = [2, 0], sizes = [4, 64], strides = [1, 1]} : vector<6x64xf32> to vector<4x64xf32>
    %893 = vector.broadcast %891 : f32 to vector<4x64xf32>
    %894 = arith.mulf %892, %893 : vector<4x64xf32>
    %895 = arith.addf %890, %894 : vector<4x64xf32>
    %c3_459 = arith.constant 3 : index
    %c7_460 = arith.constant 7 : index
    %c137_461 = arith.constant 137 : index
    %896 = vector.load %arg6[%c3_459, %c7_460, %c137_461] : memref<4x13x201xf32, #tpu.memory_space<vmem>>, vector<1x6x64xf32>
    %897 = vector.shape_cast %896 : vector<1x6x64xf32> to vector<6x64xf32>
    %cst_462 = arith.constant 0.000000e+00 : f32
    %898 = vector.shape_cast %188 : vector<1x64xi1> to vector<1x64xi1>
    %899 = vector.broadcast %898 : vector<1x64xi1> to vector<6x64xi1>
    %900 = vector.broadcast %cst_462 : f32 to vector<6x64xf32>
    %901 = arith.select %899, %897, %900 : vector<6x64xi1>, vector<6x64xf32>
    %c3_463 = arith.constant 3 : index
    %c8_464 = arith.constant 8 : index
    %902 = memref.load %arg3[%c3_463, %c8_464] : memref<4x28xf32, #tpu.memory_space<smem>>
    %903 = vector.extract_strided_slice %901 {offsets = [0, 0], sizes = [4, 64], strides = [1, 1]} : vector<6x64xf32> to vector<4x64xf32>
    %904 = vector.broadcast %902 : f32 to vector<4x64xf32>
    %905 = arith.mulf %903, %904 : vector<4x64xf32>
    %906 = arith.addf %895, %905 : vector<4x64xf32>
    %c3_465 = arith.constant 3 : index
    %c17_466 = arith.constant 17 : index
    %907 = memref.load %arg3[%c3_465, %c17_466] : memref<4x28xf32, #tpu.memory_space<smem>>
    %908 = vector.extract_strided_slice %901 {offsets = [1, 0], sizes = [4, 64], strides = [1, 1]} : vector<6x64xf32> to vector<4x64xf32>
    %909 = vector.broadcast %907 : f32 to vector<4x64xf32>
    %910 = arith.mulf %908, %909 : vector<4x64xf32>
    %911 = arith.addf %906, %910 : vector<4x64xf32>
    %c3_467 = arith.constant 3 : index
    %c26_468 = arith.constant 26 : index
    %912 = memref.load %arg3[%c3_467, %c26_468] : memref<4x28xf32, #tpu.memory_space<smem>>
    %913 = vector.extract_strided_slice %901 {offsets = [2, 0], sizes = [4, 64], strides = [1, 1]} : vector<6x64xf32> to vector<4x64xf32>
    %914 = vector.broadcast %912 : f32 to vector<4x64xf32>
    %915 = arith.mulf %913, %914 : vector<4x64xf32>
    %916 = arith.addf %911, %915 : vector<4x64xf32>
    %c3_469 = arith.constant 3 : index
    %c27_470 = arith.constant 27 : index
    %917 = memref.load %arg3[%c3_469, %c27_470] : memref<4x28xf32, #tpu.memory_space<smem>>
    %918 = vector.broadcast %917 : f32 to vector<4x64xf32>
    %919 = arith.addf %916, %918 : vector<4x64xf32>
    %cst_471 = arith.constant 0.000000e+00 : f32
    %920 = vector.broadcast %cst_471 : f32 to vector<4x64xf32>
    %921 = arith.maximumf %919, %920 : vector<4x64xf32>
    %c0_472 = arith.constant 0 : index
    %c7_473 = arith.constant 7 : index
    %c0_474 = arith.constant 0 : index
    %c0_475 = arith.constant 0 : index
    %922 = vector.load %arg5[%c0_472, %c7_473, %c0_474, %c0_475] : memref<1x8x4x64xf32, #tpu.memory_space<vmem>>, vector<1x1x4x64xf32>
    %923 = vector.shape_cast %922 : vector<1x1x4x64xf32> to vector<4x64xf32>
    %924 = vector.shape_cast %921 : vector<4x64xf32> to vector<1x1x4x64xf32>
    tpu.vector_store %arg5[%c0_472, %c7_473, %c0_474, %c0_475], %924 {strides = array<i32>} : memref<1x8x4x64xf32, #tpu.memory_space<vmem>>, vector<1x1x4x64xf32>,
    return
  }
  func.func @transform_0(%arg0: i32, %arg1: i32) -> (i32, i32) {
    %c0_i32 = arith.constant 0 : i32
    %c0_i32_0 = arith.constant 0 : i32
    %c0_i32_1 = arith.constant 0 : i32
    return %c0_i32, %c0_i32_0 : i32, i32
  }
  func.func @transform_1(%arg0: i32, %arg1: i32) -> (i32, i32) {
    %c0_i32 = arith.constant 0 : i32
    %c0_i32_0 = arith.constant 0 : i32
    %c0_i32_1 = arith.constant 0 : i32
    return %c0_i32, %c0_i32_0 : i32, i32
  }
  func.func @transform_2(%arg0: i32, %arg1: i32) -> (i32, i32, i32, i32) {
    %c0_i32 = arith.constant 0 : i32
    %c0_i32_0 = arith.constant 0 : i32
    %c0_i32_1 = arith.constant 0 : i32
    %c0_i32_2 = arith.constant 0 : i32
    return %arg0, %c0_i32, %c0_i32_0, %c0_i32_1 : i32, i32, i32, i32
  }
  func.func @transform_3(%arg0: i32, %arg1: i32) -> (i32, i32, i32, i32) {
    %c0_i32 = arith.constant 0 : i32
    %c0_i32_0 = arith.constant 0 : i32
    %c0_i32_1 = arith.constant 0 : i32
    return %arg0, %c0_i32, %arg1, %c0_i32_0 : i32, i32, i32, i32
  }
}

</mosaic_0001>

<bundles_post_ra>
// kernel: ghost_module_3d.1
= control target key start
LH: loop header
LB: loop body
LE: loop exit
PB: predicated region body
PF: predicated region fallthrough
CT: control target
= control target key end

     0   :  { %8 = vsyncpa [#allocation4], 0  ;;  %s2732_s0 = inlined_call_operand.vmem [shape: f32[4,5], index: 0, kind: input, shape index: {}]   ;;  %s2733_s1 = inlined_call_operand.vmem [shape: f32[4,28], index: 1, kind: input, shape index: {}]   ;;  %s2734_s2 = inlined_call_operand.vmem [shape: f32[2,4,4,64], index: 2, kind: input, shape index: {}]   ;;  %s2735_s3 = inlined_call_operand.vmem [shape: f32[2,8,4,64], index: 3, kind: output, shape index: {}]  }
   0x1   :  { %9 = vsyncpa [#allocation6], 0  ;;  %s1870_s12 = smov 0   ;;  %s1872_s13 = smov 0  }
   0x2   :  { %s1874_s14 = smov 0  }
   0x3 LB: > { %s1563_s15 = sadd.s32 4294967295, %s1837_s14   ;;  %s27_s16 = sadd.s32 1, %s1833_s13  ;;  %s1837_s14 = sphi %s1874_s14, %s15_s14   ;;  %s1833_s13 = sphi %s1872_s13, %s2744_s13   ;;  %s1829_s12 = sphi %s1870_s12, %s2743_s12  }
   0x4   : > { %p29_p0 = scmp.ge.s32.totalorder %s27_s16, 2  ;;  %p1565_p1 = scmp.ge.s32.totalorder %s1837_s14, 1 }
   0x5   : > { %p128_p2 = scmp.lt.s32.totalorder %s1837_s14, 3  ;;  %p1891_p4 = scmp.eq.s32.totalorder %s1563_s15, 0 }
   0x6   : > { %s2746_s16 = smov (%p29_p0, %s27_s16), 0  ;;  %s140_s20 = sshll.u32 %s2732_s0, 4  ;;  %s141_s20 = int_to_ptr.vmem [resolvable:$true] %s140_s20 }
   0x7   : > { %p129_p3 = pnand %p1565_p1, %p128_p2  ;;  %s150_s23 = sshll.u32 %s2733_s1, 4  ;;  %s151_s23 = int_to_ptr.vmem [resolvable:$true] %s150_s23 }
   0x8   : > { %s1839_s24 = smov [#allocation3]   ;;  %s1840_s25 = smov [#allocation5]  }
   0x9   : > { %p1728_p5 = pneg %p129_p3 }
   0xa   : > { %171 = sbr.rel (%p129_p3) target bundleno = 363 (0x16b), region = 32 }
   0xb   : > { %p1729_p6 = pnand %p1891_p4, %p1728_p5 }
   0xd   : > { %1731 = dma.vmem_to_smem (!%p1729_p6), %s141_s20, 64, %s1839_s24, [#allocation4]  }
   0xe   : > { %1734 = dma.vmem_to_smem (!%p1729_p6), %s151_s23, 64, %s1840_s25, [#allocation6]  }
   0xf   : > { %1820 = dma.done.wait (%p1891_p4), [#allocation4], 64  }
  0x10   : > { %1822 = vsyncadd (%p1891_p4), [#allocation4], 4294967232 }
  0x11   : > { %1824 = dma.done.wait (%p1891_p4), [#allocation6], 64  }
  0x12   : > { %1826 = vsyncadd (%p1891_p4), [#allocation6], 4294967232 }
  0x13   : > { %183 = sfence }
  0x14   : > { %vm219_vm0 = vcmask 1048511   ;;  %vm221_vm1 = vcmask 1045432   ;;  %vm223_vm2 = vcmask 597511   ;;  %s1911_s26 = sld [smem:[#allocation3]]  ;;  %v1841_v0 = vmov 0.0   ;;  %p205_p7 = scmp.lt.s32.totalorder %s1829_s12, 1 }
  0x15   : > { %220 = vst.msk [vmem:[#allocation2] sm:$0x80] %vm219_vm0, %v1841_v0  ;;  %vm225_vm3 = vcmask 594432   ;;  %s1915_s27 = sld [smem:[#allocation3 + $0x80]]  ;;  %v341_v1 = vlaneseq  ;;  %vm395_vm5 = vcmask 1040384   ;;  %vm317_vm6 = vcmask 519168  }
  0x16   : > { %222 = vst.msk [vmem:[#allocation2 + $0x10] sm:$0x1f] %vm221_vm1, %v1841_v0  ;;  %s1919_s28 = sld [smem:[#allocation3 + $0x100]]  ;;  %s2748_s12 = smov (!%p205_p7, %s1829_s12), 1  ;;  %vm406_vm7 = vcmask 72704   ;;  %vm485_vm9 = vcmask 56320  }
  0x17   : > { %224 = vst.msk [vmem:[#allocation2 + $0x8] sm:$0x80] %vm223_vm2, %v1841_v0  ;;  %s1923_s29 = sld [smem:[#allocation3 + $0x180]]  ;;  %vm1970_vm4 = vcmp.lt.s32.totalorder %v341_v1, 201  ;;  %s1718_s24 = sshll.u32 %s2748_s12, 4  ;;  %vm447_vm11 = vcmask 64512  }
  0x18   : > { %226 = vst.msk [vmem:[#allocation2 + $0x18] sm:$0x1f] %vm225_vm3, %v1841_v0  ;;  %s1927_s30 = sld [smem:[#allocation3 + $0x1]]  ;;  %vm511_vm12 = vcmask 7168  }
  0x19   : > { %228 = vst.msk [vmem:[#allocation2 + $0x20] sm:$0x80] %vm219_vm0, %v1841_v0  ;;  %s1931_s4 = sld [smem:[#allocation3 + $0x81]] }
  0x1a   : > { %229 = vst.msk [vmem:[#allocation2 + $0x30] sm:$0x1f] %vm221_vm1, %v1841_v0  ;;  %s1935_s5 = sld [smem:[#allocation3 + $0x101]]  ;;  %v245_v3 = vstv %s1911_s26 }
  0x1b   : > { %230 = vst.msk [vmem:[#allocation2 + $0x28] sm:$0x80] %vm223_vm2, %v1841_v0  ;;  %s1939_s6 = sld [smem:[#allocation3 + $0x181]]  ;;  %v248_v4 = vstv %s1915_s27 }
  0x1c   : > { %231 = vst.msk [vmem:[#allocation2 + $0x38] sm:$0x1f] %vm225_vm3, %v1841_v0  ;;  %s1943_s7 = sld [smem:[#allocation3 + $0x2]]  ;;  %v251_v5 = vstv %s1919_s28  ;;  %s209_s28 = scalar_lea.vmem %s2734_s2, %s1718_s24 }
  0x1d   : > { %233 = vst.msk [vmem:[#allocation2 + $0x40] sm:$0x80] %vm219_vm0, %v1841_v0  ;;  %s1947_s8 = sld [smem:[#allocation3 + $0x82]]  ;;  %v254_v6 = vstv %s1923_s29  ;;  %v243_v23 = vld [vmem:[%s209_s28] sm:$0xf] }
  0x1e   : > { %234 = vst.msk [vmem:[#allocation2 + $0x50] sm:$0x1f] %vm221_vm1, %v1841_v0  ;;  %s1951_s9 = sld [smem:[#allocation3 + $0x102]]  ;;  %v260_v7 = vstv %s1927_s30  ;;  %v1579_v24 = vld [vmem:[%s209_s28 + $0x4] sm:$0xf]  ;;  %v246_v28 = vmul.f32 %v245_v3, %v243_v23  ;;  %v249_v29 = vmul.f32 %v248_v4, %v243_v23  ;;  %v252_v32 = vmul.f32 %v251_v5, %v243_v23  ;;  %s1842_s30 = smov 1  }
  0x1f   : > { %235 = vst.msk [vmem:[#allocation2 + $0x48] sm:$0x80] %vm223_vm2, %v1841_v0  ;;  %s1955_s10 = sld [smem:[#allocation3 + $0x182]]  ;;  %v264_v8 = vstv %s1931_s4  ;;  %v1584_v30 = vld [vmem:[%s209_s28 + $0x8] sm:$0xf]  ;;  %v255_v33 = vmul.f32 %v254_v6, %v243_v23  ;;  %v261_v34 = vmul.f32 %v1579_v24, %v260_v7  ;;  %s1843_s4 = smov 9  }
  0x20   : > { %236 = vst.msk [vmem:[#allocation2 + $0x58] sm:$0x1f] %vm225_vm3, %v1841_v0  ;;  %s1959_s11 = sld [smem:[#allocation3 + $0x3]]  ;;  %v268_v9 = vstv %s1935_s5  ;;  %v265_v35 = vmul.f32 %v1579_v24, %v264_v8  ;;  %v1589_v39 = vld [vmem:[%s209_s28 + $0xc] sm:$0xf]  ;;  %s1844_s5 = smov 8  }
  0x21   : > { %238 = vst.msk [vmem:[#allocation2 + $0x60] sm:$0x80] %vm219_vm0, %v1841_v0  ;;  %s1963_s15 = sld [smem:[#allocation3 + $0x83]]  ;;  %v272_v10 = vstv %s1939_s6  ;;  %v269_v36 = vmul.f32 %v1579_v24, %v268_v9  ;;  %v262_v41 = vadd.f32 %v261_v34, %v246_v28  ;;  %s1845_s6 = smov 7  }
  0x22   : > { %239 = vst.msk [vmem:[#allocation2 + $0x70] sm:$0x1f] %vm221_vm1, %v1841_v0  ;;  %s1967_s17 = sld [smem:[#allocation3 + $0x103]]  ;;  %v279_v11 = vstv %s1943_s7  ;;  %v273_v37 = vmul.f32 %v1579_v24, %v272_v10  ;;  %v266_v44 = vadd.f32 %v265_v35, %v249_v29 }
  0x23   : > { %240 = vst.msk [vmem:[#allocation2 + $0x68] sm:$0x80] %vm223_vm2, %v1841_v0  ;;  %s1976_s18 = sld [smem:[#allocation3 + $0x183]]  ;;  %v283_v12 = vstv %s1947_s8  ;;  %v280_v38 = vmul.f32 %v1584_v30, %v279_v11  ;;  %v270_v45 = vadd.f32 %v269_v36, %v252_v32  ;;  %s1846_s8 = smov 121  }
  0x24   : > { %241 = vst.msk [vmem:[#allocation2 + $0x78] sm:$0x1f] %vm225_vm3, %v1841_v0  ;;  %s1980_s19 = sld [smem:[#allocation3 + $0x4]]  ;;  %v287_v13 = vstv %s1951_s9  ;;  %v284_v42 = vmul.f32 %v1584_v30, %v283_v12  ;;  %v274_v46 = vadd.f32 %v273_v37, %v255_v33 }
  0x25   : > { %s1983_s20 = sld [smem:[#allocation3 + $0x84]]  ;;  %346 = vst.msk [vmem:[#allocation2 + $0x7] ss:$8 sm:$0x3] %vm1970_vm4, %v1841_v0  ;;  %v291_v14 = vstv %s1955_s10  ;;  %v288_v43 = vmul.f32 %v1584_v30, %v287_v13  ;;  %v281_v48 = vadd.f32 %v280_v38, %v262_v41 }
  0x26   : > { %s1988_s21 = sld [smem:[#allocation3 + $0x104]]  ;;  %358 = vst.msk [vmem:[#allocation2 + $0x14] ss:$8 sm:$0x3] %vm1970_vm4, %v1841_v0  ;;  %v298_v15 = vstv %s1959_s11  ;;  %v292_v47 = vmul.f32 %v1584_v30, %v291_v14  ;;  %v285_v52 = vadd.f32 %v284_v42, %v266_v44 }
  0x27   : > { %s1994_s22 = sld [smem:[#allocation3 + $0x184]]  ;;  %361 = vst.msk [vmem:[#allocation2 + $0x34] ss:$8 sm:$0x3] %vm1970_vm4, %v1841_v0  ;;  %v302_v16 = vstv %s1963_s15  ;;  %v299_v49 = vmul.f32 %v1589_v39, %v298_v15  ;;  %v289_v53 = vadd.f32 %v288_v43, %v270_v45  ;;  %s1847_s15 = smov 127  }
  0x28   : > { %364 = vst.msk [vmem:[#allocation2 + $0x54] ss:$8 sm:$0x3] %vm1970_vm4, %v1841_v0  ;;  %s2018_s23 = sld [smem:[#allocation5 + $0xa]]  ;;  %v306_v17 = vstv %s1967_s17  ;;  %v303_v50 = vmul.f32 %v1589_v39, %v302_v16  ;;  %v293_v54 = vadd.f32 %v292_v47, %v274_v46  ;;  %s1848_s17 = smov 120  }
  0x29   : > { %367 = vst.msk [vmem:[#allocation2 + $0x74] ss:$8 sm:$0x3] %vm1970_vm4, %v1841_v0  ;;  %s2028_s25 = sld [smem:[#allocation5 + $0x1]]  ;;  %v310_v18 = vstv %s1976_s18  ;;  %v307_v51 = vmul.f32 %v1589_v39, %v306_v17  ;;  %v300_v56 = vadd.f32 %v299_v49, %v281_v48 }
  0x2a   : > { %349 = vst.msk [vmem:[#allocation2 + $0x27] ss:$8 sm:$0x3] %vm1970_vm4, %v1841_v0  ;;  %v314_v19 = vstv %s1980_s19  ;;  %s2040_s29 = sld [smem:[#allocation5 + $0x13]]  ;;  %v311_v55 = vmul.f32 %v1589_v39, %v310_v18  ;;  %v304_v60 = vadd.f32 %v303_v50, %v285_v52  ;;  %s1849_s19 = smov 119  }
  0x2b   : > { %352 = vst.msk [vmem:[#allocation2 + $0x47] ss:$8 sm:$0x3] %vm1970_vm4, %v1841_v0  ;;  %v321_v20 = vstv %s1983_s20  ;;  %v308_v61 = vadd.f32 %v307_v51, %v289_v53  ;;  %s1621_s7 = sld [smem:[#allocation5 + $0x7]] }
  0x2c   : > { %v328_v21 = vstv %s1988_s21  ;;  %v385_v22 = vld [vmem:[#allocation2] sm:$0x80]  ;;  %355 = vst.msk [vmem:[#allocation2 + $0x67] ss:$8 sm:$0x3] %vm1970_vm4, %v1841_v0  ;;  %v312_v62 = vadd.f32 %v311_v55, %v293_v54  ;;  %v2054_v0 = vadd.f32 %v314_v19, %v300_v56  ;;  %v2056_v5 = vadd.f32 %v321_v20, %v304_v60  ;;  %s1623_s9 = sld [smem:[#allocation5 + $0x19]] }
  0x2d   : > { %v335_v25 = vstv %s1994_s22  ;;  %v387_v26 = vld [vmem:[#allocation2 + $0x10] sm:$0x1f]  ;;  %v396_v27 = vrot.slane %v385_v22, 7  ;;  %v2058_v6 = vadd.f32 %v328_v21, %v308_v61  ;;  %v2082_v16 = vld [vmem:[#allocation2 + $0x8] sm:$0x80]  ;;  %s1622_s10 = sld [smem:[#allocation5 + $0x10]] }
  0x2e   : > { %v397_v31 = vrot.slane %v387_v26, 7  ;;  %v452_v57 = vstv %s2018_s23  ;;  %v2060_v7 = vadd.f32 %v335_v25, %v312_v62  ;;  %v316_v8 = vmax.f32 %v2054_v0, 0.0  ;;  %s1632_s11 = sld [smem:[#allocation5 + $0x81]]  ;;  %v659_v43 = vld [vmem:[#allocation2 + $0x30] sm:$0x1f]  ;;  %s1719_s21 = sshll.u32 %s2748_s12, 5 }
  0x2f   : > { %v428_v58 = vstv %s2028_s25  ;;  %v453_v63 = vmul.f32 %v452_v57, %v387_v26  ;;  %v323_v12 = vmax.f32 %v2056_v5, 0.0  ;;  %v330_v13 = vmax.f32 %v2058_v6, 0.0  ;;  %s1633_s18 = sld [smem:[#allocation5 + $0x8a]]  ;;  %s2133_s24 = scalar_lea.vmem %s2735_s3, %s1719_s21 }
  0x30   : > { %v398_v40 = vsel %vm395_vm5, %v396_v27, %v397_v31  ;;  %v465_v59 = vstv %s2040_s29  ;;  %v429_v2 = vmul.f32 %v428_v58, %v385_v22  ;;  %v431_v3 = vmul.f32 %v428_v58, %v387_v26  ;;  %318 = vst.msk [vmem:[#allocation2 + $0x18] sm:$0xf] %vm317_vm6, %v316_v8  ;;  %s1634_s20 = sld [smem:[#allocation5 + $0x93]] }
  0x31   : > { %507 = vrot.lane.b32.xlu1 %v398_v40, %s1842_s30  ;;  %402 = vrot.lane.b32.xlu0 %v398_v40, %s1843_s4  ;;  %v466_v4 = vmul.f32 %v465_v59, %v387_v26  ;;  %v337_v14 = vmax.f32 %v2060_v7, 0.0  ;;  %324 = vst.msk [vmem:[#allocation2 + $0x38] sm:$0xf] %vm317_vm6, %v323_v12  ;;  %v399_v17 = vrot.slane %v2082_v16, 7  ;;  %v600_v24 = vstv %s1621_s7  ;;  %v657_v42 = vld [vmem:[#allocation2 + $0x20] sm:$0x80] }
  0x32   : > { %457 = vrot.lane.b32.xlu2 %v453_v63, %s1844_s5  ;;  %v437_v9 = vrot.slane %v429_v2, 7  ;;  %v438_v10 = vrot.slane %v431_v3, 7  ;;  %331 = vst.msk [vmem:[#allocation2 + $0x58] sm:$0xf] %vm317_vm6, %v330_v13  ;;  %v430_v25 = vmul.f32 %v428_v58, %v2082_v16  ;;  %v601_v27 = vmul.f32 %v600_v24, %v2082_v16  ;;  %s1650_s12 = sld [smem:[#allocation5 + $0x87]] }
  0x33   : > { %v470_v11 = vrot.slane %v466_v4, 1  ;;  %338 = vst.msk [vmem:[#allocation2 + $0x78] sm:$0xf] %vm317_vm6, %v337_v14  ;;  %v621_v34 = vstv %s1623_s9  ;;  %v613_v37 = vstv %s1622_s10  ;;  %v665_v49 = vrot.slane %v657_v42, 7  ;;  %s1652_s25 = sld [smem:[#allocation5 + $0x99]] }
  0x34   : > { %v439_v15 = vsel %vm395_vm5, %v437_v9, %v438_v10  ;;  %v440_v29 = vrot.slane %v430_v25, 7  ;;  %v605_v31 = vrot.slane %v601_v27, 7  ;;  %v696_v44 = vstv %s1632_s11  ;;  %319 = vst.msk [vmem:[%s2133_s24] sm:$0xf] %vm317_vm6, %v316_v8  ;;  %s1651_s26 = sld [smem:[#allocation5 + $0x90]] }
  0x35   : > { %v697_v45 = vmul.f32 %v696_v44, %v657_v42  ;;  %v699_v46 = vmul.f32 %v696_v44, %v659_v43  ;;  %v666_v50 = vrot.slane %v659_v43, 7  ;;  %1596 = vst.msk [vmem:[%s2133_s24 + $0x4] sm:$0xf] %vm317_vm6, %v323_v12  ;;  %s1661_s27 = sld [smem:[#allocation5 + $0x101]] }
  0x36   : > { %v732_v63 = vstv %s1634_s20  ;;  %1598 = vst.msk [vmem:[%s2133_s24 + $0x8] sm:$0xf] %vm317_vm6, %v330_v13  ;;  %s1690_s28 = sld [smem:[#allocation5 + $0x181]] }
  0x37   : > { %v2086_v18 = vld [vmem:[#allocation2 + $0x18] sm:$0x1f]  ;;  %v705_v51 = vrot.slane %v697_v45, 7  ;;  %v706_v52 = vrot.slane %v699_v46, 7  ;;  %v667_v54 = vsel %vm395_vm5, %v665_v49, %v666_v50  ;;  %1600 = vst.msk [vmem:[%s2133_s24 + $0xc] sm:$0xf] %vm317_vm6, %v337_v14  ;;  %v733_v3 = vmul.f32 %v732_v63, %v659_v43 }
  0x38   : > { %v400_v19 = vrot.slane %v2086_v18, 7  ;;  %v454_v20 = vmul.f32 %v452_v57, %v2086_v18  ;;  %v467_v22 = vmul.f32 %v465_v59, %v2086_v18  ;;  %v432_v26 = vmul.f32 %v428_v58, %v2086_v18  ;;  %v2111_v41 = vld [vmem:[#allocation2 + $0x38] sm:$0x1f]  ;;  %s1662_s29 = sld [smem:[#allocation5 + $0x10a]] }
  0x39   : > { %472 = vrot.lane.b32.xlu0 %v470_v11, %s1844_s5  ;;  %443 = vrot.lane.b32.xlu1 %v439_v15, %s1844_s5  ;;  %v602_v28 = vmul.f32 %v600_v24, %v2086_v18  ;;  %v622_v36 = vmul.f32 %v621_v34, %v2086_v18  ;;  %v614_v39 = vmul.f32 %v613_v37, %v2086_v18  ;;  %v669_v48 = vrot.slane %v2111_v41, 7  ;;  %v1183_v37 = vld [vmem:[#allocation2 + $0x60] sm:$0x80]  ;;  %s1691_s7 = sld [smem:[#allocation5 + $0x18a]] }
  0x3a   : > { %481 = vrot.lane.b32.xlu2 %v398_v40, %s1845_s6  ;;  %v401_v21 = vsel %vm395_vm5, %v399_v17, %v400_v19  ;;  %v471_v23 = vrot.slane %v467_v22, 1  ;;  %v441_v30 = vrot.slane %v432_v26, 7  ;;  %v2109_v40 = vld [vmem:[#allocation2 + $0x28] sm:$0x80]  ;;  %v700_v56 = vmul.f32 %v696_v44, %v2111_v41  ;;  %v920_v22 = vld [vmem:[#allocation2 + $0x40] sm:$0x80] }
  0x3b   : > { %v606_v32 = vrot.slane %v602_v28, 7  ;;  %v624_v38 = vrot.slane %v622_v36, 1  ;;  %v668_v47 = vrot.slane %v2109_v40, 7  ;;  %v698_v55 = vmul.f32 %v696_v44, %v2109_v40  ;;  %v2199_v36 = vld [vmem:[#allocation2 + $0x78] sm:$0x1f]  ;;  %s1601_s9 = sld [smem:[#allocation5 + $0x9]] }
  0x3c   : > { %v442_v33 = vsel %vm395_vm5, %v440_v29, %v441_v30  ;;  %v707_v57 = vsel %vm395_vm5, %v705_v51, %v706_v52  ;;  %v719_v58 = vstv %s1633_s18  ;;  %v709_v60 = vrot.slane %v700_v56, 7  ;;  %s1692_s10 = sld [smem:[#allocation5 + $0x193]] }
  0x3d   : > { %v607_v35 = vsel %vm395_vm5, %v605_v31, %v606_v32  ;;  %v2119_v53 = vsel %vm395_vm5, %v668_v47, %v669_v48  ;;  %v708_v59 = vrot.slane %v698_v55, 7  ;;  %v720_v61 = vmul.f32 %v719_v58, %v659_v43  ;;  %s410_s11 = sld [smem:[#allocation5]] }
  0x3e   : > { %v721_v2 = vmul.f32 %v719_v58, %v2111_v41  ;;  %v734_v0 = vmul.f32 %v732_v63, %v2111_v41  ;;  %v737_v5 = vrot.slane %v733_v3, 1  ;;  %v863_v6 = vstv %s1650_s12  ;;  %s1602_s18 = sld [smem:[#allocation5 + $0x12]] }
  0x3f   : > { %v710_v62 = vsel %vm395_vm5, %v708_v59, %v709_v60  ;;  %v864_v7 = vmul.f32 %v863_v6, %v2109_v40  ;;  %v865_v8 = vmul.f32 %v863_v6, %v2111_v41  ;;  %v884_v11 = vstv %s1652_s25  ;;  %s2281_s20 = sld [smem:[#allocation5 + $0xb]] }
  0x40   : > { %v738_v4 = vrot.slane %v734_v0, 1  ;;  %v885_v13 = vmul.f32 %v884_v11, %v2111_v41  ;;  %v876_v14 = vstv %s1651_s26  ;;  %v959_v19 = vstv %s1661_s27  ;;  %s2283_s21 = sld [smem:[#allocation5 + $0x2]] }
  0x41   : > { %577 = vrot.lane.b32.xlu1 %v401_v21, %s1846_s8  ;;  %404 = vrot.lane.b32.xlu0 %v401_v21, %s1843_s4  ;;  %v868_v9 = vrot.slane %v864_v7, 7  ;;  %v869_v10 = vrot.slane %v865_v8, 7  ;;  %v877_v17 = vmul.f32 %v876_v14, %v2111_v41  ;;  %v960_v24 = vmul.f32 %v959_v19, %v920_v22  ;;  %s2289_s22 = sld [smem:[#allocation5 + $0x4]] }
  0x42   : > { %459 = vrot.lane.b32.xlu2 %v454_v20, %s1844_s5  ;;  %v887_v15 = vrot.slane %v885_v13, 1  ;;  %v2175_v20 = vld [vmem:[#allocation2 + $0x48] sm:$0x80]  ;;  %v928_v28 = vrot.slane %v920_v22, 7  ;;  %v1195_v45 = vrot.slane %v2199_v36, 7  ;;  %v1191_v46 = vrot.slane %v1183_v37, 7 }
  0x43   : > { %v870_v12 = vsel %vm395_vm5, %v868_v9, %v869_v10  ;;  %v931_v26 = vrot.slane %v2175_v20, 7  ;;  %v968_v30 = vrot.slane %v960_v24, 7  ;;  %v961_v42 = vmul.f32 %v959_v19, %v2175_v20  ;;  %s2291_s23 = sld [smem:[#allocation5 + $0x3]] }
  0x44   : > { %v1222_v48 = vstv %s1690_s28  ;;  %v982_v3 = vstv %s1662_s29  ;;  %v1245_v7 = vstv %s1691_s7  ;;  %v370_v14 = vand.u32 127, %v341_v1  ;;  %s2301_s12 = sld [smem:[#allocation5 + $0xc]] }
  0x45   : > { %v971_v49 = vrot.slane %v961_v42, 7  ;;  %v1226_v55 = vmul.f32 %v1222_v48, %v2199_v36  ;;  %v1223_v56 = vmul.f32 %v1222_v48, %v1183_v37  ;;  %v1247_v11 = vmul.f32 %v1245_v7, %v2199_v36  ;;  %s2305_s25 = sld [smem:[#allocation5 + $0x107]] }
  0x46   : > { %s2309_s26 = sld [smem:[#allocation5 + $0x15]] }
  0x47   : > { %v1235_v60 = vrot.slane %v1226_v55, 7  ;;  %s2331_s27 = sld [smem:[#allocation5 + $0x16]] }
  0x48   : > { %s2340_s28 = sld [smem:[#allocation5 + $0xd]] }
  0x49   : > { %474 = vrot.lane.b32.xlu1 %v471_v23, %s1844_s5  ;;  %483 = vrot.lane.b32.xlu0 %v401_v21, %s1845_s6  ;;  %v2179_v23 = vld [vmem:[#allocation2 + $0x50] sm:$0x1f]  ;;  %s2342_s29 = sld [smem:[#allocation5 + $0x6]] }
  0x4a   : > { %509 = vrot.lane.b32.xlu2 %v401_v21, %s1842_s30  ;;  %v962_v25 = vmul.f32 %v959_v19, %v2179_v23  ;;  %v929_v29 = vrot.slane %v2179_v23, 7  ;;  %s2355_s7 = sld [smem:[#allocation5 + $0x5]] }
  0x4c   : > { %v969_v31 = vrot.slane %v962_v25, 7 }
  0x51   : > { %445 = vrot.lane.b32.xlu1 %v442_v33, %s1844_s5  ;;  %555 = vrot.lane.b32.xlu0 %v401_v21, %s1847_s15  ;;  %v2191_v33 = vld [vmem:[#allocation2 + $0x68] sm:$0x80] }
  0x52   : > { %608 = vrot.lane.b32.xlu2 %v607_v35, %s1848_s17  ;;  %v2197_v35 = vsel %vm395_vm5, %v928_v28, %v929_v29  ;;  %v1194_v44 = vrot.slane %v2191_v33, 7 }
  0x54   : > { %v2217_v52 = vsel %vm395_vm5, %v1194_v44, %v1195_v45  ;;  %v411_v44 = vstv %s410_s11  ;;  %v421_v45 = vstv %s1602_s18  ;;  %s2377_s11 = sld [smem:[#allocation5 + $0x190]] }
  0x55   : > { %s2380_s18 = sld [smem:[#allocation5 + $0x110]] }
  0x59   : > { %625 = vrot.lane.b32.xlu1 %v624_v38, %s1848_s17  ;;  %616 = vrot.lane.b32.xlu0 %v614_v39, %s1848_s17  ;;  %v2201_v38 = vld [vmem:[#allocation2 + $0x70] sm:$0x1f]  ;;  %v970_v39 = vsel %vm395_vm5, %v968_v30, %v969_v31  ;;  %v1258_v31 = vstv %s1692_s10  ;;  %s2369_s10 = sld [smem:[#allocation5 + $0x80]] }
  0x5a   : > { %629 = vrot.lane.b32.xlu2 %v401_v21, %s1849_s19  ;;  %v2177_v21 = vld [vmem:[#allocation2 + $0x58] sm:$0x1f]  ;;  %v1192_v47 = vrot.slane %v2201_v38, 7  ;;  %v1246_v9 = vmul.f32 %v1245_v7, %v2201_v38  ;;  %v1260_v42 = vmul.f32 %v1258_v31, %v2199_v36 }
  0x5b   : > { %v932_v27 = vrot.slane %v2177_v21, 7  ;;  %v963_v43 = vmul.f32 %v959_v19, %v2177_v21  ;;  %v984_v10 = vmul.f32 %v982_v3, %v2177_v21  ;;  %v375_v19 = vand.u32 7, %v370_v14 }
  0x5c   : > { %v534_v14 = vstv %s2289_s22  ;;  %s2409_s22 = sld [smem:[#allocation5 + $0x199]] }
  0x5d   : > { %v2194_v34 = vsel %vm395_vm5, %v931_v26, %v932_v27  ;;  %v972_v50 = vrot.slane %v963_v43, 7  ;;  %vm2266_vm8 = vcmp.ge.s32.totalorder %v375_v19, 1  ;;  %v414_v27 = vstv %s1601_s9  ;;  %s2362_s9 = sld [smem:[#allocation5 + $0xe]] }
  0x5e   : > { %v1259_v43 = vmul.f32 %v1258_v31, %v2201_v38  ;;  %vm2293_vm10 = vcmp.le.s32.totalorder %v375_v19, 6 }
  0x5f   : > { %v973_v58 = vsel %vm395_vm5, %v971_v49, %v972_v50 }
  0x60   : > { %v1263_v55 = vrot.slane %v1259_v43, 1 }
  0x61   : > { %673 = vrot.lane.b32.xlu1 %v2119_v53, %s1843_s4  ;;  %671 = vrot.lane.b32.xlu0 %v667_v54, %s1843_s4 }
  0x62   : > { %711 = vrot.lane.b32.xlu2 %v707_v57, %s1844_s5  ;;  %v1225_v57 = vmul.f32 %v1222_v48, %v2201_v38 }
  0x69   : > { %724 = vrot.lane.b32.xlu1 %v720_v61, %s1844_s5  ;;  %713 = vrot.lane.b32.xlu0 %v710_v62, %s1844_s5  ;;  %v1231_v61 = vrot.slane %v1223_v56, 7  ;;  %v1232_v62 = vrot.slane %v1225_v57, 7 }
  0x6a   : > { %726 = vrot.lane.b32.xlu2 %v721_v2, %s1844_s5 }
  0x6b   : > { %v1233_v0 = vsel %vm395_vm5, %v1231_v61, %v1232_v62 }
  0x71   : > { %741 = vrot.lane.b32.xlu1 %v738_v4, %s1844_s5  ;;  %739 = vrot.lane.b32.xlu0 %v737_v5, %s1844_s5  ;;  %v983_v5 = vmul.f32 %v982_v3, %v2179_v23 }
  0x72   : > { %746 = vrot.lane.b32.xlu2 %v667_v54, %s1845_s6 }
  0x79   : > { %771 = vrot.lane.b32.xlu1 %v667_v54, %s1842_s30  ;;  %748 = vrot.lane.b32.xlu0 %v2119_v53, %s1845_s6  ;;  %v1224_v54 = vmul.f32 %v1222_v48, %v2191_v33 }
  0x7a   : > { %773 = vrot.lane.b32.xlu2 %v2119_v53, %s1842_s30 }
  0x7b   : > { %v1234_v59 = vrot.slane %v1224_v54, 7  ;;  %v1264_v54 = vrot.slane %v1260_v42, 1 }
  0x7d   : > { %v1236_v2 = vsel %vm395_vm5, %v1234_v59, %v1235_v60 }
  0x81   : > { %840 = vrot.lane.b32.xlu1 %v2119_v53, %s1846_s8  ;;  %818 = vrot.lane.b32.xlu0 %v2119_v53, %s1847_s15 }
  0x82   : > { %871 = vrot.lane.b32.xlu2 %v870_v12, %s1848_s17 }
  0x89   : > { %888 = vrot.lane.b32.xlu1 %v887_v15, %s1848_s17  ;;  %879 = vrot.lane.b32.xlu0 %v877_v17, %s1848_s17 }
  0x8a   : > { %892 = vrot.lane.b32.xlu2 %v2119_v53, %s1849_s19  ;;  %v2220_v53 = vsel %vm395_vm5, %v1191_v46, %v1192_v47 }
  0x8c   : > { %v2189_v32 = vpop.permute.xlu2 %457 }
  0x91   : > { %936 = vrot.lane.b32.xlu1 %v2194_v34, %s1843_s4  ;;  %934 = vrot.lane.b32.xlu0 %v2197_v35, %s1843_s4 }
  0x92   : > { %974 = vrot.lane.b32.xlu2 %v970_v39, %s1844_s5 }
  0x94   : > { %v2214_v51 = vpop.permute.xlu2 %481 }
  0x99   : > { %1199 = vrot.lane.b32.xlu1 %v2217_v52, %s1843_s4  ;;  %1197 = vrot.lane.b32.xlu0 %v2220_v53, %s1843_s4  ;;  %s1663_s4 = sld [smem:[#allocation5 + $0x113]] }
  0x9a   : > { %976 = vrot.lane.b32.xlu2 %v973_v58, %s1844_s5 }
  0x9c   : > { %v2231_v63 = vpop.permute.xlu2 %459 }
  0x9f   : > { %v995_v17 = vstv %s1663_s4  ;;  %s2357_s4 = sld [smem:[#allocation5 + $0x89]] }
  0xa0   : > { %v996_v22 = vmul.f32 %v995_v17, %v2179_v23  ;;  %v997_v25 = vmul.f32 %v995_v17, %v2177_v21 }
  0xa1   : > { %1239 = vrot.lane.b32.xlu1 %v1236_v2, %s1844_s5  ;;  %1237 = vrot.lane.b32.xlu0 %v1233_v0, %s1844_s5 }
  0xa2   : > { %987 = vrot.lane.b32.xlu2 %v983_v5, %s1844_s5  ;;  %v1000_v23 = vrot.slane %v996_v22, 1  ;;  %v1001_v39 = vrot.slane %v997_v25, 1  ;;  %v535_v22 = vmul.f32 %v534_v14, %v2082_v16 }
  0xa3   : > { %v2235_v4 = vpop.permute.xlu1 %507  ;;  %v403_v6 = vpop.permute.xlu0 %402 }
  0xa4   : > { %v2241_v8 = vpop.permute.xlu2 %509 }
  0xa9   : > { %1250 = vrot.lane.b32.xlu1 %v1246_v9, %s1844_s5  ;;  %989 = vrot.lane.b32.xlu0 %v984_v10, %s1844_s5  ;;  %v512_v9 = vsel %vm511_vm12, %v2235_v4, %v2241_v8 }
  0xaa   : > { %1252 = vrot.lane.b32.xlu2 %v1247_v11, %s1844_s5  ;;  %v514_v4 = vsel %vm2266_vm8, %v512_v9, 0.0 }
  0xab   : > { %v2248_v12 = vpop.permute.xlu1 %443  ;;  %v2250_v13 = vpop.permute.xlu0 %472 }
  0xac   : > { %v2254_v15 = vpop.permute.xlu2 %608 }
  0xb1   : > { %1011 = vrot.lane.b32.xlu1 %v2194_v34, %s1845_s6  ;;  %1009 = vrot.lane.b32.xlu0 %v2197_v35, %s1845_s6 }
  0xb2   : > { %1272 = vrot.lane.b32.xlu2 %v2220_v53, %s1845_s6 }
  0xb3   : > { %v2261_v24 = vpop.permute.xlu1 %577  ;;  %v405_v1 = vpop.permute.xlu0 %404 }
  0xb4   : > { %v407_v28 = vsel %vm406_vm7, %v403_v6, %v405_v1  ;;  %v2273_v30 = vpop.permute.xlu2 %629  ;;  %v490_v6 = vstv %s2283_s21  ;;  %s2391_s21 = sld [smem:[#allocation5 + $0x18]] }
  0xb5   : > { %v409_v29 = vsel %vm2266_vm8, %v407_v28, 0.0  ;;  %v527_v28 = vstv %s2309_s26  ;;  %s2444_s26 = sld [smem:[#allocation5 + $0x8b]] }
  0xb6   : > { %v415_v37 = vmul.f32 %v414_v27, %v409_v29  ;;  %v412_v49 = vmul.f32 %v411_v44, %v409_v29  ;;  %v422_v50 = vmul.f32 %v421_v45, %v409_v29  ;;  %v516_v27 = vstv %s2291_s23  ;;  %s2434_s23 = sld [smem:[#allocation5 + $0x11]] }
  0xb7   : > { %v536_v29 = vmul.f32 %v534_v14, %v2086_v18  ;;  %v517_v44 = vmul.f32 %v516_v27, %v514_v4  ;;  %v528_v45 = vmul.f32 %v527_v28, %v514_v4  ;;  %v1402_v28 = vstv %s2377_s11  ;;  %s1648_s11 = sld [smem:[#allocation5 + $0x8f]] }
  0xb8   : > { %v417_v46 = vrot.slane %v415_v37, 1  ;;  %v424_v57 = vrot.slane %v422_v50, 2 }
  0xb9   : > { %1002 = vrot.lane.b32.xlu1 %v1000_v23, %s1844_s5  ;;  %1274 = vrot.lane.b32.xlu0 %v2217_v52, %s1845_s6  ;;  %s2287_s6 = sld [smem:[#allocation5 + $0x14]] }
  0xba   : > { %1004 = vrot.lane.b32.xlu2 %v1001_v39, %s1844_s5  ;;  %v419_v38 = vadd.f32 %v417_v46, %v412_v49  ;;  %v549_v49 = vstv %s2331_s27  ;;  %s2456_s27 = sld [smem:[#allocation5 + $0x1b]] }
  0xbb   : > { %v475_v47 = vpop.permute.xlu1 %474  ;;  %v484_v48 = vpop.permute.xlu0 %483 }
  0xbc   : > { %v2285_v56 = vpop.permute.xlu2 %711  ;;  %v486_v59 = vsel %vm485_vm9, %v2214_v51, %v484_v48  ;;  %v426_v61 = vadd.f32 %v424_v57, %v419_v38  ;;  %v494_v51 = vstv %s2281_s20  ;;  %v540_v48 = vrot.slane %v536_v29, 7  ;;  %s2383_s20 = sld [smem:[#allocation5 + $0x92]] }
  0xbd   : > { %v488_v2 = vsel %vm2293_vm10, %v486_v59, 0.0  ;;  %v1139_v29 = vstv %s2380_s18  ;;  %s1647_s18 = sld [smem:[#allocation5 + $0x86]] }
  0xbe   : > { %v495_v10 = vmul.f32 %v494_v51, %v488_v2  ;;  %v491_v17 = vmul.f32 %v490_v6, %v488_v2  ;;  %v550_v51 = vmul.f32 %v549_v49, %v2086_v18 }
  0xbf   : > { %v501_v7 = vstv %s2287_s6  ;;  %s2404_s6 = sld [smem:[#allocation5 + $0x119]] }
  0xc0   : > { %v502_v19 = vmul.f32 %v501_v7, %v488_v2  ;;  %v497_v8 = vrot.slane %v495_v10, 1 }
  0xc1   : > { %1267 = vrot.lane.b32.xlu1 %v1264_v54, %s1844_s5  ;;  %1265 = vrot.lane.b32.xlu0 %v1263_v55, %s1844_s5  ;;  %s2318_s5 = sld [smem:[#allocation5 + $0x187]] }
  0xc2   : > { %1034 = vrot.lane.b32.xlu2 %v2197_v35, %s1842_s30  ;;  %v461_v35 = vsel %vm447_vm11, %v2189_v32, %v2231_v63  ;;  %v520_v63 = vstv %s2301_s12  ;;  %v504_v31 = vrot.slane %v502_v19, 2  ;;  %s2437_s12 = sld [smem:[#allocation5 + $0x1a]] }
  0xc3   : > { %v446_v60 = vpop.permute.xlu1 %445  ;;  %v2303_v62 = vpop.permute.xlu0 %555  ;;  %v521_v23 = vmul.f32 %v520_v63, %v514_v4  ;;  %v560_v4 = vstv %s2355_s7  ;;  %s2470_s7 = sld [smem:[#allocation5 + $0x83]] }
  0xc4   : > { %v448_v0 = vsel %vm447_vm11, %v2248_v12, %v446_v60  ;;  %v2316_v5 = vpop.permute.xlu2 %726  ;;  %v476_v12 = vsel %vm447_vm11, %v2250_v13, %v475_v47  ;;  %v539_v47 = vrot.slane %v535_v22, 7  ;;  %v530_v60 = vrot.slane %v528_v45, 2 }
  0xc5   : > { %v450_v3 = vadd.f32 %v448_v0, %v426_v61  ;;  %v523_v55 = vrot.slane %v521_v23, 1  ;;  %v558_v19 = vsel %vm2293_vm10, %v2303_v62, 0.0  ;;  %v679_v62 = vstv %s2369_s10  ;;  %s1646_s10 = sld [smem:[#allocation5 + $0x97]] }
  0xc7   : > { %v463_v11 = vadd.f32 %v461_v35, %v450_v3  ;;  %v1389_v39 = vstv %s2318_s5  ;;  %v541_v3 = vsel %vm395_vm5, %v539_v47, %v540_v48  ;;  %s2449_s5 = sld [smem:[#allocation5 + $0x94]] }
  0xc8   : > { %v1390_v50 = vmul.f32 %v1389_v39, %v2191_v33  ;;  %v1391_v54 = vmul.f32 %v1389_v39, %v2199_v36  ;;  %v689_v39 = vstv %s2383_s20  ;;  %s1649_s20 = sld [smem:[#allocation5 + $0x98]] }
  0xc9   : > { %v478_v32 = vadd.f32 %v476_v12, %v463_v11  ;;  %1297 = vrot.lane.b32.xlu1 %v2220_v53, %s1842_s30  ;;  %1036 = vrot.lane.b32.xlu0 %v2194_v34, %s1842_s30  ;;  %v1126_v53 = vstv %s2305_s25  ;;  %v682_v11 = vstv %s2357_s4  ;;  %s2442_s25 = sld [smem:[#allocation5 + $0x82]] }
  0xca   : > { %1299 = vrot.lane.b32.xlu2 %v2217_v52, %s1842_s30  ;;  %v1127_v42 = vmul.f32 %v1126_v53, %v2175_v20  ;;  %v1128_v43 = vmul.f32 %v1126_v53, %v2177_v21  ;;  %s2366_s30 = sld [smem:[#allocation5 + $0x17]]  ;;  %v545_v20 = vstv %s2340_s28  ;;  %v1394_v6 = vrot.slane %v1390_v50, 7 }
  0xcb   : > { %v492_v13 = vadd.f32 %v491_v17, %v478_v32  ;;  %v2345_v1 = vpop.permute.xlu1 %625  ;;  %v2347_v25 = vpop.permute.xlu0 %616  ;;  %v1395_v7 = vrot.slane %v1391_v54, 7  ;;  %v546_v10 = vmul.f32 %v545_v20, %v2086_v18  ;;  %v564_v17 = vstv %s2362_s9  ;;  %s2462_s28 = sld [smem:[#allocation5 + $0x84]] }
  0xcc   : > { %v2359_v16 = vpop.permute.xlu2 %746  ;;  %v1131_v57 = vrot.slane %v1127_v42, 7  ;;  %v1132_v59 = vrot.slane %v1128_v43, 7  ;;  %v552_v18 = vrot.slane %v550_v51, 1  ;;  %v565_v27 = vmul.f32 %v564_v17, %v558_v19  ;;  %s2473_s4 = sld [smem:[#allocation5 + $0x95]] }
  0xcd   : > { %v499_v37 = vadd.f32 %v497_v8, %v492_v13  ;;  %v1396_v22 = vsel %vm395_vm5, %v1394_v6, %v1395_v7  ;;  %v1403_v50 = vmul.f32 %v1402_v28, %v2199_v36  ;;  %v1140_v54 = vmul.f32 %v1139_v29, %v2177_v21  ;;  %s2506_s9 = sld [smem:[#allocation5 + $0x8e]] }
  0xce   : > { %v1133_v32 = vsel %vm395_vm5, %v1131_v57, %v1132_v59  ;;  %v567_v49 = vrot.slane %v565_v27, 1  ;;  %v1147_v59 = vstv %s2404_s6  ;;  %s1655_s6 = sld [smem:[#allocation5 + $0x9a]] }
  0xcf   : > { %v506_v46 = vadd.f32 %v504_v31, %v499_v37  ;;  %v561_v31 = vmul.f32 %v560_v4, %v558_v19  ;;  %v1148_v6 = vmul.f32 %v1147_v59, %v2177_v21 }
  0xd0   : > { %v571_v8 = vstv %s2366_s30  ;;  %s2508_s30 = sld [smem:[#allocation5 + $0x85]] }
  0xd1   : > { %v518_v38 = vadd.f32 %v517_v44, %v506_v46  ;;  %1344 = vrot.lane.b32.xlu1 %v2217_v52, %s1847_s15  ;;  %1081 = vrot.lane.b32.xlu0 %v2194_v34, %s1847_s15  ;;  %s2387_s15 = sld [smem:[#allocation5 + $0xf]]  ;;  %v572_v37 = vmul.f32 %v571_v8, %v558_v19  ;;  %v582_v44 = vstv %s2342_s29  ;;  %v580_v46 = vsel %vm2266_vm8, %v2261_v24, 0.0 }
  0xd2   : > { %1103 = vrot.lane.b32.xlu2 %v2194_v34, %s1846_s8  ;;  %v583_v24 = vmul.f32 %v582_v44, %v580_v46  ;;  %s2464_s29 = sld [smem:[#allocation5 + $0x8c]]  ;;  %v765_v44 = vstv %s2449_s5 }
  0xd3   : > { %v525_v61 = vadd.f32 %v523_v55, %v518_v38  ;;  %v674_v2 = vpop.permute.xlu1 %673  ;;  %v672_v0 = vpop.permute.xlu0 %671  ;;  %v593_v38 = vstv %s2391_s21  ;;  %v574_v51 = vrot.slane %v572_v37, 2  ;;  %v754_v37 = vstv %s2442_s25  ;;  %s1653_s21 = sld [smem:[#allocation5 + $0x88]] }
  0xd4   : > { %v675_v35 = vsel %vm406_vm7, %v672_v0, %v674_v2  ;;  %v2397_v14 = vpop.permute.xlu2 %773  ;;  %v1410_v0 = vstv %s2409_s22  ;;  %s1656_s22 = sld [smem:[#allocation5 + $0x9b]] }
  0xd5   : > { %v532_v9 = vadd.f32 %v530_v60, %v525_v61  ;;  %v677_v12 = vsel %vm2266_vm8, %v675_v35, 0.0  ;;  %v1411_v17 = vmul.f32 %v1410_v0, %v2199_v36  ;;  %s1660_s25 = sld [smem:[#allocation5 + $0x112]] }
  0xd6   : > { %v683_v13 = vmul.f32 %v682_v11, %v677_v12  ;;  %v680_v20 = vmul.f32 %v679_v62, %v677_v12  ;;  %v690_v57 = vmul.f32 %v689_v39, %v677_v12  ;;  %s1689_s5 = sld [smem:[#allocation5 + $0x192]] }
  0xd7   : > { %v543_v63 = vadd.f32 %v541_v3, %v532_v9  ;;  %v586_v45 = vstv %s2387_s15  ;;  %v594_v3 = vmul.f32 %v593_v38, %v580_v46  ;;  %s1654_s15 = sld [smem:[#allocation5 + $0x91]] }
  0xd8   : > { %v685_v47 = vrot.slane %v683_v13, 1  ;;  %v587_v60 = vmul.f32 %v586_v45, %v580_v46  ;;  %v692_v7 = vrot.slane %v690_v57, 2  ;;  %v638_v13 = vstv %s2434_s23  ;;  %s1688_s23 = sld [smem:[#allocation5 + $0x189]] }
  0xd9   : > { %v547_v53 = vadd.f32 %v546_v10, %v543_v63  ;;  %1134 = vrot.lane.b32.xlu1 %v1133_v32, %s1848_s17  ;;  %1366 = vrot.lane.b32.xlu0 %v2217_v52, %s1846_s8  ;;  %s2431_s8 = sld [smem:[#allocation5 + $0x8]]  ;;  %v596_v21 = vrot.slane %v594_v3, 2 }
  0xda   : > { %1397 = vrot.lane.b32.xlu2 %v1396_v22, %s1848_s17  ;;  %v687_v2 = vadd.f32 %v685_v47, %v680_v20  ;;  %v589_v9 = vrot.slane %v587_v60, 1  ;;  %v783_v20 = vstv %s2464_s29  ;;  %v652_v60 = vstv %s2456_s27  ;;  %s2545_s27 = sld [smem:[#allocation5 + $0x102]] }
  0xdb   : > { %v554_v23 = vadd.f32 %v552_v18, %v547_v53  ;;  %v2418_v42 = vpop.permute.xlu1 %724  ;;  %v714_v43 = vpop.permute.xlu0 %713  ;;  %v1150_v18 = vrot.slane %v1148_v6, 1  ;;  %v1413_v53 = vrot.slane %v1411_v17, 1  ;;  %s2551_s29 = sld [smem:[#allocation5 + $0x114]] }
  0xdc   : > { %v2428_v55 = vpop.permute.xlu2 %871  ;;  %v694_v19 = vadd.f32 %v692_v7, %v687_v2  ;;  %v715_v63 = vsel %vm447_vm11, %v2285_v56, %v714_v43  ;;  %v758_v43 = vstv %s2444_s26  ;;  %v790_v2 = vstv %s2473_s4  ;;  %s1687_s26 = sld [smem:[#allocation5 + $0x180]] }
  0xdd   : > { %v562_v48 = vadd.f32 %v561_v31, %v554_v23  ;;  %s2555_s4 = sld [smem:[#allocation5 + $0x182]] }
  0xde   : > { %v717_v27 = vadd.f32 %v715_v63, %v694_v19 }
  0xdf   : > { %v569_v61 = vadd.f32 %v567_v49, %v562_v48  ;;  %v634_v8 = vstv %s2431_s8  ;;  %s1659_s8 = sld [smem:[#allocation5 + $0x109]] }
  0xe1   : > { %v576_v35 = vadd.f32 %v574_v51, %v569_v61  ;;  %1405 = vrot.lane.b32.xlu1 %v1403_v50, %s1848_s17  ;;  %1142 = vrot.lane.b32.xlu0 %v1140_v54, %s1848_s17 }
  0xe2   : > { %1155 = vrot.lane.b32.xlu2 %v2194_v34, %s1849_s19  ;;  %v632_v34 = vsel %vm2293_vm10, %v2273_v30, 0.0  ;;  %v645_v30 = vstv %s2437_s12  ;;  %s1658_s12 = sld [smem:[#allocation5 + $0x100]] }
  0xe3   : > { %v584_v10 = vadd.f32 %v583_v24, %v576_v35  ;;  %v742_v11 = vpop.permute.xlu1 %741  ;;  %v740_v12 = vpop.permute.xlu0 %739  ;;  %v635_v62 = vmul.f32 %v634_v8, %v632_v34  ;;  %v639_v28 = vmul.f32 %v638_v13, %v632_v34  ;;  %v779_v24 = vstv %s2470_s7  ;;  %s2553_s7 = sld [smem:[#allocation5 + $0x18b]] }
  0xe4   : > { %v2453_v4 = vpop.permute.xlu2 %892  ;;  %v743_v23 = vsel %vm447_vm11, %v740_v12, %v742_v11 }
  0xe5   : > { %v591_v32 = vadd.f32 %v589_v9, %v584_v10  ;;  %v641_v48 = vrot.slane %v639_v28, 1 }
  0xe7   : > { %v598_v22 = vadd.f32 %v596_v21, %v591_v32 }
  0xe9   : > { %v611_v56 = vadd.f32 %v2254_v15, %v598_v22  ;;  %1151 = vrot.lane.b32.xlu1 %v1150_v18, %s1848_s17  ;;  %1418 = vrot.lane.b32.xlu0 %v2217_v52, %s1849_s19  ;;  %v728_v15 = vsel %vm447_vm11, %v2418_v42, %v2316_v5  ;;  %s2499_s19 = sld [smem:[#allocation5 + $0x8d]] }
  0xea   : > { %1414 = vrot.lane.b32.xlu2 %v1413_v53, %s1848_s17  ;;  %v730_v52 = vadd.f32 %v728_v15, %v717_v27  ;;  %s2493_s17 = sld [smem:[#allocation5 + $0x96]] }
  0xeb   : > { %v619_v29 = vadd.f32 %v2347_v25, %v611_v56  ;;  %v772_v31 = vpop.permute.xlu1 %771  ;;  %v749_v39 = vpop.permute.xlu0 %748  ;;  %v646_v25 = vmul.f32 %v645_v30, %v632_v34 }
  0xec   : > { %v750_v45 = vsel %vm485_vm9, %v2359_v16, %v749_v39  ;;  %v775_v5 = vsel %vm511_vm12, %v772_v31, %v2397_v14  ;;  %v2491_v47 = vpop.permute.xlu2 %974  ;;  %v745_v49 = vadd.f32 %v743_v23, %v730_v52  ;;  %v827_v23 = vstv %s2506_s9  ;;  %s2566_s9 = sld [smem:[#allocation5 + $0x183]] }
  0xed   : > { %v628_v46 = vadd.f32 %v2345_v1, %v619_v29  ;;  %v752_v42 = vsel %vm2293_vm10, %v750_v45, 0.0  ;;  %v797_v1 = vstv %s2462_s28  ;;  %v777_v14 = vsel %vm2266_vm8, %v775_v5, 0.0  ;;  %s2547_s28 = sld [smem:[#allocation5 + $0x10b]] }
  0xee   : > { %v755_v50 = vmul.f32 %v754_v37, %v752_v42  ;;  %v759_v54 = vmul.f32 %v758_v43, %v752_v42  ;;  %v766_v38 = vmul.f32 %v765_v44, %v752_v42  ;;  %v648_v59 = vrot.slane %v646_v25, 2 }
  0xef   : > { %v636_v16 = vadd.f32 %v635_v62, %v628_v46  ;;  %v798_v0 = vmul.f32 %v797_v1, %v2109_v40  ;;  %v799_v3 = vmul.f32 %v797_v1, %v2111_v41  ;;  %v784_v6 = vmul.f32 %v783_v20, %v777_v14 }
  0xf0   : > { %v756_v57 = vadd.f32 %v755_v50, %v745_v49  ;;  %v761_v51 = vrot.slane %v759_v54, 1  ;;  %v768_v9 = vrot.slane %v766_v38, 2  ;;  %v780_v17 = vmul.f32 %v779_v24, %v777_v14 }
  0xf1   : > { %v643_v61 = vadd.f32 %v641_v48, %v636_v16  ;;  %v791_v19 = vmul.f32 %v790_v2, %v777_v14  ;;  %v802_v40 = vrot.slane %v798_v0, 7  ;;  %v803_v32 = vrot.slane %v799_v3, 7 }
  0xf2   : > { %v763_v7 = vadd.f32 %v761_v51, %v756_v57  ;;  %v812_v63 = vstv %s2493_s17  ;;  %v786_v13 = vrot.slane %v784_v6, 1  ;;  %v808_v22 = vstv %s2499_s19  ;;  %s2557_s17 = sld [smem:[#allocation5 + $0x184]] }
  0xf3   : > { %v650_v35 = vadd.f32 %v648_v59, %v643_v61  ;;  %v841_v10 = vpop.permute.xlu1 %840  ;;  %v819_v11 = vpop.permute.xlu0 %818  ;;  %v793_v53 = vrot.slane %v791_v19, 2  ;;  %v813_v56 = vmul.f32 %v812_v63, %v2111_v41  ;;  %v804_v30 = vsel %vm395_vm5, %v802_v40, %v803_v32  ;;  %s2559_s19 = sld [smem:[#allocation5 + $0x194]] }
  0xf4   : > { %v770_v21 = vadd.f32 %v768_v9, %v763_v7  ;;  %v2511_v18 = vpop.permute.xlu2 %976  ;;  %v809_v28 = vmul.f32 %v808_v22, %v2111_v41  ;;  %v821_v31 = vsel %vm2293_vm10, %v819_v11, 0.0  ;;  %v823_v52 = vstv %s2508_s30  ;;  %s2571_s30 = sld [smem:[#allocation5 + $0x104]] }
  0xf5   : > { %v653_v12 = vadd.f32 %v652_v60, %v650_v35  ;;  %v815_v39 = vrot.slane %v813_v56, 1  ;;  %v834_v43 = vstv %s1646_s10  ;;  %v828_v25 = vmul.f32 %v827_v23, %v821_v31  ;;  %s2576_s10 = sld [smem:[#allocation5 + $0x18c]] }
  0xf6   : > { %v781_v34 = vadd.f32 %v780_v17, %v770_v21  ;;  %v824_v5 = vmul.f32 %v823_v52, %v821_v31  ;;  %v835_v42 = vmul.f32 %v834_v43, %v821_v31  ;;  %v849_v48 = vstv %s1648_s11  ;;  %s2580_s11 = sld [smem:[#allocation5 + $0x195]] }
  0xf7   : > { %v654_v8 = vmax.f32 %v653_v12, 0.0  ;;  %v843_v41 = vsel %vm2266_vm8, %v841_v10, 0.0  ;;  %v830_v50 = vrot.slane %v828_v25, 1  ;;  %v845_v38 = vstv %s1647_s18  ;;  %s2589_s18 = sld [smem:[#allocation5 + $0x103]] }
  0xf8   : > { %v788_v27 = vadd.f32 %v786_v13, %v781_v34  ;;  %v856_v1 = vstv %s1649_s20  ;;  %v850_v20 = vmul.f32 %v849_v48, %v843_v41  ;;  %v837_v57 = vrot.slane %v835_v42, 2  ;;  %s2591_s20 = sld [smem:[#allocation5 + $0x10c]] }
  0xf9   : > { %1628 = vst.msk [vmem:[%s2133_s24 + $0x10] sm:$0xf] %vm317_vm6, %v654_v8  ;;  %v846_v59 = vmul.f32 %v845_v38, %v843_v41  ;;  %v857_v60 = vmul.f32 %v856_v1, %v843_v41  ;;  %v901_v9 = vstv %s1654_s15  ;;  %v895_v10 = vsel %vm2293_vm10, %v2453_v4, 0.0  ;;  %s2596_s15 = sld [smem:[#allocation5 + $0x115]] }
  0xfa   : > { %v795_v62 = vadd.f32 %v793_v53, %v788_v27  ;;  %v852_v24 = vrot.slane %v850_v20, 1  ;;  %v897_v12 = vstv %s1653_s21  ;;  %v908_v17 = vstv %s1655_s6  ;;  %s2607_s21 = sld [smem:[#allocation5 + $0x196]] }
  0xfb   : > { %v889_v29 = vpop.permute.xlu1 %888  ;;  %v880_v15 = vpop.permute.xlu0 %879  ;;  %v859_v0 = vrot.slane %v857_v60, 2  ;;  %v902_v19 = vmul.f32 %v901_v9, %v895_v10  ;;  %v898_v32 = vmul.f32 %v897_v12, %v895_v10  ;;  %v909_v63 = vmul.f32 %v908_v17, %v895_v10  ;;  %s2609_s6 = sld [smem:[#allocation5 + $0x116]] }
  0xfc   : > { %v806_v37 = vadd.f32 %v804_v30, %v795_v62  ;;  %v2523_v44 = vpop.permute.xlu2 %987  ;;  %v915_v56 = vstv %s1656_s22  ;;  %v945_v62 = vstv %s1659_s8  ;;  %v1208_v43 = vstv %s1688_s23  ;;  %s2618_s22 = sld [smem:[#allocation5 + $0x18d]] }
  0xfd   : > { %v904_v22 = vrot.slane %v902_v19, 1  ;;  %v911_v4 = vrot.slane %v909_v63, 2  ;;  %v942_v25 = vstv %s1658_s12  ;;  %v1021_v12 = vstv %s2547_s28  ;;  %s2626_s8 = sld [smem:[#allocation5 + $0x10d]] }
  0xfe   : > { %v810_v45 = vadd.f32 %v809_v28, %v806_v37  ;;  %s2630_s23 = sld [smem:[#allocation5 + $0x185]] }
  0xff   : > { %s2636_s12 = sld [smem:[#allocation5 + $0x18e]] }
 0x100   : > { %v817_v46 = vadd.f32 %v815_v39, %v810_v45  ;;  %s2653_s28 = sld [smem:[#allocation5 + $0x106]] }
 0x102   : > { %v825_v49 = vadd.f32 %v824_v5, %v817_v46  ;;  %v952_v46 = vstv %s1660_s25  ;;  %s2642_s25 = sld [smem:[#allocation5 + $0x197]] }
 0x103   : > { %v937_v16 = vpop.permute.xlu1 %936  ;;  %v935_v54 = vpop.permute.xlu0 %934 }
 0x104   : > { %v832_v14 = vadd.f32 %v830_v50, %v825_v49  ;;  %v2527_v51 = vpop.permute.xlu2 %1252 }
 0x106   : > { %v839_v61 = vadd.f32 %v837_v57, %v832_v14 }
 0x108   : > { %v847_v2 = vadd.f32 %v846_v59, %v839_v61 }
 0x10a   : > { %v854_v3 = vadd.f32 %v852_v24, %v847_v2 }
 0x10b   : > { %v1200_v35 = vpop.permute.xlu1 %1199  ;;  %v1198_v6 = vpop.permute.xlu0 %1197 }
 0x10c   : > { %v861_v7 = vadd.f32 %v859_v0, %v854_v3  ;;  %v2533_v40 = vpop.permute.xlu2 %1272  ;;  %v978_v3 = vsel %vm447_vm11, %v2491_v47, %v2511_v18 }
 0x10e   : > { %v874_v11 = vadd.f32 %v2428_v55, %v861_v7  ;;  %v938_v55 = vsel %vm406_vm7, %v935_v54, %v937_v16  ;;  %v1205_v16 = vstv %s1687_s26  ;;  %v1215_v54 = vstv %s1689_s5  ;;  %s2644_s26 = sld [smem:[#allocation5 + $0x10e]] }
 0x10f   : > { %v940_v28 = vsel %vm2266_vm8, %v938_v55, 0.0  ;;  %s2648_s5 = sld [smem:[#allocation5 + $0x105]] }
 0x110   : > { %v882_v21 = vadd.f32 %v880_v15, %v874_v11  ;;  %v1201_v15 = vsel %vm406_vm7, %v1198_v6, %v1200_v35  ;;  %v946_v52 = vmul.f32 %v945_v62, %v940_v28  ;;  %v943_v48 = vmul.f32 %v942_v25, %v940_v28 }
 0x111   : > { %v1203_v45 = vsel %vm2266_vm8, %v1201_v15, 0.0  ;;  %v953_v41 = vmul.f32 %v952_v46, %v940_v28  ;;  %v1774_v46 = vld [vmem:[#allocation2 + $0x48] sm:$0x80] }
 0x112   : > { %v891_v8 = vadd.f32 %v889_v29, %v882_v21  ;;  %v948_v5 = vrot.slane %v946_v52, 1  ;;  %v1209_v42 = vmul.f32 %v1208_v43, %v1203_v45  ;;  %v1206_v57 = vmul.f32 %v1205_v16, %v1203_v45 }
 0x113   : > { %v2535_v13 = vpop.permute.xlu1 %1239  ;;  %v1238_v34 = vpop.permute.xlu0 %1237  ;;  %v955_v14 = vrot.slane %v953_v41, 2  ;;  %v1216_v59 = vmul.f32 %v1215_v54, %v1203_v45  ;;  %v1284_v21 = vstv %s2553_s7  ;;  %v1305_v41 = vstv %s2566_s9  ;;  %s2660_s7 = sld [smem:[#allocation5 + $0x18f]] }
 0x114   : > { %v899_v53 = vadd.f32 %v898_v32, %v891_v8  ;;  %v1005_v37 = vpop.permute.xlu2 %1004  ;;  %v950_v38 = vadd.f32 %v948_v5, %v943_v48  ;;  %v1211_v1 = vrot.slane %v1209_v42, 1  ;;  %v1241_v11 = vsel %vm447_vm11, %v1238_v34, %v2535_v13  ;;  %s2692_s9 = sld [smem:[#allocation5 + $0x108]] }
 0x115   : > { %v1218_v24 = vrot.slane %v1216_v59, 2  ;;  %v1028_v13 = vstv %s2551_s29  ;;  %v1280_v34 = vstv %s2555_s4  ;;  %v1042_v16 = vstv %s2589_s18  ;;  %s2655_s29 = sld [smem:[#allocation5 + $0x10f]] }
 0x116   : > { %v906_v27 = vadd.f32 %v904_v22, %v899_v53  ;;  %v957_v60 = vadd.f32 %v955_v14, %v950_v38  ;;  %v1213_v61 = vadd.f32 %v1211_v1, %v1206_v57  ;;  %v1323_v22 = vstv %s2557_s17  ;;  %s2663_s4 = sld [smem:[#allocation5 + $0x186]] }
 0x117   : > { %v1046_v54 = vstv %s2591_s20  ;;  %v1053_v38 = vstv %s2596_s15  ;;  %s2671_s17 = sld [smem:[#allocation5 + $0x198]] }
 0x118   : > { %v913_v30 = vadd.f32 %v911_v4, %v906_v27  ;;  %v980_v6 = vadd.f32 %v978_v3, %v957_v60  ;;  %v1220_v7 = vadd.f32 %v1218_v24, %v1213_v61  ;;  %s2701_s18 = sld [smem:[#allocation5 + $0x191]] }
 0x119   : > { %s2703_s20 = sld [smem:[#allocation5 + $0x19a]] }
 0x11a   : > { %v916_v29 = vadd.f32 %v915_v56, %v913_v30  ;;  %v1243_v63 = vadd.f32 %v1241_v11, %v1220_v7  ;;  %v1291_v30 = vstv %s2559_s19  ;;  %s2673_s19 = sld [smem:[#allocation5 + $0x118]] }
 0x11b   : > { %v1251_v23 = vpop.permute.xlu1 %1250  ;;  %v990_v31 = vpop.permute.xlu0 %989  ;;  %s2711_s15 = sld [smem:[#allocation5 + $0x11b]] }
 0x11c   : > { %v917_v39 = vmax.f32 %v916_v29, 0.0  ;;  %v2549_v20 = vpop.permute.xlu2 %1034  ;;  %v991_v35 = vsel %vm447_vm11, %v2523_v44, %v990_v31  ;;  %v1017_v44 = vstv %s2545_s27  ;;  %v1254_v17 = vsel %vm447_vm11, %v1251_v23, %v2527_v51  ;;  %s2650_s27 = sld [smem:[#allocation5 + $0x117]] }
 0x11d   : > { %v993_v18 = vadd.f32 %v991_v35, %v980_v6  ;;  %v1256_v51 = vadd.f32 %v1254_v17, %v1243_v63  ;;  %v1060_v23 = vstv %s2571_s30  ;;  %v1338_v17 = vstv %s2607_s21  ;;  %s2695_s30 = sld [smem:[#allocation5 + $0x111]] }
 0x11e   : > { %1657 = vst.msk [vmem:[%s2133_s24 + $0x14] sm:$0xf] %vm317_vm6, %v917_v39  ;;  %v2605_v39 = vmul.f32 %v1323_v22, %v2199_v36  ;;  %v2611_v5 = vmul.f32 %v1774_v46, %v1060_v23  ;;  %s1714_s21 = sld [smem:[#allocation5 + $0x19b]] }
 0x120   : > { %v1329_v61 = vrot.slane %v2605_v39, 7 }
 0x123   : > { %v1012_v49 = vpop.permute.xlu1 %1011  ;;  %v1010_v50 = vpop.permute.xlu0 %1009 }
 0x124   : > { %v1013_v9 = vsel %vm485_vm9, %v1010_v50, %v1012_v49  ;;  %v1300_v32 = vpop.permute.xlu2 %1299  ;;  %v1309_v49 = vstv %s2576_s10  ;;  %v1316_v50 = vstv %s2580_s11  ;;  %s2697_s10 = sld [smem:[#allocation5 + $0x11a]] }
 0x125   : > { %v1015_v19 = vsel %vm2293_vm10, %v1013_v9, 0.0  ;;  %s2699_s11 = sld [smem:[#allocation5 + $0x188]] }
 0x126   : > { %v1018_v53 = vmul.f32 %v1017_v44, %v1015_v19  ;;  %v1022_v4 = vmul.f32 %v1021_v12, %v1015_v19  ;;  %v1029_v31 = vmul.f32 %v1028_v13, %v1015_v19  ;;  %v1075_v19 = vstv %s2609_s6 }
 0x127   : > { %v1334_v13 = vstv %s2618_s22 }
 0x128   : > { %v1024_v52 = vrot.slane %v1022_v4, 1  ;;  %v1031_v14 = vrot.slane %v1029_v31, 2  ;;  %v1353_v31 = vstv %s2636_s12 }
 0x12b   : > { %v1003_v2 = vpop.permute.xlu1 %1002  ;;  %v1275_v0 = vpop.permute.xlu0 %1274 }
 0x12c   : > { %v1276_v10 = vsel %vm485_vm9, %v2533_v40, %v1275_v0  ;;  %v1006_v47 = vsel %vm447_vm11, %v1003_v2, %v1005_v37  ;;  %v2602_v37 = vmul.f32 %v1323_v22, %v2191_v33  ;;  %v2613_v33 = vld [vmem:[#allocation2 + $0x58] sm:$0x1f]  ;;  %v2624_v1 = vpop.permute.xlu2 %1103  ;;  %v1065_v0 = vrot.slane %v2611_v5, 7 }
 0x12d   : > { %v1278_v40 = vsel %vm2293_vm10, %v1276_v10, 0.0  ;;  %v1008_v8 = vadd.f32 %v1006_v47, %v993_v18  ;;  %v1062_v36 = vmul.f32 %v2613_v33, %v1060_v23  ;;  %v1776_v22 = vld [vmem:[#allocation2 + $0x78] sm:$0x1f] }
 0x12e   : > { %v1285_v27 = vmul.f32 %v1284_v21, %v1278_v40  ;;  %v1281_v29 = vmul.f32 %v1280_v34, %v1278_v40  ;;  %v1292_v45 = vmul.f32 %v1291_v30, %v1278_v40  ;;  %v1328_v60 = vrot.slane %v2602_v37, 7 }
 0x12f   : > { %v1019_v28 = vadd.f32 %v1018_v53, %v1008_v8  ;;  %v1066_v3 = vrot.slane %v1062_v36, 7  ;;  %v1071_v53 = vstv %s2626_s8  ;;  %v1076_v30 = vmul.f32 %v2613_v33, %v1075_v19 }
 0x130   : > { %v1287_v43 = vrot.slane %v1285_v27, 1  ;;  %v1294_v57 = vrot.slane %v1292_v45, 2  ;;  %v1330_v4 = vsel %vm395_vm5, %v1328_v60, %v1329_v61  ;;  %v1072_v39 = vmul.f32 %v2613_v33, %v1071_v53 }
 0x131   : > { %v1026_v42 = vadd.f32 %v1024_v52, %v1019_v28  ;;  %v1349_v36 = vstv %s2630_s23  ;;  %v1112_v60 = vstv %s2655_s29 }
 0x133   : > { %v1268_v55 = vpop.permute.xlu1 %1267  ;;  %v1266_v56 = vpop.permute.xlu0 %1265  ;;  %v1033_v6 = vadd.f32 %v1031_v14, %v1026_v42  ;;  %v1360_v42 = vstv %s2642_s25 }
 0x134   : > { %v1269_v62 = vsel %vm447_vm11, %v1266_v56, %v1268_v55  ;;  %v2669_v52 = vpop.permute.xlu2 %1397 }
 0x135   : > { %v1271_v15 = vadd.f32 %v1269_v62, %v1256_v51  ;;  %v1339_v51 = vmul.f32 %v1776_v22, %v1338_v17  ;;  %v1119_v17 = vstv %s2673_s19 }
 0x137   : > { %v1282_v25 = vadd.f32 %v1281_v29, %v1271_v15  ;;  %v1067_v29 = vsel %vm395_vm5, %v1065_v0, %v1066_v3  ;;  %v1335_v15 = vmul.f32 %v1776_v22, %v1334_v13  ;;  %v1341_v45 = vrot.slane %v1339_v51, 1 }
 0x138   : > { %v1375_v3 = vstv %s2660_s7 }
 0x139   : > { %v1289_v48 = vadd.f32 %v1287_v43, %v1282_v25  ;;  %v1090_v25 = vstv %s2644_s26 }
 0x13b   : > { %v1298_v59 = vpop.permute.xlu1 %1297  ;;  %v1037_v24 = vpop.permute.xlu0 %1036  ;;  %v1296_v7 = vadd.f32 %v1294_v57, %v1289_v48  ;;  %v1078_v48 = vrot.slane %v1076_v30, 1 }
 0x13c   : > { %v1301_v2 = vsel %vm511_vm12, %v1298_v59, %v1300_v32  ;;  %v1038_v35 = vsel %vm511_vm12, %v2549_v20, %v1037_v24 }
 0x13d   : > { %v1303_v9 = vsel %vm2266_vm8, %v1301_v2, 0.0  ;;  %v1040_v10 = vsel %vm2266_vm8, %v1038_v35, 0.0 }
 0x13e   : > { %v1306_v11 = vmul.f32 %v1305_v41, %v1303_v9  ;;  %v1310_v47 = vmul.f32 %v1309_v49, %v1303_v9  ;;  %v1317_v18 = vmul.f32 %v1316_v50, %v1303_v9  ;;  %v1043_v44 = vmul.f32 %v1042_v16, %v1040_v10 }
 0x13f   : > { %v1047_v20 = vmul.f32 %v1046_v54, %v1040_v10  ;;  %v1054_v12 = vmul.f32 %v1053_v38, %v1040_v10  ;;  %v1086_v49 = vstv %s2648_s5  ;;  %v1097_v50 = vstv %s2650_s27 }
 0x140   : > { %v1307_v21 = vadd.f32 %v1306_v11, %v1296_v7  ;;  %v1312_v40 = vrot.slane %v1310_v47, 1  ;;  %v1319_v32 = vrot.slane %v1317_v18, 2  ;;  %v1044_v63 = vadd.f32 %v1043_v44, %v1033_v6 }
 0x141   : > { %v1049_v8 = vrot.slane %v1047_v20, 1  ;;  %v1056_v55 = vrot.slane %v1054_v12, 2  ;;  %v1108_v16 = vstv %s2653_s28  ;;  %v1106_v9 = vsel %vm2266_vm8, %v2624_v1, 0.0  ;;  %v1156_v1 = vpop.permute.xlu2 %1155 }
 0x142   : > { %v1314_v34 = vadd.f32 %v1312_v40, %v1307_v21  ;;  %v1371_v18 = vstv %s2663_s4  ;;  %v1382_v44 = vstv %s2671_s17  ;;  %v1113_v21 = vmul.f32 %v1112_v60, %v1106_v9 }
 0x143   : > { %v1051_v27 = vadd.f32 %v1049_v8, %v1044_v63  ;;  %v1345_v56 = vpop.permute.xlu1 %1344  ;;  %v1082_v62 = vpop.permute.xlu0 %1081  ;;  %v1109_v13 = vmul.f32 %v1108_v16, %v1106_v9 }
 0x144   : > { %v1321_v28 = vadd.f32 %v1319_v32, %v1314_v34  ;;  %v1347_v37 = vsel %vm2293_vm10, %v1345_v56, 0.0  ;;  %v1084_v46 = vsel %vm2293_vm10, %v1082_v62, 0.0  ;;  %v1120_v34 = vmul.f32 %v1119_v17, %v1106_v9 }
 0x145   : > { %v1058_v23 = vadd.f32 %v1056_v55, %v1051_v27  ;;  %v1354_v41 = vmul.f32 %v1353_v31, %v1347_v37  ;;  %v1091_v38 = vmul.f32 %v1090_v25, %v1084_v46  ;;  %v1350_v57 = vmul.f32 %v1349_v36, %v1347_v37 }
 0x146   : > { %v1332_v43 = vadd.f32 %v1330_v4, %v1321_v28  ;;  %v1361_v59 = vmul.f32 %v1360_v42, %v1347_v37  ;;  %v1087_v24 = vmul.f32 %v1086_v49, %v1084_v46  ;;  %v1098_v2 = vmul.f32 %v1097_v50, %v1084_v46 }
 0x147   : > { %v1069_v5 = vadd.f32 %v1067_v29, %v1058_v23  ;;  %v1356_v7 = vrot.slane %v1354_v41, 1  ;;  %v1093_v47 = vrot.slane %v1091_v38, 1  ;;  %v1115_v4 = vrot.slane %v1113_v21, 1 }
 0x148   : > { %v1336_v33 = vadd.f32 %v1335_v15, %v1332_v43  ;;  %v1363_v12 = vrot.slane %v1361_v59, 2  ;;  %v1100_v32 = vrot.slane %v1098_v2, 2  ;;  %v1122_v28 = vrot.slane %v1120_v34, 2 }
 0x149   : > { %v1073_v54 = vadd.f32 %v1072_v39, %v1069_v5  ;;  %v1164_v37 = vstv %s2695_s30  ;;  %v1158_v39 = vsel %vm2293_vm10, %v1156_v1, 0.0  ;;  %v1171_v25 = vstv %s2697_s10  ;;  %v1415_v46 = vpop.permute.xlu2 %1414 }
 0x14a   : > { %v1343_v14 = vadd.f32 %v1341_v45, %v1336_v33  ;;  %v1160_v45 = vstv %s2692_s9  ;;  %v1423_v36 = vstv %s2699_s11  ;;  %v1427_v42 = vstv %s2701_s18 }
 0x14b   : > { %v1080_v61 = vadd.f32 %v1078_v48, %v1073_v54  ;;  %v1135_v0 = vpop.permute.xlu1 %1134  ;;  %v1367_v35 = vpop.permute.xlu0 %1366  ;;  %v1434_v48 = vstv %s2703_s20  ;;  %v1165_v33 = vmul.f32 %v1164_v37, %v1158_v39  ;;  %v1172_v16 = vmul.f32 %v1171_v25, %v1158_v39 }
 0x14c   : > { %v1351_v6 = vadd.f32 %v1350_v57, %v1343_v14  ;;  %v1369_v10 = vsel %vm2266_vm8, %v1367_v35, 0.0  ;;  %v1178_v9 = vstv %s2711_s15 }
 0x14d   : > { %v1088_v11 = vadd.f32 %v1087_v24, %v1080_v61  ;;  %v1376_v19 = vmul.f32 %v1375_v3, %v1369_v10  ;;  %v1372_v63 = vmul.f32 %v1371_v18, %v1369_v10  ;;  %v1383_v8 = vmul.f32 %v1382_v44, %v1369_v10 }
 0x14e   : > { %v1358_v20 = vadd.f32 %v1356_v7, %v1351_v6  ;;  %v1167_v61 = vrot.slane %v1165_v33, 1  ;;  %v1174_v3 = vrot.slane %v1172_v16, 2  ;;  %v1441_v10 = vstv %s1714_s21 }
 0x14f   : > { %v1095_v40 = vadd.f32 %v1093_v47, %v1088_v11  ;;  %v1378_v53 = vrot.slane %v1376_v19, 1  ;;  %v1385_v62 = vrot.slane %v1383_v8, 2 }
 0x150   : > { %v1365_v26 = vadd.f32 %v1363_v12, %v1358_v20 }
 0x151   : > { %v1102_v22 = vadd.f32 %v1100_v32, %v1095_v40 }
 0x152   : > { %v1373_v51 = vadd.f32 %v1372_v63, %v1365_v26 }
 0x153   : > { %v1110_v27 = vadd.f32 %v1109_v13, %v1102_v22  ;;  %v1406_v55 = vpop.permute.xlu1 %1405  ;;  %v1143_v56 = vpop.permute.xlu0 %1142 }
 0x154   : > { %v1380_v30 = vadd.f32 %v1378_v53, %v1373_v51 }
 0x155   : > { %v1117_v29 = vadd.f32 %v1115_v4, %v1110_v27 }
 0x156   : > { %v1387_v15 = vadd.f32 %v1385_v62, %v1380_v30 }
 0x157   : > { %v1124_v23 = vadd.f32 %v1122_v28, %v1117_v29 }
 0x158   : > { %v1400_v31 = vadd.f32 %v2669_v52, %v1387_v15  ;;  %v1161_v52 = vmul.f32 %v1160_v45, %v1158_v39 }
 0x159   : > { %v1137_v43 = vadd.f32 %v1135_v0, %v1124_v23 }
 0x15a   : > { %v1408_v5 = vadd.f32 %v1406_v55, %v1400_v31 }
 0x15b   : > { %v1145_v41 = vadd.f32 %v1143_v56, %v1137_v43  ;;  %v1152_v49 = vpop.permute.xlu1 %1151  ;;  %v1419_v50 = vpop.permute.xlu0 %1418 }
 0x15c   : > { %v1417_v54 = vadd.f32 %v1415_v46, %v1408_v5  ;;  %v1421_v38 = vsel %vm2293_vm10, %v1419_v50, 0.0 }
 0x15d   : > { %v1154_v14 = vadd.f32 %v1152_v49, %v1145_v41  ;;  %v1424_v57 = vmul.f32 %v1423_v36, %v1421_v38  ;;  %v1428_v59 = vmul.f32 %v1427_v42, %v1421_v38  ;;  %v1435_v60 = vmul.f32 %v1434_v48, %v1421_v38 }
 0x15f   : > { %v1162_v24 = vadd.f32 %v1161_v52, %v1154_v14  ;;  %v1425_v2 = vadd.f32 %v1424_v57, %v1417_v54  ;;  %v1430_v0 = vrot.slane %v1428_v59, 1  ;;  %v1437_v7 = vrot.slane %v1435_v60, 2 }
 0x161   : > { %v1169_v35 = vadd.f32 %v1167_v61, %v1162_v24  ;;  %v1432_v6 = vadd.f32 %v1430_v0, %v1425_v2 }
 0x163   : > { %v1176_v11 = vadd.f32 %v1174_v3, %v1169_v35  ;;  %v1439_v47 = vadd.f32 %v1437_v7, %v1432_v6 }
 0x165   : > { %v1179_v58 = vadd.f32 %v1178_v9, %v1176_v11  ;;  %v1442_v18 = vadd.f32 %v1441_v10, %v1439_v47 }
 0x167   : > { %v1180_v44 = vmax.f32 %v1179_v58, 0.0  ;;  %v1443_v20 = vmax.f32 %v1442_v18, 0.0 }
 0x169   : > { %1686 = vst.msk [vmem:[%s2133_s24 + $0x18] sm:$0xf] %vm317_vm6, %v1180_v44 }
 0x16a   : > { %1715 = vst.msk [vmem:[%s2133_s24 + $0x1c] sm:$0xf] %vm317_vm6, %v1443_v20 }
 0x16b PF: > { %s15_s14 = sadd.s32 1, %s1837_s14   ;;  %s2743_s12 = smov %s1833_s13 }
 0x16c   : > { %p12_p8 = scmp.ge.s32.totalorder %s15_s14, 4   ;;  %s2744_s13 = smov %s2746_s16 }
 0x16e   :  { %14 = sbr.rel (!%p12_p8) target bundleno = 3 (0x3), region = 93 }
 0x173   :  { %1473 = vsyncpa [#allocation4], 1 }
 0x174   :  { %1475 = vsyncpa [#allocation4 + $0x1], 1 }
 0x175   :  { %1476 = vsyncpa [#allocation6], 1 }

</bundles_post_ra>
